<compile_context>
chip_gen: v5e
topology: v5e:2x2
jax: 0.10.0
libtpu: 0.0.40
codegen_flags: <defaults>
</compile_context>

<pallas_src>
import functools
import math

import jax
import jax.numpy as jnp
from jax.experimental import pallas as pl
from jax.experimental.pallas import tpu as pltpu

# ------------------------- config (GlobalConfig surrogate) -------------------------
D_MODEL = 32
NUM_HEADS = 2
D_K = 16                    # per-head dim (module passes 64; scaled down for the small test)
HDK = NUM_HEADS * D_K
N_MEM = 4                   # memory slots of MeshedMemoryMultiHeadAttention_new
VOCAB_SIZE = 2 * D_MODEL    # the reference code concatenates (B,1,2D) onto (B,1,V): V must equal 2D
MAX_SEQ_LEN = 5
TOKEN_BOS = 1.0
PARAM_COLS = 100            # self.param : (d_model, 100)


# ------------------------------- spec helpers --------------------------------------
def _const_spec(x):
    """Full-array block whose block index never changes -> stays resident in VMEM."""
    nd = x.ndim
    return pl.BlockSpec(x.shape, lambda *_: (0,) * nd)


# ----------------------------- in-kernel math helpers --------------------------------
def _softmax_lastdim(x):
    m = jnp.max(x, axis=-1, keepdims=True)
    e = jnp.exp(x - m)
    return e / jnp.sum(e, axis=-1, keepdims=True)


def _layer_norm_lastdim(x, eps=1e-5):
    mu = jnp.mean(x, axis=-1, keepdims=True)
    var = jnp.mean((x - mu) ** 2, axis=-1, keepdims=True)
    return (x - mu) * jax.lax.rsqrt(var + eps)


def _lstm_cell_cat2(xa, xb, h, c, w_ih, w_hh, b):
    """LSTMCell on x = concat([xa, xb], dim=1). w_ih is (2D, 4D); its two row blocks are
    applied separately (identical math, no in-kernel lane concat). Gate order i,f,g,o."""
    d = h.shape[1]
    gates = (jnp.dot(xa, w_ih[0:d, :], preferred_element_type=jnp.float32)
             + jnp.dot(xb, w_ih[d:2 * d, :], preferred_element_type=jnp.float32)
             + jnp.dot(h, w_hh, preferred_element_type=jnp.float32)
             + b)
    i = jax.nn.sigmoid(gates[:, 0:d])
    f = jax.nn.sigmoid(gates[:, d:2 * d])
    g = jnp.tanh(gates[:, 2 * d:3 * d])
    o = jax.nn.sigmoid(gates[:, 3 * d:4 * d])
    c_new = f * c + i * g
    return o * jnp.tanh(c_new), c_new


def _mha_nq1(q, k_ref, v_ref, bias, wo, bo, batch, heads, dk):
    """MeshedMemory MHA with a single query per batch element.
    q: (B, H*DK); k_ref/v_ref: VMEM refs (B, Nk, H*DK) with memory slots already appended;
    bias: (B, Nk) additive mask.  Returns the output projection (B, D) as
    sum_h attn_h @ wo[h*dk:(h+1)*dk] + bo  (== concat_h(attn_h) @ wo + bo)."""
    scale = 1.0 / math.sqrt(dk)
    rows = []
    for b in range(batch):
        kb = k_ref[b]                                            # (Nk, H*DK)
        vb = v_ref[b]
        bias_b = bias[b:b + 1, :]                                # (1, Nk)
        acc = None
        for h in range(heads):
            lo, hi = h * dk, (h + 1) * dk
            qh = q[b:b + 1, lo:hi]                               # (1, dk)
            s = jax.lax.dot_general(qh, kb[:, lo:hi], (((1,), (1,)), ((), ())),
                                    preferred_element_type=jnp.float32)   # (1, Nk)
            p = _softmax_lastdim(s * scale + bias_b)
            oh = jnp.dot(p, vb[:, lo:hi], preferred_element_type=jnp.float32)      # (1, dk)
            contrib = jnp.dot(oh, wo[lo:hi, :], preferred_element_type=jnp.float32)
            acc = contrib if acc is None else acc + contrib
        rows.append(acc)                                         # (1, D)
    return jnp.concatenate(rows, axis=0) + bo                    # (B, D)


def _additive_attention(encp_ref, enc_ref, q, bias, w_row, b_sc, batch):
    """Additive (Bahdanau) attention; scores kept as lane-dense (1, N) rows."""
    rows = []
    for b in range(batch):
        e = jnp.tanh(encp_ref[b] + q[b:b + 1, :])                # (N, D)
        s = jax.lax.dot_general(w_row, e, (((1,), (1,)), ((), ())),
                                preferred_element_type=jnp.float32)       # (1, N)
        alpha = _softmax_lastdim(s + b_sc + bias[b:b + 1, :])
        rows.append(jnp.dot(alpha, enc_ref[b], preferred_element_type=jnp.float32))  # (1, D)
    return jnp.concatenate(rows, axis=0)                         # (B, D)


# ------------------------- kernel 1: loop-invariant precompute -----------------------
def _precompute_kernel(enc_mean_ref, enc_flat_ref, sg_flat_ref,
                       ih_w_ref, ih_b_ref, ic_w_ref, ic_b_ref,
                       we_ref, be_ref,
                       mwk_ref, mbk_ref, mwv_ref, mbv_ref,
                       dwk_ref, dbk_ref, dwv_ref, dbv_ref,
                       h0_ref, c0_ref, encp_ref,
                       enc_k_ref, enc_v_ref, sg_k_ref, sg_v_ref):
    em = enc_mean_ref[...]
    h0_ref[...] = jnp.maximum(
        jnp.dot(em, ih_w_ref[...], preferred_element_type=jnp.float32) + ih_b_ref[...], 0.0)
    c0_ref[...] = jnp.maximum(
        jnp.dot(em, ic_w_ref[...], preferred_element_type=jnp.float32) + ic_b_ref[...], 0.0)
    ef = enc_flat_ref[...]
    encp_ref[...] = jnp.dot(ef, we_ref[...], preferred_element_type=jnp.float32) + be_ref[...]
    enc_k_ref[...] = jnp.dot(ef, mwk_ref[...], preferred_element_type=jnp.float32) + mbk_ref[...]
    enc_v_ref[...] = jnp.dot(ef, mwv_ref[...], preferred_element_type=jnp.float32) + mbv_ref[...]
    sf = sg_flat_ref[...]
    sg_k_ref[...] = jnp.dot(sf, dwk_ref[...], preferred_element_type=jnp.float32) + dbk_ref[...]
    sg_v_ref[...] = jnp.dot(sf, dwv_ref[...], preferred_element_type=jnp.float32) + dbv_ref[...]


def run_precompute(params, enc_mean, enc_flat, sg_flat):
    b_, d = enc_mean.shape
    n_flat = enc_flat.shape[0]
    s_flat = sg_flat.shape[0]
    lp = params["layers"][0]
    att, mha, dec = lp["att"], lp["mha"], params["dec_mha"]
    inputs = [
        enc_mean, enc_flat, sg_flat,
        params["init_h_w"], params["init_h_b"].reshape(1, -1),
        params["init_c_w"], params["init_c_b"].reshape(1, -1),
        att["w_e"], att["b_e"].reshape(1, -1),
        mha["wk"], mha["bk"].reshape(1, -1), mha["wv"], mha["bv"].reshape(1, -1),
        dec["wk"], dec["bk"].reshape(1, -1), dec["wv"], dec["bv"].reshape(1, -1),
    ]
    out_shape = (
        jax.ShapeDtypeStruct((b_, d), jnp.float32),        # h0
        jax.ShapeDtypeStruct((b_, d), jnp.float32),        # c0
        jax.ShapeDtypeStruct((n_flat, d), jnp.float32),    # encp_flat
        jax.ShapeDtypeStruct((n_flat, HDK), jnp.float32),  # enc_k_flat
        jax.ShapeDtypeStruct((n_flat, HDK), jnp.float32),  # enc_v_flat
        jax.ShapeDtypeStruct((s_flat, HDK), jnp.float32),  # sg_k_flat
        jax.ShapeDtypeStruct((s_flat, HDK), jnp.float32),  # sg_v_flat
    )
    return pl.pallas_call(
        _precompute_kernel,
        out_shape=out_shape,
        grid=(1,),
        in_specs=[_const_spec(x) for x in inputs],
        out_specs=tuple(pl.BlockSpec(s.shape, lambda *_: (0, 0)) for s in out_shape),
    )(*inputs)


# --------------------- kernel 2: fused recurrent decode (grid over time) --------------
def _decode_step_kernel(
        cap_ref,
        enc_mean_ref, enc_ref, encp_ref,
        enc_k_ref, enc_v_ref, sg_k_ref, sg_v_ref,
        bias_enc_ref, bias_sg_ref, bias_add_ref,
        h0_ref, c0_ref,
        dwq_ref, dbq_ref, dwo_ref, dbo_ref,
        l1_wih_ref, l1_whh_ref, l1_b_ref,
        l2_wih_ref, l2_whh_ref, l2_b_ref,
        p_ref, pt_ref,
        awh_ref, abh_ref, awsc_ref, absc_ref,
        mwq_ref, mbq_ref, mwo_ref, mbo_ref,
        lin_w_ref, lin_b_ref, lin1_w_ref, lin1_b_ref,
        lin2_w_ref, lin2_b_ref, lin3_w_ref, lin3_b_ref,
        out_h2_ref, out_h3_ref,
        h1_s, h2_s, h3_s, c1_s, c2_s,
        *, batch, heads, dk):

    @pl.when(pl.program_id(0) == 0)
    def _init():
        h0 = h0_ref[...]
        c0 = c0_ref[...]
        h1_s[...] = h0
        h2_s[...] = h0
        h3_s[...] = h0
        c1_s[...] = c0
        c2_s[...] = c0

    cap = cap_ref[0]                                               # (B, D)

    # decoder-level MeshedMemory MHA over sg, residual, layer norm
    q_dec = jnp.dot(cap, dwq_ref[...], preferred_element_type=jnp.float32) + dbq_ref[...]
    att_dec = _mha_nq1(q_dec, sg_k_ref, sg_v_ref, bias_sg_ref[...],
                       dwo_ref[...], dbo_ref[...], batch, heads, dk)
    next_word = _layer_norm_lastdim(att_dec + cap)

    # ---------------- ParallelDecoderLayer ----------------
    h1_prev = h1_s[...]
    h2_prev = h2_s[...]
    h3_prev = h3_s[...]
    c1_prev = c1_s[...]
    c2_prev = c2_s[...]

    enc_hid = (enc_mean_ref[...] + h2_prev + h3_prev) / 3.0
    h1, c1 = _lstm_cell_cat2(enc_hid, next_word, h1_prev, c1_prev,
                             l1_wih_ref[...], l1_whh_ref[...], l1_b_ref[...])

    # param mixing: relu(softmax(h1 @ P) @ P^T) + h1    (F.dropout treated as identity)
    s = _softmax_lastdim(jnp.dot(h1, p_ref[...], preferred_element_type=jnp.float32))
    h1_new = jnp.maximum(jnp.dot(s, pt_ref[...], preferred_element_type=jnp.float32), 0.0) + h1

    # additive attention over enc_output (encp precomputed, scores lane-dense)
    q_att = jnp.dot(h1_new, awh_ref[...], preferred_element_type=jnp.float32) + abh_ref[...]
    v = _additive_attention(encp_ref, enc_ref, q_att, bias_add_ref[...],
                            awsc_ref[...], absc_ref[...], batch)

    h2, c2 = _lstm_cell_cat2(h1_new, v, h2_prev, c2_prev,
                             l2_wih_ref[...], l2_whh_ref[...], l2_b_ref[...])

    # layer-level MeshedMemory MHA over enc_output, queried by h1_new, + residual
    q_m = jnp.dot(h1_new, mwq_ref[...], preferred_element_type=jnp.float32) + mbq_ref[...]
    fv = _mha_nq1(q_m, enc_k_ref, enc_v_ref, bias_enc_ref[...],
                  mwo_ref[...], mbo_ref[...], batch, heads, dk) + h1_new

    # gates on fvc = concat([fv, v], -1), computed with row-split weights (identical math)
    d = h1.shape[1]
    lin = jnp.maximum(
        jnp.dot(fv, lin_w_ref[0:d, :], preferred_element_type=jnp.float32)
        + jnp.dot(v, lin_w_ref[d:2 * d, :], preferred_element_type=jnp.float32)
        + lin_b_ref[...], 0.0)
    lin1 = jnp.maximum(
        jnp.dot(fv, lin1_w_ref[0:d, :], preferred_element_type=jnp.float32)
        + jnp.dot(v, lin1_w_ref[d:2 * d, :], preferred_element_type=jnp.float32)
        + lin1_b_ref[...], 0.0)
    lin2 = jnp.maximum(
        jnp.dot(q_att, lin2_w_ref[...], preferred_element_type=jnp.float32) + lin2_b_ref[...], 0.0)
    lin3 = jnp.maximum(
        jnp.dot(q_att, lin3_w_ref[...], preferred_element_type=jnp.float32) + lin3_b_ref[...], 0.0)
    h3 = jax.nn.sigmoid(lin1 + lin3) * (lin + lin2)

    # carry recurrent state in VMEM scratch; write per-step outputs (recombined outside)
    h1_s[...] = h1
    h2_s[...] = h2
    h3_s[...] = h3
    c1_s[...] = c1
    c2_s[...] = c2
    out_h2_ref[0] = h2
    out_h3_ref[0] = h3


def run_decoder_steps(params, cap_seq, enc_mean, enc_output, encp,
                      enc_k, enc_v, sg_k, sg_v,
                      bias_enc, bias_sg, bias_add, h0, c0):
    t_steps, b_, d = cap_seq.shape
    lp = params["layers"][0]
    dec = params["dec_mha"]
    att, mha = lp["att"], lp["mha"]

    inputs = [
        cap_seq,                                                    # per-step block
        enc_mean, enc_output, encp,
        enc_k, enc_v, sg_k, sg_v,
        bias_enc, bias_sg, bias_add, h0, c0,
        dec["wq"], dec["bq"].reshape(1, -1), dec["wo"], dec["bo"].reshape(1, -1),
        lp["lstm1"]["w_ih_t"], lp["lstm1"]["w_hh_t"],
        (lp["lstm1"]["b_ih"] + lp["lstm1"]["b_hh"]).reshape(1, -1),
        lp["lstm2"]["w_ih_t"], lp["lstm2"]["w_hh_t"],
        (lp["lstm2"]["b_ih"] + lp["lstm2"]["b_hh"]).reshape(1, -1),
        lp["param"], lp["param"].T,
        att["w_h"], att["b_h"].reshape(1, -1),
        att["w_score"], att["b_score"],
        mha["wq"], mha["bq"].reshape(1, -1), mha["wo"], mha["bo"].reshape(1, -1),
        lp["lin_w"], lp["lin_b"].reshape(1, -1),
        lp["lin1_w"], lp["lin1_b"].reshape(1, -1),
        lp["lin2_w"], lp["lin2_b"].reshape(1, -1),
        lp["lin3_w"], lp["lin3_b"].reshape(1, -1),
    ]
    in_specs = [pl.BlockSpec((1, b_, d), lambda i: (i, 0, 0))]
    in_specs += [_const_spec(x) for x in inputs[1:]]

    out_shape = (jax.ShapeDtypeStruct((t_steps, b_, d), jnp.float32),
                 jax.ShapeDtypeStruct((t_steps, b_, d), jnp.float32))
    out_specs = (pl.BlockSpec((1, b_, d), lambda i: (i, 0, 0)),
                 pl.BlockSpec((1, b_, d), lambda i: (i, 0, 0)))

    return pl.pallas_call(
        functools.partial(_decode_step_kernel, batch=b_, heads=NUM_HEADS, dk=D_K),
        out_shape=out_shape,
        grid=(t_steps,),
        in_specs=in_specs,
        out_specs=out_specs,
        scratch_shapes=[pltpu.VMEM((b_, d), jnp.float32) for _ in range(5)],
        compiler_params=pltpu.CompilerParams(dimension_semantics=("arbitrary",)),
    )(*inputs)


# ------------------------------ kernel 3: vocab head ---------------------------------
def _vocab_kernel(x_ref, w_ref, logits_ref, logp_ref):
    y = jnp.maximum(jnp.dot(x_ref[...], w_ref[...], preferred_element_type=jnp.float32), 0.0)
    logits_ref[...] = y
    m = jnp.max(y, axis=-1, keepdims=True)
    e = jnp.exp(y - m)
    logp_ref[...] = (y - m) - jnp.log(jnp.sum(e, axis=-1, keepdims=True))


def run_vocab_head(x2d, w):
    m, k = x2d.shape
    n = w.shape[1]
    return pl.pallas_call(
        _vocab_kernel,
        out_shape=(jax.ShapeDtypeStruct((m, n), jnp.float32),
                   jax.ShapeDtypeStruct((m, n), jnp.float32)),
        grid=(1,),
        in_specs=[_const_spec(x2d), _const_spec(w)],
        out_specs=(pl.BlockSpec((m, n), lambda *_: (0, 0)),
                   pl.BlockSpec((m, n), lambda *_: (0, 0))),
    )(x2d, w)


# -------------------------------- ParallelDecoder forward -----------------------------
def parallel_decoder_forward(params, enc_mean, enc_output, caption2i,
                             caption2vector, sg_mask, sg, _sg_mask):
    del caption2i  # not used by the reference forward
    b_, n_enc, d = enc_output.shape
    n_sg = sg.shape[1]
    t_, v_ = MAX_SEQ_LEN, VOCAB_SIZE
    lp = params["layers"][0]

    # one fused pallas_call for all loop-invariant projections
    (h0, c0, encp_flat, enc_k_flat, enc_v_flat,
     sg_k_flat, sg_v_flat) = run_precompute(
        params, enc_mean, enc_output.reshape(b_ * n_enc, d), sg.reshape(b_ * n_sg, d))

    def with_memory(k_flat, v_flat, n_rows, mem_k, mem_v):
        k3 = k_flat.reshape(b_, n_rows, HDK)
        v3 = v_flat.reshape(b_, n_rows, HDK)
        mk = jnp.broadcast_to((math.sqrt(D_K) * mem_k)[None], (b_, N_MEM, HDK))
        mv = jnp.broadcast_to((math.sqrt(N_MEM) * mem_v)[None], (b_, N_MEM, HDK))
        return (jnp.concatenate([k3, mk], axis=1), jnp.concatenate([v3, mv], axis=1))

    enc_k, enc_v = with_memory(enc_k_flat, enc_v_flat, n_enc, lp["mha"]["m_k"], lp["mha"]["m_v"])
    sg_k, sg_v = with_memory(sg_k_flat, sg_v_flat, n_sg,
                             params["dec_mha"]["m_k"], params["dec_mha"]["m_v"])
    encp = encp_flat.reshape(b_, n_enc, d)

    # additive mask biases (memory slots never masked) — built once
    bias_enc = jnp.concatenate([(sg_mask - 1.0) * 1e9,
                                jnp.zeros((b_, N_MEM), jnp.float32)], axis=1)
    bias_sg = jnp.concatenate([(_sg_mask - 1.0) * 1e9,
                               jnp.zeros((b_, N_MEM), jnp.float32)], axis=1)
    bias_add = (sg_mask - 1.0) * 1e9

    cap_seq = jnp.transpose(caption2vector[:, :t_ - 1, :], (1, 0, 2))   # (T-1, B, D)

    # single fused recurrent decode over the T-1 timesteps
    steps_h2, steps_h3 = run_decoder_steps(params, cap_seq, enc_mean, enc_output, encp,
                                           enc_k, enc_v, sg_k, sg_v,
                                           bias_enc, bias_sg, bias_add, h0, c0)

    # per-step outputs: next_word = concat([h2, h3], -1)
    steps = jnp.concatenate([jnp.transpose(steps_h2, (1, 0, 2)),
                             jnp.transpose(steps_h3, (1, 0, 2))], axis=-1)   # (B, T-1, 2D)
    bos = jnp.full((b_, 1, 2 * d), TOKEN_BOS, jnp.float32)
    out_seq = jnp.concatenate([bos, steps], axis=1)                          # (B, T, 2D) == (B,T,V)

    logits, logp = run_vocab_head(out_seq.reshape(b_ * t_, 2 * d), params["out_w"])
    logits = logits.reshape(b_, t_, v_)
    logp = logp.reshape(b_, t_, v_)
    # reference returns (log_softmax(output, -1), argmax(output, dim=1))
    return logp, jnp.argmax(logits, axis=1)


# --------------------------- deterministic parameter init ----------------------------
def _glorot(key, shape):
    fan_in, fan_out = shape[0], shape[-1]
    lim = math.sqrt(6.0 / (fan_in + fan_out))
    return jax.random.uniform(key, shape, jnp.float32, -lim, lim)


def init_mha_params(key, d, h, dk, nm):
    ks = jax.random.split(key, 6)
    return dict(
        wq=_glorot(ks[0], (d, h * dk)), bq=jnp.zeros((h * dk,), jnp.float32),
        wk=_glorot(ks[1], (d, h * dk)), bk=jnp.zeros((h * dk,), jnp.float32),
        wv=_glorot(ks[2], (d, h * dk)), bv=jnp.zeros((h * dk,), jnp.float32),
        wo=_glorot(ks[3], (h * dk, d)), bo=jnp.zeros((d,), jnp.float32),
        m_k=0.05 * jax.random.normal(ks[4], (nm, h * dk), jnp.float32),
        m_v=0.05 * jax.random.normal(ks[5], (nm, h * dk), jnp.float32),
    )


def init_lstm_params(key, in_dim, d):
    ks = jax.random.split(key, 2)
    s = 1.0 / math.sqrt(d)
    return dict(
        w_ih_t=s * jax.random.normal(ks[0], (in_dim, 4 * d), jnp.float32),
        w_hh_t=s * jax.random.normal(ks[1], (d, 4 * d), jnp.float32),
        b_ih=jnp.zeros((4 * d,), jnp.float32),
        b_hh=jnp.zeros((4 * d,), jnp.float32),
    )


def init_layer_params(key, d):
    ks = jax.random.split(key, 11)
    return dict(
        lstm1=init_lstm_params(ks[0], 2 * d, d),
        lstm2=init_lstm_params(ks[1], 2 * d, d),
        att=dict(
            w_e=_glorot(ks[2], (d, d)), b_e=jnp.zeros((d,), jnp.float32),
            w_h=_glorot(ks[3], (d, d)), b_h=jnp.zeros((d,), jnp.float32),
            w_score=_glorot(ks[4], (1, d)), b_score=jnp.zeros((1, 1), jnp.float32),
        ),
        mha=init_mha_params(ks[5], d, NUM_HEADS, D_K, N_MEM),
        lin_w=_glorot(ks[6], (2 * d, d)), lin_b=jnp.zeros((d,), jnp.float32),
        lin1_w=_glorot(ks[7], (2 * d, d)), lin1_b=jnp.zeros((d,), jnp.float32),
        lin2_w=_glorot(ks[8], (d, d)), lin2_b=jnp.zeros((d,), jnp.float32),
        lin3_w=_glorot(ks[9], (d, d)), lin3_b=jnp.zeros((d,), jnp.float32),
        param=_glorot(ks[10], (d, PARAM_COLS)),
    )


def init_decoder_params(key):
    d = D_MODEL
    ks = jax.random.split(key, 5)
    return dict(
        layers=[init_layer_params(ks[0], d)],
        out_w=_glorot(ks[1], (2 * d, VOCAB_SIZE)),
        init_h_w=_glorot(ks[2], (d, d)), init_h_b=jnp.zeros((d,), jnp.float32),
        init_c_w=_glorot(ks[3], (d, d)), init_c_b=jnp.zeros((d,), jnp.float32),
        dec_mha=init_mha_params(ks[4], d, NUM_HEADS, D_K, N_MEM),
    )


# TODO(synk): beam-search `sample()` (data-dependent Python control flow over BeamCandidates)
#             is host-side logic and is not implemented as a kernel.

# ------------------------------------- main ------------------------------------------
if __name__ == "__main__":
    assert VOCAB_SIZE == 2 * D_MODEL  # required by the reference torch.cat in forward()

    key = jax.random.PRNGKey(0)
    k_par, k_enc, k_cap, k_sg, k_ci = jax.random.split(key, 5)
    B, N_ENC, N_SG = 2, 8, 8

    params = init_decoder_params(k_par)
    enc_output = jax.random.normal(k_enc, (B, N_ENC, D_MODEL), jnp.float32)
    enc_output_mean = jnp.mean(enc_output, axis=1)
    caption2vector = jax.random.normal(k_cap, (B, MAX_SEQ_LEN, D_MODEL), jnp.float32)
    caption2i = jax.random.randint(k_ci, (B, MAX_SEQ_LEN), 0, VOCAB_SIZE)
    sg = jax.random.normal(k_sg, (B, N_SG, D_MODEL), jnp.float32)
    sg_mask = jnp.ones((B, N_ENC), jnp.float32).at[1, -2:].set(0.0)
    _sg_mask = jnp.ones((B, N_SG), jnp.float32).at[1, -3:].set(0.0)

    fwd = jax.jit(parallel_decoder_forward)
    logp, argmax_ids = fwd(params, enc_output_mean, enc_output, caption2i,
                           caption2vector, sg_mask, sg, _sg_mask)
    jax.block_until_ready((logp, argmax_ids))

    assert logp.shape == (B, MAX_SEQ_LEN, VOCAB_SIZE)
    assert argmax_ids.shape == (B, VOCAB_SIZE)
    assert bool(jnp.all(jnp.isfinite(logp)))
    print("KERNEL_OK")
</pallas_src>

<mosaic_0001>
module attributes {stable_mosaic.version = 11 : i64} {
  func.func @_precompute_kernel(%arg0: i32, %arg1: memref<2x32xf32, #tpu.memory_space<vmem>>, %arg2: memref<16x32xf32, #tpu.memory_space<vmem>>, %arg3: memref<16x32xf32, #tpu.memory_space<vmem>>, %arg4: memref<32x32xf32, #tpu.memory_space<vmem>>, %arg5: memref<1x32xf32, #tpu.memory_space<vmem>>, %arg6: memref<32x32xf32, #tpu.memory_space<vmem>>, %arg7: memref<1x32xf32, #tpu.memory_space<vmem>>, %arg8: memref<32x32xf32, #tpu.memory_space<vmem>>, %arg9: memref<1x32xf32, #tpu.memory_space<vmem>>, %arg10: memref<32x32xf32, #tpu.memory_space<vmem>>, %arg11: memref<1x32xf32, #tpu.memory_space<vmem>>, %arg12: memref<32x32xf32, #tpu.memory_space<vmem>>, %arg13: memref<1x32xf32, #tpu.memory_space<vmem>>, %arg14: memref<32x32xf32, #tpu.memory_space<vmem>>, %arg15: memref<1x32xf32, #tpu.memory_space<vmem>>, %arg16: memref<32x32xf32, #tpu.memory_space<vmem>>, %arg17: memref<1x32xf32, #tpu.memory_space<vmem>>, %arg18: memref<2x32xf32, #tpu.memory_space<vmem>>, %arg19: memref<2x32xf32, #tpu.memory_space<vmem>>, %arg20: memref<16x32xf32, #tpu.memory_space<vmem>>, %arg21: memref<16x32xf32, #tpu.memory_space<vmem>>, %arg22: memref<16x32xf32, #tpu.memory_space<vmem>>, %arg23: memref<16x32xf32, #tpu.memory_space<vmem>>, %arg24: memref<16x32xf32, #tpu.memory_space<vmem>>) attributes {dimension_semantics = [#tpu.dimension_semantics<arbitrary>], iteration_bounds = array<i64: 1>, scalar_prefetch = 0 : i64, scratch_operands = 0 : i64, tpu.core_type = #tpu.core_type<tc>, window_params = [{pipeline_mode = #tpu.pipeline_mode<synchronous>, transform_indices = @transform_0, window_bounds = array<i64: 2, 32>}, {pipeline_mode = #tpu.pipeline_mode<synchronous>, transform_indices = @transform_1, window_bounds = array<i64: 16, 32>}, {pipeline_mode = #tpu.pipeline_mode<synchronous>, transform_indices = @transform_2, window_bounds = array<i64: 16, 32>}, {pipeline_mode = #tpu.pipeline_mode<synchronous>, transform_indices = @transform_3, window_bounds = array<i64: 32, 32>}, {pipeline_mode = #tpu.pipeline_mode<synchronous>, transform_indices = @transform_4, window_bounds = array<i64: 1, 32>}, {pipeline_mode = #tpu.pipeline_mode<synchronous>, transform_indices = @transform_5, window_bounds = array<i64: 32, 32>}, {pipeline_mode = #tpu.pipeline_mode<synchronous>, transform_indices = @transform_6, window_bounds = array<i64: 1, 32>}, {pipeline_mode = #tpu.pipeline_mode<synchronous>, transform_indices = @transform_7, window_bounds = array<i64: 32, 32>}, {pipeline_mode = #tpu.pipeline_mode<synchronous>, transform_indices = @transform_8, window_bounds = array<i64: 1, 32>}, {pipeline_mode = #tpu.pipeline_mode<synchronous>, transform_indices = @transform_9, window_bounds = array<i64: 32, 32>}, {pipeline_mode = #tpu.pipeline_mode<synchronous>, transform_indices = @transform_10, window_bounds = array<i64: 1, 32>}, {pipeline_mode = #tpu.pipeline_mode<synchronous>, transform_indices = @transform_11, window_bounds = array<i64: 32, 32>}, {pipeline_mode = #tpu.pipeline_mode<synchronous>, transform_indices = @transform_12, window_bounds = array<i64: 1, 32>}, {pipeline_mode = #tpu.pipeline_mode<synchronous>, transform_indices = @transform_13, window_bounds = array<i64: 32, 32>}, {pipeline_mode = #tpu.pipeline_mode<synchronous>, transform_indices = @transform_14, window_bounds = array<i64: 1, 32>}, {pipeline_mode = #tpu.pipeline_mode<synchronous>, transform_indices = @transform_15, window_bounds = array<i64: 32, 32>}, {pipeline_mode = #tpu.pipeline_mode<synchronous>, transform_indices = @transform_16, window_bounds = array<i64: 1, 32>}, {pipeline_mode = #tpu.pipeline_mode<synchronous>, transform_indices = @transform_17, window_bounds = array<i64: 2, 32>}, {pipeline_mode = #tpu.pipeline_mode<synchronous>, transform_indices = @transform_18, window_bounds = array<i64: 2, 32>}, {pipeline_mode = #tpu.pipeline_mode<synchronous>, transform_indices = @transform_19, window_bounds = array<i64: 16, 32>}, {pipeline_mode = #tpu.pipeline_mode<synchronous>, transform_indices = @transform_20, window_bounds = array<i64: 16, 32>}, {pipeline_mode = #tpu.pipeline_mode<synchronous>, transform_indices = @transform_21, window_bounds = array<i64: 16, 32>}, {pipeline_mode = #tpu.pipeline_mode<synchronous>, transform_indices = @transform_22, window_bounds = array<i64: 16, 32>}, {pipeline_mode = #tpu.pipeline_mode<synchronous>, transform_indices = @transform_23, window_bounds = array<i64: 16, 32>}]} {
    %c0 = arith.constant 0 : index
    %c0_0 = arith.constant 0 : index
    %0 = vector.load %arg1[%c0, %c0_0] : memref<2x32xf32, #tpu.memory_space<vmem>>, vector<2x32xf32>
    %c0_1 = arith.constant 0 : index
    %c0_2 = arith.constant 0 : index
    %1 = vector.load %arg4[%c0_1, %c0_2] : memref<32x32xf32, #tpu.memory_space<vmem>>, vector<32x32xf32>
    %cst = arith.constant dense<0.000000e+00> : vector<2x32xf32>
    %2 = tpu.matmul %0, %1, %cst {dimension_numbers = #tpu.dot_dimension_numbers<[1], [0], [0], [1], [0, 0, 1, 1], [], []>} : vector<2x32xf32>, vector<32x32xf32>, vector<2x32xf32> -> vector<2x32xf32>
    %c0_3 = arith.constant 0 : index
    %c0_4 = arith.constant 0 : index
    %3 = vector.load %arg5[%c0_3, %c0_4] : memref<1x32xf32, #tpu.memory_space<vmem>>, vector<1x32xf32>
    %4 = vector.broadcast %3 : vector<1x32xf32> to vector<2x32xf32>
    %5 = arith.addf %2, %4 : vector<2x32xf32>
    %cst_5 = arith.constant 0.000000e+00 : f32
    %6 = vector.broadcast %cst_5 : f32 to vector<2x32xf32>
    %7 = arith.maximumf %5, %6 : vector<2x32xf32>
    %c0_6 = arith.constant 0 : index
    %c0_7 = arith.constant 0 : index
    %8 = vector.load %arg18[%c0_6, %c0_7] : memref<2x32xf32, #tpu.memory_space<vmem>>, vector<2x32xf32>
    tpu.vector_store %arg18[%c0_6, %c0_7], %7 {strides = array<i32>} : memref<2x32xf32, #tpu.memory_space<vmem>>, vector<2x32xf32>,
    %c0_8 = arith.constant 0 : index
    %c0_9 = arith.constant 0 : index
    %9 = vector.load %arg6[%c0_8, %c0_9] : memref<32x32xf32, #tpu.memory_space<vmem>>, vector<32x32xf32>
    %cst_10 = arith.constant dense<0.000000e+00> : vector<2x32xf32>
    %10 = tpu.matmul %0, %9, %cst_10 {dimension_numbers = #tpu.dot_dimension_numbers<[1], [0], [0], [1], [0, 0, 1, 1], [], []>} : vector<2x32xf32>, vector<32x32xf32>, vector<2x32xf32> -> vector<2x32xf32>
    %c0_11 = arith.constant 0 : index
    %c0_12 = arith.constant 0 : index
    %11 = vector.load %arg7[%c0_11, %c0_12] : memref<1x32xf32, #tpu.memory_space<vmem>>, vector<1x32xf32>
    %12 = vector.broadcast %11 : vector<1x32xf32> to vector<2x32xf32>
    %13 = arith.addf %10, %12 : vector<2x32xf32>
    %cst_13 = arith.constant 0.000000e+00 : f32
    %14 = vector.broadcast %cst_13 : f32 to vector<2x32xf32>
    %15 = arith.maximumf %13, %14 : vector<2x32xf32>
    %c0_14 = arith.constant 0 : index
    %c0_15 = arith.constant 0 : index
    %16 = vector.load %arg19[%c0_14, %c0_15] : memref<2x32xf32, #tpu.memory_space<vmem>>, vector<2x32xf32>
    tpu.vector_store %arg19[%c0_14, %c0_15], %15 {strides = array<i32>} : memref<2x32xf32, #tpu.memory_space<vmem>>, vector<2x32xf32>,
    %c0_16 = arith.constant 0 : index
    %c0_17 = arith.constant 0 : index
    %17 = vector.load %arg2[%c0_16, %c0_17] : memref<16x32xf32, #tpu.memory_space<vmem>>, vector<16x32xf32>
    %c0_18 = arith.constant 0 : index
    %c0_19 = arith.constant 0 : index
    %18 = vector.load %arg8[%c0_18, %c0_19] : memref<32x32xf32, #tpu.memory_space<vmem>>, vector<32x32xf32>
    %cst_20 = arith.constant dense<0.000000e+00> : vector<16x32xf32>
    %19 = tpu.matmul %17, %18, %cst_20 {dimension_numbers = #tpu.dot_dimension_numbers<[1], [0], [0], [1], [0, 0, 1, 1], [], []>} : vector<16x32xf32>, vector<32x32xf32>, vector<16x32xf32> -> vector<16x32xf32>
    %c0_21 = arith.constant 0 : index
    %c0_22 = arith.constant 0 : index
    %20 = vector.load %arg9[%c0_21, %c0_22] : memref<1x32xf32, #tpu.memory_space<vmem>>, vector<1x32xf32>
    %21 = vector.broadcast %20 : vector<1x32xf32> to vector<16x32xf32>
    %22 = arith.addf %19, %21 : vector<16x32xf32>
    %c0_23 = arith.constant 0 : index
    %c0_24 = arith.constant 0 : index
    %23 = vector.load %arg20[%c0_23, %c0_24] : memref<16x32xf32, #tpu.memory_space<vmem>>, vector<16x32xf32>
    tpu.vector_store %arg20[%c0_23, %c0_24], %22 {strides = array<i32>} : memref<16x32xf32, #tpu.memory_space<vmem>>, vector<16x32xf32>,
    %c0_25 = arith.constant 0 : index
    %c0_26 = arith.constant 0 : index
    %24 = vector.load %arg10[%c0_25, %c0_26] : memref<32x32xf32, #tpu.memory_space<vmem>>, vector<32x32xf32>
    %cst_27 = arith.constant dense<0.000000e+00> : vector<16x32xf32>
    %25 = tpu.matmul %17, %24, %cst_27 {dimension_numbers = #tpu.dot_dimension_numbers<[1], [0], [0], [1], [0, 0, 1, 1], [], []>} : vector<16x32xf32>, vector<32x32xf32>, vector<16x32xf32> -> vector<16x32xf32>
    %c0_28 = arith.constant 0 : index
    %c0_29 = arith.constant 0 : index
    %26 = vector.load %arg11[%c0_28, %c0_29] : memref<1x32xf32, #tpu.memory_space<vmem>>, vector<1x32xf32>
    %27 = vector.broadcast %26 : vector<1x32xf32> to vector<16x32xf32>
    %28 = arith.addf %25, %27 : vector<16x32xf32>
    %c0_30 = arith.constant 0 : index
    %c0_31 = arith.constant 0 : index
    %29 = vector.load %arg21[%c0_30, %c0_31] : memref<16x32xf32, #tpu.memory_space<vmem>>, vector<16x32xf32>
    tpu.vector_store %arg21[%c0_30, %c0_31], %28 {strides = array<i32>} : memref<16x32xf32, #tpu.memory_space<vmem>>, vector<16x32xf32>,
    %c0_32 = arith.constant 0 : index
    %c0_33 = arith.constant 0 : index
    %30 = vector.load %arg12[%c0_32, %c0_33] : memref<32x32xf32, #tpu.memory_space<vmem>>, vector<32x32xf32>
    %cst_34 = arith.constant dense<0.000000e+00> : vector<16x32xf32>
    %31 = tpu.matmul %17, %30, %cst_34 {dimension_numbers = #tpu.dot_dimension_numbers<[1], [0], [0], [1], [0, 0, 1, 1], [], []>} : vector<16x32xf32>, vector<32x32xf32>, vector<16x32xf32> -> vector<16x32xf32>
    %c0_35 = arith.constant 0 : index
    %c0_36 = arith.constant 0 : index
    %32 = vector.load %arg13[%c0_35, %c0_36] : memref<1x32xf32, #tpu.memory_space<vmem>>, vector<1x32xf32>
    %33 = vector.broadcast %32 : vector<1x32xf32> to vector<16x32xf32>
    %34 = arith.addf %31, %33 : vector<16x32xf32>
    %c0_37 = arith.constant 0 : index
    %c0_38 = arith.constant 0 : index
    %35 = vector.load %arg22[%c0_37, %c0_38] : memref<16x32xf32, #tpu.memory_space<vmem>>, vector<16x32xf32>
    tpu.vector_store %arg22[%c0_37, %c0_38], %34 {strides = array<i32>} : memref<16x32xf32, #tpu.memory_space<vmem>>, vector<16x32xf32>,
    %c0_39 = arith.constant 0 : index
    %c0_40 = arith.constant 0 : index
    %36 = vector.load %arg3[%c0_39, %c0_40] : memref<16x32xf32, #tpu.memory_space<vmem>>, vector<16x32xf32>
    %c0_41 = arith.constant 0 : index
    %c0_42 = arith.constant 0 : index
    %37 = vector.load %arg14[%c0_41, %c0_42] : memref<32x32xf32, #tpu.memory_space<vmem>>, vector<32x32xf32>
    %cst_43 = arith.constant dense<0.000000e+00> : vector<16x32xf32>
    %38 = tpu.matmul %36, %37, %cst_43 {dimension_numbers = #tpu.dot_dimension_numbers<[1], [0], [0], [1], [0, 0, 1, 1], [], []>} : vector<16x32xf32>, vector<32x32xf32>, vector<16x32xf32> -> vector<16x32xf32>
    %c0_44 = arith.constant 0 : index
    %c0_45 = arith.constant 0 : index
    %39 = vector.load %arg15[%c0_44, %c0_45] : memref<1x32xf32, #tpu.memory_space<vmem>>, vector<1x32xf32>
    %40 = vector.broadcast %39 : vector<1x32xf32> to vector<16x32xf32>
    %41 = arith.addf %38, %40 : vector<16x32xf32>
    %c0_46 = arith.constant 0 : index
    %c0_47 = arith.constant 0 : index
    %42 = vector.load %arg23[%c0_46, %c0_47] : memref<16x32xf32, #tpu.memory_space<vmem>>, vector<16x32xf32>
    tpu.vector_store %arg23[%c0_46, %c0_47], %41 {strides = array<i32>} : memref<16x32xf32, #tpu.memory_space<vmem>>, vector<16x32xf32>,
    %c0_48 = arith.constant 0 : index
    %c0_49 = arith.constant 0 : index
    %43 = vector.load %arg16[%c0_48, %c0_49] : memref<32x32xf32, #tpu.memory_space<vmem>>, vector<32x32xf32>
    %cst_50 = arith.constant dense<0.000000e+00> : vector<16x32xf32>
    %44 = tpu.matmul %36, %43, %cst_50 {dimension_numbers = #tpu.dot_dimension_numbers<[1], [0], [0], [1], [0, 0, 1, 1], [], []>} : vector<16x32xf32>, vector<32x32xf32>, vector<16x32xf32> -> vector<16x32xf32>
    %c0_51 = arith.constant 0 : index
    %c0_52 = arith.constant 0 : index
    %45 = vector.load %arg17[%c0_51, %c0_52] : memref<1x32xf32, #tpu.memory_space<vmem>>, vector<1x32xf32>
    %46 = vector.broadcast %45 : vector<1x32xf32> to vector<16x32xf32>
    %47 = arith.addf %44, %46 : vector<16x32xf32>
    %c0_53 = arith.constant 0 : index
    %c0_54 = arith.constant 0 : index
    %48 = vector.load %arg24[%c0_53, %c0_54] : memref<16x32xf32, #tpu.memory_space<vmem>>, vector<16x32xf32>
    tpu.vector_store %arg24[%c0_53, %c0_54], %47 {strides = array<i32>} : memref<16x32xf32, #tpu.memory_space<vmem>>, vector<16x32xf32>,
    return
  }
  func.func @transform_0(%arg0: i32) -> (i32, i32) {
    %c0_i32 = arith.constant 0 : i32
    %c0_i32_0 = arith.constant 0 : i32
    %c0_i32_1 = arith.constant 0 : i32
    return %c0_i32, %c0_i32_0 : i32, i32
  }
  func.func @transform_1(%arg0: i32) -> (i32, i32) {
    %c0_i32 = arith.constant 0 : i32
    %c0_i32_0 = arith.constant 0 : i32
    %c0_i32_1 = arith.constant 0 : i32
    return %c0_i32, %c0_i32_0 : i32, i32
  }
  func.func @transform_2(%arg0: i32) -> (i32, i32) {
    %c0_i32 = arith.constant 0 : i32
    %c0_i32_0 = arith.constant 0 : i32
    %c0_i32_1 = arith.constant 0 : i32
    return %c0_i32, %c0_i32_0 : i32, i32
  }
  func.func @transform_3(%arg0: i32) -> (i32, i32) {
    %c0_i32 = arith.constant 0 : i32
    %c0_i32_0 = arith.constant 0 : i32
    %c0_i32_1 = arith.constant 0 : i32
    return %c0_i32, %c0_i32_0 : i32, i32
  }
  func.func @transform_4(%arg0: i32) -> (i32, i32) {
    %c0_i32 = arith.constant 0 : i32
    %c0_i32_0 = arith.constant 0 : i32
    %c0_i32_1 = arith.constant 0 : i32
    return %c0_i32, %c0_i32_0 : i32, i32
  }
  func.func @transform_5(%arg0: i32) -> (i32, i32) {
    %c0_i32 = arith.constant 0 : i32
    %c0_i32_0 = arith.constant 0 : i32
    %c0_i32_1 = arith.constant 0 : i32
    return %c0_i32, %c0_i32_0 : i32, i32
  }
  func.func @transform_6(%arg0: i32) -> (i32, i32) {
    %c0_i32 = arith.constant 0 : i32
    %c0_i32_0 = arith.constant 0 : i32
    %c0_i32_1 = arith.constant 0 : i32
    return %c0_i32, %c0_i32_0 : i32, i32
  }
  func.func @transform_7(%arg0: i32) -> (i32, i32) {
    %c0_i32 = arith.constant 0 : i32
    %c0_i32_0 = arith.constant 0 : i32
    %c0_i32_1 = arith.constant 0 : i32
    return %c0_i32, %c0_i32_0 : i32, i32
  }
  func.func @transform_8(%arg0: i32) -> (i32, i32) {
    %c0_i32 = arith.constant 0 : i32
    %c0_i32_0 = arith.constant 0 : i32
    %c0_i32_1 = arith.constant 0 : i32
    return %c0_i32, %c0_i32_0 : i32, i32
  }
  func.func @transform_9(%arg0: i32) -> (i32, i32) {
    %c0_i32 = arith.constant 0 : i32
    %c0_i32_0 = arith.constant 0 : i32
    %c0_i32_1 = arith.constant 0 : i32
    return %c0_i32, %c0_i32_0 : i32, i32
  }
  func.func @transform_10(%arg0: i32) -> (i32, i32) {
    %c0_i32 = arith.constant 0 : i32
    %c0_i32_0 = arith.constant 0 : i32
    %c0_i32_1 = arith.constant 0 : i32
    return %c0_i32, %c0_i32_0 : i32, i32
  }
  func.func @transform_11(%arg0: i32) -> (i32, i32) {
    %c0_i32 = arith.constant 0 : i32
    %c0_i32_0 = arith.constant 0 : i32
    %c0_i32_1 = arith.constant 0 : i32
    return %c0_i32, %c0_i32_0 : i32, i32
  }
  func.func @transform_12(%arg0: i32) -> (i32, i32) {
    %c0_i32 = arith.constant 0 : i32
    %c0_i32_0 = arith.constant 0 : i32
    %c0_i32_1 = arith.constant 0 : i32
    return %c0_i32, %c0_i32_0 : i32, i32
  }
  func.func @transform_13(%arg0: i32) -> (i32, i32) {
    %c0_i32 = arith.constant 0 : i32
    %c0_i32_0 = arith.constant 0 : i32
    %c0_i32_1 = arith.constant 0 : i32
    return %c0_i32, %c0_i32_0 : i32, i32
  }
  func.func @transform_14(%arg0: i32) -> (i32, i32) {
    %c0_i32 = arith.constant 0 : i32
    %c0_i32_0 = arith.constant 0 : i32
    %c0_i32_1 = arith.constant 0 : i32
    return %c0_i32, %c0_i32_0 : i32, i32
  }
  func.func @transform_15(%arg0: i32) -> (i32, i32) {
    %c0_i32 = arith.constant 0 : i32
    %c0_i32_0 = arith.constant 0 : i32
    %c0_i32_1 = arith.constant 0 : i32
    return %c0_i32, %c0_i32_0 : i32, i32
  }
  func.func @transform_16(%arg0: i32) -> (i32, i32) {
    %c0_i32 = arith.constant 0 : i32
    %c0_i32_0 = arith.constant 0 : i32
    %c0_i32_1 = arith.constant 0 : i32
    return %c0_i32, %c0_i32_0 : i32, i32
  }
  func.func @transform_17(%arg0: i32) -> (i32, i32) {
    %c0_i32 = arith.constant 0 : i32
    %c0_i32_0 = arith.constant 0 : i32
    %c0_i32_1 = arith.constant 0 : i32
    return %c0_i32, %c0_i32_0 : i32, i32
  }
  func.func @transform_18(%arg0: i32) -> (i32, i32) {
    %c0_i32 = arith.constant 0 : i32
    %c0_i32_0 = arith.constant 0 : i32
    %c0_i32_1 = arith.constant 0 : i32
    return %c0_i32, %c0_i32_0 : i32, i32
  }
  func.func @transform_19(%arg0: i32) -> (i32, i32) {
    %c0_i32 = arith.constant 0 : i32
    %c0_i32_0 = arith.constant 0 : i32
    %c0_i32_1 = arith.constant 0 : i32
    return %c0_i32, %c0_i32_0 : i32, i32
  }
  func.func @transform_20(%arg0: i32) -> (i32, i32) {
    %c0_i32 = arith.constant 0 : i32
    %c0_i32_0 = arith.constant 0 : i32
    %c0_i32_1 = arith.constant 0 : i32
    return %c0_i32, %c0_i32_0 : i32, i32
  }
  func.func @transform_21(%arg0: i32) -> (i32, i32) {
    %c0_i32 = arith.constant 0 : i32
    %c0_i32_0 = arith.constant 0 : i32
    %c0_i32_1 = arith.constant 0 : i32
    return %c0_i32, %c0_i32_0 : i32, i32
  }
  func.func @transform_22(%arg0: i32) -> (i32, i32) {
    %c0_i32 = arith.constant 0 : i32
    %c0_i32_0 = arith.constant 0 : i32
    %c0_i32_1 = arith.constant 0 : i32
    return %c0_i32, %c0_i32_0 : i32, i32
  }
  func.func @transform_23(%arg0: i32) -> (i32, i32) {
    %c0_i32 = arith.constant 0 : i32
    %c0_i32_0 = arith.constant 0 : i32
    %c0_i32_1 = arith.constant 0 : i32
    return %c0_i32, %c0_i32_0 : i32, i32
  }
}

module attributes {stable_mosaic.version = 11 : i64} {
  func.func @_vocab_kernel(%arg0: i32, %arg1: memref<10x64xf32, #tpu.memory_space<vmem>>, %arg2: memref<64x64xf32, #tpu.memory_space<vmem>>, %arg3: memref<10x64xf32, #tpu.memory_space<vmem>>, %arg4: memref<10x64xf32, #tpu.memory_space<vmem>>) attributes {dimension_semantics = [#tpu.dimension_semantics<arbitrary>], iteration_bounds = array<i64: 1>, scalar_prefetch = 0 : i64, scratch_operands = 0 : i64, tpu.core_type = #tpu.core_type<tc>, window_params = [{pipeline_mode = #tpu.pipeline_mode<synchronous>, transform_indices = @transform_0, window_bounds = array<i64: 10, 64>}, {pipeline_mode = #tpu.pipeline_mode<synchronous>, transform_indices = @transform_1, window_bounds = array<i64: 64, 64>}, {pipeline_mode = #tpu.pipeline_mode<synchronous>, transform_indices = @transform_2, window_bounds = array<i64: 10, 64>}, {pipeline_mode = #tpu.pipeline_mode<synchronous>, transform_indices = @transform_3, window_bounds = array<i64: 10, 64>}]} {
    %c0 = arith.constant 0 : index
    %c0_0 = arith.constant 0 : index
    %0 = vector.load %arg1[%c0, %c0_0] : memref<10x64xf32, #tpu.memory_space<vmem>>, vector<10x64xf32>
    %c0_1 = arith.constant 0 : index
    %c0_2 = arith.constant 0 : index
    %1 = vector.load %arg2[%c0_1, %c0_2] : memref<64x64xf32, #tpu.memory_space<vmem>>, vector<64x64xf32>
    %cst = arith.constant dense<0.000000e+00> : vector<10x64xf32>
    %2 = tpu.matmul %0, %1, %cst {dimension_numbers = #tpu.dot_dimension_numbers<[1], [0], [0], [1], [0, 0, 1, 1], [], []>} : vector<10x64xf32>, vector<64x64xf32>, vector<10x64xf32> -> vector<10x64xf32>
    %cst_3 = arith.constant 0.000000e+00 : f32
    %3 = vector.broadcast %cst_3 : f32 to vector<10x64xf32>
    %4 = arith.maximumf %2, %3 : vector<10x64xf32>
    %c0_4 = arith.constant 0 : index
    %c0_5 = arith.constant 0 : index
    %5 = vector.load %arg3[%c0_4, %c0_5] : memref<10x64xf32, #tpu.memory_space<vmem>>, vector<10x64xf32>
    tpu.vector_store %arg3[%c0_4, %c0_5], %4 {strides = array<i32>} : memref<10x64xf32, #tpu.memory_space<vmem>>, vector<10x64xf32>,
    %cst_6 = arith.constant dense<0xFF800000> : vector<10xf32>
    %6 = vector.multi_reduction <maximumf>, %4, %cst_6 [1] : vector<10x64xf32> to vector<10xf32>
    %7 = vector.shape_cast %6 : vector<10xf32> to vector<10x1xf32>
    %8 = vector.broadcast %7 : vector<10x1xf32> to vector<10x64xf32>
    %9 = arith.subf %4, %8 : vector<10x64xf32>
    %10 = math.exp %9 : vector<10x64xf32>
    %11 = vector.broadcast %7 : vector<10x1xf32> to vector<10x64xf32>
    %12 = arith.subf %4, %11 : vector<10x64xf32>
    %cst_7 = arith.constant dense<0.000000e+00> : vector<10xf32>
    %13 = vector.multi_reduction <add>, %10, %cst_7 [1] : vector<10x64xf32> to vector<10xf32>
    %14 = vector.shape_cast %13 : vector<10xf32> to vector<10x1xf32>
    %15 = math.log %14 : vector<10x1xf32>
    %16 = vector.broadcast %15 : vector<10x1xf32> to vector<10x64xf32>
    %17 = arith.subf %12, %16 : vector<10x64xf32>
    %c0_8 = arith.constant 0 : index
    %c0_9 = arith.constant 0 : index
    %18 = vector.load %arg4[%c0_8, %c0_9] : memref<10x64xf32, #tpu.memory_space<vmem>>, vector<10x64xf32>
    tpu.vector_store %arg4[%c0_8, %c0_9], %17 {strides = array<i32>} : memref<10x64xf32, #tpu.memory_space<vmem>>, vector<10x64xf32>,
    return
  }
  func.func @transform_0(%arg0: i32) -> (i32, i32) {
    %c0_i32 = arith.constant 0 : i32
    %c0_i32_0 = arith.constant 0 : i32
    %c0_i32_1 = arith.constant 0 : i32
    return %c0_i32, %c0_i32_0 : i32, i32
  }
  func.func @transform_1(%arg0: i32) -> (i32, i32) {
    %c0_i32 = arith.constant 0 : i32
    %c0_i32_0 = arith.constant 0 : i32
    %c0_i32_1 = arith.constant 0 : i32
    return %c0_i32, %c0_i32_0 : i32, i32
  }
  func.func @transform_2(%arg0: i32) -> (i32, i32) {
    %c0_i32 = arith.constant 0 : i32
    %c0_i32_0 = arith.constant 0 : i32
    %c0_i32_1 = arith.constant 0 : i32
    return %c0_i32, %c0_i32_0 : i32, i32
  }
  func.func @transform_3(%arg0: i32) -> (i32, i32) {
    %c0_i32 = arith.constant 0 : i32
    %c0_i32_0 = arith.constant 0 : i32
    %c0_i32_1 = arith.constant 0 : i32
    return %c0_i32, %c0_i32_0 : i32, i32
  }
}

module attributes {stable_mosaic.version = 11 : i64} {
  func.func @_decode_step_kernel(%arg0: i32, %arg1: memref<1x2x32xf32, #tpu.memory_space<vmem>>, %arg2: memref<2x32xf32, #tpu.memory_space<vmem>>, %arg3: memref<2x8x32xf32, #tpu.memory_space<vmem>>, %arg4: memref<2x8x32xf32, #tpu.memory_space<vmem>>, %arg5: memref<2x12x32xf32, #tpu.memory_space<vmem>>, %arg6: memref<2x12x32xf32, #tpu.memory_space<vmem>>, %arg7: memref<2x12x32xf32, #tpu.memory_space<vmem>>, %arg8: memref<2x12x32xf32, #tpu.memory_space<vmem>>, %arg9: memref<2x12xf32, #tpu.memory_space<vmem>>, %arg10: memref<2x12xf32, #tpu.memory_space<vmem>>, %arg11: memref<2x8xf32, #tpu.memory_space<vmem>>, %arg12: memref<2x32xf32, #tpu.memory_space<vmem>>, %arg13: memref<2x32xf32, #tpu.memory_space<vmem>>, %arg14: memref<32x32xf32, #tpu.memory_space<vmem>>, %arg15: memref<1x32xf32, #tpu.memory_space<vmem>>, %arg16: memref<32x32xf32, #tpu.memory_space<vmem>>, %arg17: memref<1x32xf32, #tpu.memory_space<vmem>>, %arg18: memref<64x128xf32, #tpu.memory_space<vmem>>, %arg19: memref<32x128xf32, #tpu.memory_space<vmem>>, %arg20: memref<1x128xf32, #tpu.memory_space<vmem>>, %arg21: memref<64x128xf32, #tpu.memory_space<vmem>>, %arg22: memref<32x128xf32, #tpu.memory_space<vmem>>, %arg23: memref<1x128xf32, #tpu.memory_space<vmem>>, %arg24: memref<32x100xf32, #tpu.memory_space<vmem>>, %arg25: memref<100x32xf32, #tpu.memory_space<vmem>>, %arg26: memref<32x32xf32, #tpu.memory_space<vmem>>, %arg27: memref<1x32xf32, #tpu.memory_space<vmem>>, %arg28: memref<1x32xf32, #tpu.memory_space<vmem>>, %arg29: memref<1x1xf32, #tpu.memory_space<vmem>>, %arg30: memref<32x32xf32, #tpu.memory_space<vmem>>, %arg31: memref<1x32xf32, #tpu.memory_space<vmem>>, %arg32: memref<32x32xf32, #tpu.memory_space<vmem>>, %arg33: memref<1x32xf32, #tpu.memory_space<vmem>>, %arg34: memref<64x32xf32, #tpu.memory_space<vmem>>, %arg35: memref<1x32xf32, #tpu.memory_space<vmem>>, %arg36: memref<64x32xf32, #tpu.memory_space<vmem>>, %arg37: memref<1x32xf32, #tpu.memory_space<vmem>>, %arg38: memref<32x32xf32, #tpu.memory_space<vmem>>, %arg39: memref<1x32xf32, #tpu.memory_space<vmem>>, %arg40: memref<32x32xf32, #tpu.memory_space<vmem>>, %arg41: memref<1x32xf32, #tpu.memory_space<vmem>>, %arg42: memref<1x2x32xf32, #tpu.memory_space<vmem>>, %arg43: memref<1x2x32xf32, #tpu.memory_space<vmem>>, %arg44: memref<2x32xf32, #tpu.memory_space<vmem>>, %arg45: memref<2x32xf32, #tpu.memory_space<vmem>>, %arg46: memref<2x32xf32, #tpu.memory_space<vmem>>, %arg47: memref<2x32xf32, #tpu.memory_space<vmem>>, %arg48: memref<2x32xf32, #tpu.memory_space<vmem>>) attributes {dimension_semantics = [#tpu.dimension_semantics<arbitrary>], iteration_bounds = array<i64: 4>, scalar_prefetch = 0 : i64, scratch_operands = 5 : i64, tpu.core_type = #tpu.core_type<tc>, window_params = [{transform_indices = @transform_0, window_bounds = array<i64: 1, 2, 32>}, {pipeline_mode = #tpu.pipeline_mode<synchronous>, transform_indices = @transform_1, window_bounds = array<i64: 2, 32>}, {pipeline_mode = #tpu.pipeline_mode<synchronous>, transform_indices = @transform_2, window_bounds = array<i64: 2, 8, 32>}, {pipeline_mode = #tpu.pipeline_mode<synchronous>, transform_indices = @transform_3, window_bounds = array<i64: 2, 8, 32>}, {pipeline_mode = #tpu.pipeline_mode<synchronous>, transform_indices = @transform_4, window_bounds = array<i64: 2, 12, 32>}, {pipeline_mode = #tpu.pipeline_mode<synchronous>, transform_indices = @transform_5, window_bounds = array<i64: 2, 12, 32>}, {pipeline_mode = #tpu.pipeline_mode<synchronous>, transform_indices = @transform_6, window_bounds = array<i64: 2, 12, 32>}, {pipeline_mode = #tpu.pipeline_mode<synchronous>, transform_indices = @transform_7, window_bounds = array<i64: 2, 12, 32>}, {pipeline_mode = #tpu.pipeline_mode<synchronous>, transform_indices = @transform_8, window_bounds = array<i64: 2, 12>}, {pipeline_mode = #tpu.pipeline_mode<synchronous>, transform_indices = @transform_9, window_bounds = array<i64: 2, 12>}, {pipeline_mode = #tpu.pipeline_mode<synchronous>, transform_indices = @transform_10, window_bounds = array<i64: 2, 8>}, {pipeline_mode = #tpu.pipeline_mode<synchronous>, transform_indices = @transform_11, window_bounds = array<i64: 2, 32>}, {pipeline_mode = #tpu.pipeline_mode<synchronous>, transform_indices = @transform_12, window_bounds = array<i64: 2, 32>}, {pipeline_mode = #tpu.pipeline_mode<synchronous>, transform_indices = @transform_13, window_bounds = array<i64: 32, 32>}, {pipeline_mode = #tpu.pipeline_mode<synchronous>, transform_indices = @transform_14, window_bounds = array<i64: 1, 32>}, {pipeline_mode = #tpu.pipeline_mode<synchronous>, transform_indices = @transform_15, window_bounds = array<i64: 32, 32>}, {pipeline_mode = #tpu.pipeline_mode<synchronous>, transform_indices = @transform_16, window_bounds = array<i64: 1, 32>}, {pipeline_mode = #tpu.pipeline_mode<synchronous>, transform_indices = @transform_17, window_bounds = array<i64: 64, 128>}, {pipeline_mode = #tpu.pipeline_mode<synchronous>, transform_indices = @transform_18, window_bounds = array<i64: 32, 128>}, {pipeline_mode = #tpu.pipeline_mode<synchronous>, transform_indices = @transform_19, window_bounds = array<i64: 1, 128>}, {pipeline_mode = #tpu.pipeline_mode<synchronous>, transform_indices = @transform_20, window_bounds = array<i64: 64, 128>}, {pipeline_mode = #tpu.pipeline_mode<synchronous>, transform_indices = @transform_21, window_bounds = array<i64: 32, 128>}, {pipeline_mode = #tpu.pipeline_mode<synchronous>, transform_indices = @transform_22, window_bounds = array<i64: 1, 128>}, {pipeline_mode = #tpu.pipeline_mode<synchronous>, transform_indices = @transform_23, window_bounds = array<i64: 32, 100>}, {pipeline_mode = #tpu.pipeline_mode<synchronous>, transform_indices = @transform_24, window_bounds = array<i64: 100, 32>}, {pipeline_mode = #tpu.pipeline_mode<synchronous>, transform_indices = @transform_25, window_bounds = array<i64: 32, 32>}, {pipeline_mode = #tpu.pipeline_mode<synchronous>, transform_indices = @transform_26, window_bounds = array<i64: 1, 32>}, {pipeline_mode = #tpu.pipeline_mode<synchronous>, transform_indices = @transform_27, window_bounds = array<i64: 1, 32>}, {pipeline_mode = #tpu.pipeline_mode<synchronous>, transform_indices = @transform_28, window_bounds = array<i64: 1, 1>}, {pipeline_mode = #tpu.pipeline_mode<synchronous>, transform_indices = @transform_29, window_bounds = array<i64: 32, 32>}, {pipeline_mode = #tpu.pipeline_mode<synchronous>, transform_indices = @transform_30, window_bounds = array<i64: 1, 32>}, {pipeline_mode = #tpu.pipeline_mode<synchronous>, transform_indices = @transform_31, window_bounds = array<i64: 32, 32>}, {pipeline_mode = #tpu.pipeline_mode<synchronous>, transform_indices = @transform_32, window_bounds = array<i64: 1, 32>}, {pipeline_mode = #tpu.pipeline_mode<synchronous>, transform_indices = @transform_33, window_bounds = array<i64: 64, 32>}, {pipeline_mode = #tpu.pipeline_mode<synchronous>, transform_indices = @transform_34, window_bounds = array<i64: 1, 32>}, {pipeline_mode = #tpu.pipeline_mode<synchronous>, transform_indices = @transform_35, window_bounds = array<i64: 64, 32>}, {pipeline_mode = #tpu.pipeline_mode<synchronous>, transform_indices = @transform_36, window_bounds = array<i64: 1, 32>}, {pipeline_mode = #tpu.pipeline_mode<synchronous>, transform_indices = @transform_37, window_bounds = array<i64: 32, 32>}, {pipeline_mode = #tpu.pipeline_mode<synchronous>, transform_indices = @transform_38, window_bounds = array<i64: 1, 32>}, {pipeline_mode = #tpu.pipeline_mode<synchronous>, transform_indices = @transform_39, window_bounds = array<i64: 32, 32>}, {pipeline_mode = #tpu.pipeline_mode<synchronous>, transform_indices = @transform_40, window_bounds = array<i64: 1, 32>}, {transform_indices = @transform_41, window_bounds = array<i64: 1, 2, 32>}, {transform_indices = @transform_42, window_bounds = array<i64: 1, 2, 32>}]} {
    %c0_i32 = arith.constant 0 : i32
    %0 = arith.cmpi eq, %arg0, %c0_i32 : i32
    %1 = arith.extui %0 : i1 to i32
    %c0_i32_0 = arith.constant 0 : i32
    %2 = arith.cmpi ne, %1, %c0_i32_0 : i32
    scf.if %2 {
      %c0_223 = arith.constant 0 : index
      %c0_224 = arith.constant 0 : index
      %431 = vector.load %arg12[%c0_223, %c0_224] : memref<2x32xf32, #tpu.memory_space<vmem>>, vector<2x32xf32>
      %c0_225 = arith.constant 0 : index
      %c0_226 = arith.constant 0 : index
      %432 = vector.load %arg13[%c0_225, %c0_226] : memref<2x32xf32, #tpu.memory_space<vmem>>, vector<2x32xf32>
      %c0_227 = arith.constant 0 : index
      %c0_228 = arith.constant 0 : index
      %433 = vector.load %arg44[%c0_227, %c0_228] : memref<2x32xf32, #tpu.memory_space<vmem>>, vector<2x32xf32>
      tpu.vector_store %arg44[%c0_227, %c0_228], %431 {strides = array<i32>} : memref<2x32xf32, #tpu.memory_space<vmem>>, vector<2x32xf32>,
      %c0_229 = arith.constant 0 : index
      %c0_230 = arith.constant 0 : index
      %434 = vector.load %arg45[%c0_229, %c0_230] : memref<2x32xf32, #tpu.memory_space<vmem>>, vector<2x32xf32>
      tpu.vector_store %arg45[%c0_229, %c0_230], %431 {strides = array<i32>} : memref<2x32xf32, #tpu.memory_space<vmem>>, vector<2x32xf32>,
      %c0_231 = arith.constant 0 : index
      %c0_232 = arith.constant 0 : index
      %435 = vector.load %arg46[%c0_231, %c0_232] : memref<2x32xf32, #tpu.memory_space<vmem>>, vector<2x32xf32>
      tpu.vector_store %arg46[%c0_231, %c0_232], %431 {strides = array<i32>} : memref<2x32xf32, #tpu.memory_space<vmem>>, vector<2x32xf32>,
      %c0_233 = arith.constant 0 : index
      %c0_234 = arith.constant 0 : index
      %436 = vector.load %arg47[%c0_233, %c0_234] : memref<2x32xf32, #tpu.memory_space<vmem>>, vector<2x32xf32>
      tpu.vector_store %arg47[%c0_233, %c0_234], %432 {strides = array<i32>} : memref<2x32xf32, #tpu.memory_space<vmem>>, vector<2x32xf32>,
      %c0_235 = arith.constant 0 : index
      %c0_236 = arith.constant 0 : index
      %437 = vector.load %arg48[%c0_235, %c0_236] : memref<2x32xf32, #tpu.memory_space<vmem>>, vector<2x32xf32>
      tpu.vector_store %arg48[%c0_235, %c0_236], %432 {strides = array<i32>} : memref<2x32xf32, #tpu.memory_space<vmem>>, vector<2x32xf32>,
    } else {
    }
    %c0 = arith.constant 0 : index
    %c0_1 = arith.constant 0 : index
    %c0_2 = arith.constant 0 : index
    %3 = vector.load %arg1[%c0, %c0_1, %c0_2] : memref<1x2x32xf32, #tpu.memory_space<vmem>>, vector<1x2x32xf32>
    %4 = vector.shape_cast %3 : vector<1x2x32xf32> to vector<2x32xf32>
    %c0_3 = arith.constant 0 : index
    %c0_4 = arith.constant 0 : index
    %5 = vector.load %arg14[%c0_3, %c0_4] : memref<32x32xf32, #tpu.memory_space<vmem>>, vector<32x32xf32>
    %cst = arith.constant dense<0.000000e+00> : vector<2x32xf32>
    %6 = tpu.matmul %4, %5, %cst {dimension_numbers = #tpu.dot_dimension_numbers<[1], [0], [0], [1], [0, 0, 1, 1], [], []>} : vector<2x32xf32>, vector<32x32xf32>, vector<2x32xf32> -> vector<2x32xf32>
    %c0_5 = arith.constant 0 : index
    %c0_6 = arith.constant 0 : index
    %7 = vector.load %arg15[%c0_5, %c0_6] : memref<1x32xf32, #tpu.memory_space<vmem>>, vector<1x32xf32>
    %8 = vector.broadcast %7 : vector<1x32xf32> to vector<2x32xf32>
    %9 = arith.addf %6, %8 : vector<2x32xf32>
    %c0_7 = arith.constant 0 : index
    %c0_8 = arith.constant 0 : index
    %10 = vector.load %arg10[%c0_7, %c0_8] : memref<2x12xf32, #tpu.memory_space<vmem>>, vector<2x12xf32>
    %c0_9 = arith.constant 0 : index
    %c0_10 = arith.constant 0 : index
    %11 = vector.load %arg16[%c0_9, %c0_10] : memref<32x32xf32, #tpu.memory_space<vmem>>, vector<32x32xf32>
    %c0_11 = arith.constant 0 : index
    %c0_12 = arith.constant 0 : index
    %12 = vector.load %arg17[%c0_11, %c0_12] : memref<1x32xf32, #tpu.memory_space<vmem>>, vector<1x32xf32>
    %c0_13 = arith.constant 0 : index
    %c0_14 = arith.constant 0 : index
    %c0_15 = arith.constant 0 : index
    %13 = vector.load %arg7[%c0_13, %c0_14, %c0_15] : memref<2x12x32xf32, #tpu.memory_space<vmem>>, vector<1x12x32xf32>
    %14 = vector.shape_cast %13 : vector<1x12x32xf32> to vector<12x32xf32>
    %c0_16 = arith.constant 0 : index
    %c0_17 = arith.constant 0 : index
    %c0_18 = arith.constant 0 : index
    %15 = vector.load %arg8[%c0_16, %c0_17, %c0_18] : memref<2x12x32xf32, #tpu.memory_space<vmem>>, vector<1x12x32xf32>
    %16 = vector.shape_cast %15 : vector<1x12x32xf32> to vector<12x32xf32>
    %17 = vector.extract_strided_slice %10 {offsets = [0, 0], sizes = [1, 12], strides = [1, 1]} : vector<2x12xf32> to vector<1x12xf32>
    %18 = vector.extract_strided_slice %9 {offsets = [0, 0], sizes = [1, 16], strides = [1, 1]} : vector<2x32xf32> to vector<1x16xf32>
    %19 = vector.extract_strided_slice %14 {offsets = [0, 0], sizes = [12, 16], strides = [1, 1]} : vector<12x32xf32> to vector<12x16xf32>
    %cst_19 = arith.constant dense<0.000000e+00> : vector<1x12xf32>
    %20 = tpu.matmul %18, %19, %cst_19 {dimension_numbers = #tpu.dot_dimension_numbers<[1], [1], [0], [0], [0, 0, 1, 0], [], []>} : vector<1x16xf32>, vector<12x16xf32>, vector<1x12xf32> -> vector<1x12xf32>
    %cst_20 = arith.constant 2.500000e-01 : f32
    %21 = vector.broadcast %cst_20 : f32 to vector<1x12xf32>
    %22 = arith.mulf %20, %21 : vector<1x12xf32>
    %23 = arith.addf %22, %17 : vector<1x12xf32>
    %cst_21 = arith.constant dense<0xFF800000> : vector<1xf32>
    %24 = vector.multi_reduction <maximumf>, %23, %cst_21 [1] : vector<1x12xf32> to vector<1xf32>
    %25 = vector.shape_cast %24 : vector<1xf32> to vector<1x1xf32>
    %26 = vector.broadcast %25 : vector<1x1xf32> to vector<1x12xf32>
    %27 = arith.subf %23, %26 : vector<1x12xf32>
    %28 = math.exp %27 : vector<1x12xf32>
    %cst_22 = arith.constant dense<0.000000e+00> : vector<1xf32>
    %29 = vector.multi_reduction <add>, %28, %cst_22 [1] : vector<1x12xf32> to vector<1xf32>
    %30 = vector.shape_cast %29 : vector<1xf32> to vector<1x1xf32>
    %31 = vector.broadcast %30 : vector<1x1xf32> to vector<1x12xf32>
    %32 = arith.divf %28, %31 : vector<1x12xf32>
    %33 = vector.extract_strided_slice %16 {offsets = [0, 0], sizes = [12, 16], strides = [1, 1]} : vector<12x32xf32> to vector<12x16xf32>
    %cst_23 = arith.constant dense<0.000000e+00> : vector<1x16xf32>
    %34 = tpu.matmul %32, %33, %cst_23 {dimension_numbers = #tpu.dot_dimension_numbers<[1], [0], [0], [1], [0, 0, 1, 1], [], []>} : vector<1x12xf32>, vector<12x16xf32>, vector<1x16xf32> -> vector<1x16xf32>
    %35 = vector.extract_strided_slice %11 {offsets = [0, 0], sizes = [16, 32], strides = [1, 1]} : vector<32x32xf32> to vector<16x32xf32>
    %cst_24 = arith.constant dense<0.000000e+00> : vector<1x32xf32>
    %36 = tpu.matmul %34, %35, %cst_24 {dimension_numbers = #tpu.dot_dimension_numbers<[1], [0], [0], [1], [0, 0, 1, 1], [], []>} : vector<1x16xf32>, vector<16x32xf32>, vector<1x32xf32> -> vector<1x32xf32>
    %37 = vector.extract_strided_slice %9 {offsets = [0, 16], sizes = [1, 16], strides = [1, 1]} : vector<2x32xf32> to vector<1x16xf32>
    %38 = vector.extract_strided_slice %14 {offsets = [0, 16], sizes = [12, 16], strides = [1, 1]} : vector<12x32xf32> to vector<12x16xf32>
    %cst_25 = arith.constant dense<0.000000e+00> : vector<1x12xf32>
    %39 = tpu.matmul %37, %38, %cst_25 {dimension_numbers = #tpu.dot_dimension_numbers<[1], [1], [0], [0], [0, 0, 1, 0], [], []>} : vector<1x16xf32>, vector<12x16xf32>, vector<1x12xf32> -> vector<1x12xf32>
    %cst_26 = arith.constant 2.500000e-01 : f32
    %40 = vector.broadcast %cst_26 : f32 to vector<1x12xf32>
    %41 = arith.mulf %39, %40 : vector<1x12xf32>
    %42 = arith.addf %41, %17 : vector<1x12xf32>
    %cst_27 = arith.constant dense<0xFF800000> : vector<1xf32>
    %43 = vector.multi_reduction <maximumf>, %42, %cst_27 [1] : vector<1x12xf32> to vector<1xf32>
    %44 = vector.shape_cast %43 : vector<1xf32> to vector<1x1xf32>
    %45 = vector.broadcast %44 : vector<1x1xf32> to vector<1x12xf32>
    %46 = arith.subf %42, %45 : vector<1x12xf32>
    %47 = math.exp %46 : vector<1x12xf32>
    %cst_28 = arith.constant dense<0.000000e+00> : vector<1xf32>
    %48 = vector.multi_reduction <add>, %47, %cst_28 [1] : vector<1x12xf32> to vector<1xf32>
    %49 = vector.shape_cast %48 : vector<1xf32> to vector<1x1xf32>
    %50 = vector.broadcast %49 : vector<1x1xf32> to vector<1x12xf32>
    %51 = arith.divf %47, %50 : vector<1x12xf32>
    %52 = vector.extract_strided_slice %16 {offsets = [0, 16], sizes = [12, 16], strides = [1, 1]} : vector<12x32xf32> to vector<12x16xf32>
    %cst_29 = arith.constant dense<0.000000e+00> : vector<1x16xf32>
    %53 = tpu.matmul %51, %52, %cst_29 {dimension_numbers = #tpu.dot_dimension_numbers<[1], [0], [0], [1], [0, 0, 1, 1], [], []>} : vector<1x12xf32>, vector<12x16xf32>, vector<1x16xf32> -> vector<1x16xf32>
    %54 = vector.extract_strided_slice %11 {offsets = [16, 0], sizes = [16, 32], strides = [1, 1]} : vector<32x32xf32> to vector<16x32xf32>
    %cst_30 = arith.constant dense<0.000000e+00> : vector<1x32xf32>
    %55 = tpu.matmul %53, %54, %cst_30 {dimension_numbers = #tpu.dot_dimension_numbers<[1], [0], [0], [1], [0, 0, 1, 1], [], []>} : vector<1x16xf32>, vector<16x32xf32>, vector<1x32xf32> -> vector<1x32xf32>
    %56 = arith.addf %36, %55 : vector<1x32xf32>
    %c1 = arith.constant 1 : index
    %c0_31 = arith.constant 0 : index
    %c0_32 = arith.constant 0 : index
    %57 = vector.load %arg7[%c1, %c0_31, %c0_32] : memref<2x12x32xf32, #tpu.memory_space<vmem>>, vector<1x12x32xf32>
    %58 = vector.shape_cast %57 : vector<1x12x32xf32> to vector<12x32xf32>
    %c1_33 = arith.constant 1 : index
    %c0_34 = arith.constant 0 : index
    %c0_35 = arith.constant 0 : index
    %59 = vector.load %arg8[%c1_33, %c0_34, %c0_35] : memref<2x12x32xf32, #tpu.memory_space<vmem>>, vector<1x12x32xf32>
    %60 = vector.shape_cast %59 : vector<1x12x32xf32> to vector<12x32xf32>
    %61 = vector.extract_strided_slice %10 {offsets = [1, 0], sizes = [1, 12], strides = [1, 1]} : vector<2x12xf32> to vector<1x12xf32>
    %62 = vector.extract_strided_slice %9 {offsets = [1, 0], sizes = [1, 16], strides = [1, 1]} : vector<2x32xf32> to vector<1x16xf32>
    %63 = vector.extract_strided_slice %58 {offsets = [0, 0], sizes = [12, 16], strides = [1, 1]} : vector<12x32xf32> to vector<12x16xf32>
    %cst_36 = arith.constant dense<0.000000e+00> : vector<1x12xf32>
    %64 = tpu.matmul %62, %63, %cst_36 {dimension_numbers = #tpu.dot_dimension_numbers<[1], [1], [0], [0], [0, 0, 1, 0], [], []>} : vector<1x16xf32>, vector<12x16xf32>, vector<1x12xf32> -> vector<1x12xf32>
    %cst_37 = arith.constant 2.500000e-01 : f32
    %65 = vector.broadcast %cst_37 : f32 to vector<1x12xf32>
    %66 = arith.mulf %64, %65 : vector<1x12xf32>
    %67 = arith.addf %66, %61 : vector<1x12xf32>
    %cst_38 = arith.constant dense<0xFF800000> : vector<1xf32>
    %68 = vector.multi_reduction <maximumf>, %67, %cst_38 [1] : vector<1x12xf32> to vector<1xf32>
    %69 = vector.shape_cast %68 : vector<1xf32> to vector<1x1xf32>
    %70 = vector.broadcast %69 : vector<1x1xf32> to vector<1x12xf32>
    %71 = arith.subf %67, %70 : vector<1x12xf32>
    %72 = math.exp %71 : vector<1x12xf32>
    %cst_39 = arith.constant dense<0.000000e+00> : vector<1xf32>
    %73 = vector.multi_reduction <add>, %72, %cst_39 [1] : vector<1x12xf32> to vector<1xf32>
    %74 = vector.shape_cast %73 : vector<1xf32> to vector<1x1xf32>
    %75 = vector.broadcast %74 : vector<1x1xf32> to vector<1x12xf32>
    %76 = arith.divf %72, %75 : vector<1x12xf32>
    %77 = vector.extract_strided_slice %60 {offsets = [0, 0], sizes = [12, 16], strides = [1, 1]} : vector<12x32xf32> to vector<12x16xf32>
    %cst_40 = arith.constant dense<0.000000e+00> : vector<1x16xf32>
    %78 = tpu.matmul %76, %77, %cst_40 {dimension_numbers = #tpu.dot_dimension_numbers<[1], [0], [0], [1], [0, 0, 1, 1], [], []>} : vector<1x12xf32>, vector<12x16xf32>, vector<1x16xf32> -> vector<1x16xf32>
    %79 = vector.extract_strided_slice %11 {offsets = [0, 0], sizes = [16, 32], strides = [1, 1]} : vector<32x32xf32> to vector<16x32xf32>
    %cst_41 = arith.constant dense<0.000000e+00> : vector<1x32xf32>
    %80 = tpu.matmul %78, %79, %cst_41 {dimension_numbers = #tpu.dot_dimension_numbers<[1], [0], [0], [1], [0, 0, 1, 1], [], []>} : vector<1x16xf32>, vector<16x32xf32>, vector<1x32xf32> -> vector<1x32xf32>
    %81 = vector.extract_strided_slice %9 {offsets = [1, 16], sizes = [1, 16], strides = [1, 1]} : vector<2x32xf32> to vector<1x16xf32>
    %82 = vector.extract_strided_slice %58 {offsets = [0, 16], sizes = [12, 16], strides = [1, 1]} : vector<12x32xf32> to vector<12x16xf32>
    %cst_42 = arith.constant dense<0.000000e+00> : vector<1x12xf32>
    %83 = tpu.matmul %81, %82, %cst_42 {dimension_numbers = #tpu.dot_dimension_numbers<[1], [1], [0], [0], [0, 0, 1, 0], [], []>} : vector<1x16xf32>, vector<12x16xf32>, vector<1x12xf32> -> vector<1x12xf32>
    %cst_43 = arith.constant 2.500000e-01 : f32
    %84 = vector.broadcast %cst_43 : f32 to vector<1x12xf32>
    %85 = arith.mulf %83, %84 : vector<1x12xf32>
    %86 = arith.addf %85, %61 : vector<1x12xf32>
    %cst_44 = arith.constant dense<0xFF800000> : vector<1xf32>
    %87 = vector.multi_reduction <maximumf>, %86, %cst_44 [1] : vector<1x12xf32> to vector<1xf32>
    %88 = vector.shape_cast %87 : vector<1xf32> to vector<1x1xf32>
    %89 = vector.broadcast %88 : vector<1x1xf32> to vector<1x12xf32>
    %90 = arith.subf %86, %89 : vector<1x12xf32>
    %91 = math.exp %90 : vector<1x12xf32>
    %cst_45 = arith.constant dense<0.000000e+00> : vector<1xf32>
    %92 = vector.multi_reduction <add>, %91, %cst_45 [1] : vector<1x12xf32> to vector<1xf32>
    %93 = vector.shape_cast %92 : vector<1xf32> to vector<1x1xf32>
    %94 = vector.broadcast %93 : vector<1x1xf32> to vector<1x12xf32>
    %95 = arith.divf %91, %94 : vector<1x12xf32>
    %96 = vector.extract_strided_slice %60 {offsets = [0, 16], sizes = [12, 16], strides = [1, 1]} : vector<12x32xf32> to vector<12x16xf32>
    %cst_46 = arith.constant dense<0.000000e+00> : vector<1x16xf32>
    %97 = tpu.matmul %95, %96, %cst_46 {dimension_numbers = #tpu.dot_dimension_numbers<[1], [0], [0], [1], [0, 0, 1, 1], [], []>} : vector<1x12xf32>, vector<12x16xf32>, vector<1x16xf32> -> vector<1x16xf32>
    %98 = vector.extract_strided_slice %11 {offsets = [16, 0], sizes = [16, 32], strides = [1, 1]} : vector<32x32xf32> to vector<16x32xf32>
    %cst_47 = arith.constant dense<0.000000e+00> : vector<1x32xf32>
    %99 = tpu.matmul %97, %98, %cst_47 {dimension_numbers = #tpu.dot_dimension_numbers<[1], [0], [0], [1], [0, 0, 1, 1], [], []>} : vector<1x16xf32>, vector<16x32xf32>, vector<1x32xf32> -> vector<1x32xf32>
    %100 = arith.addf %80, %99 : vector<1x32xf32>
    %101 = tpu.concatenate %56, %100 in 0 : vector<1x32xf32>, vector<1x32xf32> -> vector<2x32xf32>
    %102 = vector.broadcast %12 : vector<1x32xf32> to vector<2x32xf32>
    %103 = arith.addf %101, %102 : vector<2x32xf32>
    %104 = arith.addf %103, %4 : vector<2x32xf32>
    %cst_48 = arith.constant dense<0.000000e+00> : vector<2xf32>
    %105 = vector.multi_reduction <add>, %104, %cst_48 [1] : vector<2x32xf32> to vector<2xf32>
    %106 = vector.shape_cast %105 : vector<2xf32> to vector<2x1xf32>
    %cst_49 = arith.constant 3.200000e+01 : f32
    %107 = vector.broadcast %cst_49 : f32 to vector<2x1xf32>
    %108 = arith.divf %106, %107 : vector<2x1xf32>
    %109 = vector.broadcast %108 : vector<2x1xf32> to vector<2x32xf32>
    %110 = arith.subf %104, %109 : vector<2x32xf32>
    %111 = arith.mulf %110, %110 : vector<2x32xf32>
    %cst_50 = arith.constant dense<0.000000e+00> : vector<2xf32>
    %112 = vector.multi_reduction <add>, %111, %cst_50 [1] : vector<2x32xf32> to vector<2xf32>
    %113 = vector.shape_cast %112 : vector<2xf32> to vector<2x1xf32>
    %cst_51 = arith.constant 3.200000e+01 : f32
    %114 = vector.broadcast %cst_51 : f32 to vector<2x1xf32>
    %115 = arith.divf %113, %114 : vector<2x1xf32>
    %116 = vector.broadcast %108 : vector<2x1xf32> to vector<2x32xf32>
    %117 = arith.subf %104, %116 : vector<2x32xf32>
    %cst_52 = arith.constant 9.99999974E-6 : f32
    %118 = vector.broadcast %cst_52 : f32 to vector<2x1xf32>
    %119 = arith.addf %115, %118 : vector<2x1xf32>
    %120 = math.rsqrt %119 : vector<2x1xf32>
    %121 = vector.broadcast %120 : vector<2x1xf32> to vector<2x32xf32>
    %122 = arith.mulf %117, %121 : vector<2x32xf32>
    %c0_53 = arith.constant 0 : index
    %c0_54 = arith.constant 0 : index
    %123 = vector.load %arg44[%c0_53, %c0_54] : memref<2x32xf32, #tpu.memory_space<vmem>>, vector<2x32xf32>
    %c0_55 = arith.constant 0 : index
    %c0_56 = arith.constant 0 : index
    %124 = vector.load %arg45[%c0_55, %c0_56] : memref<2x32xf32, #tpu.memory_space<vmem>>, vector<2x32xf32>
    %c0_57 = arith.constant 0 : index
    %c0_58 = arith.constant 0 : index
    %125 = vector.load %arg46[%c0_57, %c0_58] : memref<2x32xf32, #tpu.memory_space<vmem>>, vector<2x32xf32>
    %c0_59 = arith.constant 0 : index
    %c0_60 = arith.constant 0 : index
    %126 = vector.load %arg47[%c0_59, %c0_60] : memref<2x32xf32, #tpu.memory_space<vmem>>, vector<2x32xf32>
    %c0_61 = arith.constant 0 : index
    %c0_62 = arith.constant 0 : index
    %127 = vector.load %arg48[%c0_61, %c0_62] : memref<2x32xf32, #tpu.memory_space<vmem>>, vector<2x32xf32>
    %c0_63 = arith.constant 0 : index
    %c0_64 = arith.constant 0 : index
    %128 = vector.load %arg2[%c0_63, %c0_64] : memref<2x32xf32, #tpu.memory_space<vmem>>, vector<2x32xf32>
    %129 = arith.addf %128, %124 : vector<2x32xf32>
    %130 = arith.addf %129, %125 : vector<2x32xf32>
    %cst_65 = arith.constant 3.000000e+00 : f32
    %131 = vector.broadcast %cst_65 : f32 to vector<2x32xf32>
    %132 = arith.divf %130, %131 : vector<2x32xf32>
    %c0_66 = arith.constant 0 : index
    %c0_67 = arith.constant 0 : index
    %133 = vector.load %arg18[%c0_66, %c0_67] : memref<64x128xf32, #tpu.memory_space<vmem>>, vector<64x128xf32>
    %c0_68 = arith.constant 0 : index
    %c0_69 = arith.constant 0 : index
    %134 = vector.load %arg19[%c0_68, %c0_69] : memref<32x128xf32, #tpu.memory_space<vmem>>, vector<32x128xf32>
    %c0_70 = arith.constant 0 : index
    %c0_71 = arith.constant 0 : index
    %135 = vector.load %arg20[%c0_70, %c0_71] : memref<1x128xf32, #tpu.memory_space<vmem>>, vector<1x128xf32>
    %136 = vector.extract_strided_slice %133 {offsets = [0, 0], sizes = [32, 128], strides = [1, 1]} : vector<64x128xf32> to vector<32x128xf32>
    %cst_72 = arith.constant dense<0.000000e+00> : vector<2x128xf32>
    %137 = tpu.matmul %132, %136, %cst_72 {dimension_numbers = #tpu.dot_dimension_numbers<[1], [0], [0], [1], [0, 0, 1, 1], [], []>} : vector<2x32xf32>, vector<32x128xf32>, vector<2x128xf32> -> vector<2x128xf32>
    %138 = vector.extract_strided_slice %133 {offsets = [32, 0], sizes = [32, 128], strides = [1, 1]} : vector<64x128xf32> to vector<32x128xf32>
    %cst_73 = arith.constant dense<0.000000e+00> : vector<2x128xf32>
    %139 = tpu.matmul %122, %138, %cst_73 {dimension_numbers = #tpu.dot_dimension_numbers<[1], [0], [0], [1], [0, 0, 1, 1], [], []>} : vector<2x32xf32>, vector<32x128xf32>, vector<2x128xf32> -> vector<2x128xf32>
    %140 = arith.addf %137, %139 : vector<2x128xf32>
    %cst_74 = arith.constant dense<0.000000e+00> : vector<2x128xf32>
    %141 = tpu.matmul %123, %134, %cst_74 {dimension_numbers = #tpu.dot_dimension_numbers<[1], [0], [0], [1], [0, 0, 1, 1], [], []>} : vector<2x32xf32>, vector<32x128xf32>, vector<2x128xf32> -> vector<2x128xf32>
    %142 = arith.addf %140, %141 : vector<2x128xf32>
    %143 = vector.broadcast %135 : vector<1x128xf32> to vector<2x128xf32>
    %144 = arith.addf %142, %143 : vector<2x128xf32>
    %145 = vector.extract_strided_slice %144 {offsets = [0, 0], sizes = [2, 32], strides = [1, 1]} : vector<2x128xf32> to vector<2x32xf32>
    %146 = arith.negf %145 : vector<2x32xf32>
    %147 = math.exp %146 : vector<2x32xf32>
    %cst_75 = arith.constant 1.000000e+00 : f32
    %148 = vector.broadcast %cst_75 : f32 to vector<2x32xf32>
    %149 = arith.addf %148, %147 : vector<2x32xf32>
    %150 = arith.divf %148, %149 : vector<2x32xf32>
    %151 = vector.extract_strided_slice %144 {offsets = [0, 32], sizes = [2, 32], strides = [1, 1]} : vector<2x128xf32> to vector<2x32xf32>
    %152 = arith.negf %151 : vector<2x32xf32>
    %153 = math.exp %152 : vector<2x32xf32>
    %cst_76 = arith.constant 1.000000e+00 : f32
    %154 = vector.broadcast %cst_76 : f32 to vector<2x32xf32>
    %155 = arith.addf %154, %153 : vector<2x32xf32>
    %156 = arith.divf %154, %155 : vector<2x32xf32>
    %157 = vector.extract_strided_slice %144 {offsets = [0, 64], sizes = [2, 32], strides = [1, 1]} : vector<2x128xf32> to vector<2x32xf32>
    %158 = math.tanh %157 : vector<2x32xf32>
    %159 = vector.extract_strided_slice %144 {offsets = [0, 96], sizes = [2, 32], strides = [1, 1]} : vector<2x128xf32> to vector<2x32xf32>
    %160 = arith.negf %159 : vector<2x32xf32>
    %161 = math.exp %160 : vector<2x32xf32>
    %cst_77 = arith.constant 1.000000e+00 : f32
    %162 = vector.broadcast %cst_77 : f32 to vector<2x32xf32>
    %163 = arith.addf %162, %161 : vector<2x32xf32>
    %164 = arith.divf %162, %163 : vector<2x32xf32>
    %165 = arith.mulf %156, %126 : vector<2x32xf32>
    %166 = arith.mulf %150, %158 : vector<2x32xf32>
    %167 = arith.addf %165, %166 : vector<2x32xf32>
    %168 = math.tanh %167 : vector<2x32xf32>
    %169 = arith.mulf %164, %168 : vector<2x32xf32>
    %c0_78 = arith.constant 0 : index
    %c0_79 = arith.constant 0 : index
    %170 = vector.load %arg24[%c0_78, %c0_79] : memref<32x100xf32, #tpu.memory_space<vmem>>, vector<32x100xf32>
    %cst_80 = arith.constant dense<0.000000e+00> : vector<2x100xf32>
    %171 = tpu.matmul %169, %170, %cst_80 {dimension_numbers = #tpu.dot_dimension_numbers<[1], [0], [0], [1], [0, 0, 1, 1], [], []>} : vector<2x32xf32>, vector<32x100xf32>, vector<2x100xf32> -> vector<2x100xf32>
    %cst_81 = arith.constant dense<0xFF800000> : vector<2xf32>
    %172 = vector.multi_reduction <maximumf>, %171, %cst_81 [1] : vector<2x100xf32> to vector<2xf32>
    %173 = vector.shape_cast %172 : vector<2xf32> to vector<2x1xf32>
    %174 = vector.broadcast %173 : vector<2x1xf32> to vector<2x100xf32>
    %175 = arith.subf %171, %174 : vector<2x100xf32>
    %176 = math.exp %175 : vector<2x100xf32>
    %cst_82 = arith.constant dense<0.000000e+00> : vector<2xf32>
    %177 = vector.multi_reduction <add>, %176, %cst_82 [1] : vector<2x100xf32> to vector<2xf32>
    %178 = vector.shape_cast %177 : vector<2xf32> to vector<2x1xf32>
    %179 = vector.broadcast %178 : vector<2x1xf32> to vector<2x100xf32>
    %180 = arith.divf %176, %179 : vector<2x100xf32>
    %c0_83 = arith.constant 0 : index
    %c0_84 = arith.constant 0 : index
    %181 = vector.load %arg25[%c0_83, %c0_84] : memref<100x32xf32, #tpu.memory_space<vmem>>, vector<100x32xf32>
    %cst_85 = arith.constant dense<0.000000e+00> : vector<2x32xf32>
    %182 = tpu.matmul %180, %181, %cst_85 {dimension_numbers = #tpu.dot_dimension_numbers<[1], [0], [0], [1], [0, 0, 1, 1], [], []>} : vector<2x100xf32>, vector<100x32xf32>, vector<2x32xf32> -> vector<2x32xf32>
    %cst_86 = arith.constant 0.000000e+00 : f32
    %183 = vector.broadcast %cst_86 : f32 to vector<2x32xf32>
    %184 = arith.maximumf %182, %183 : vector<2x32xf32>
    %185 = arith.addf %184, %169 : vector<2x32xf32>
    %c0_87 = arith.constant 0 : index
    %c0_88 = arith.constant 0 : index
    %186 = vector.load %arg26[%c0_87, %c0_88] : memref<32x32xf32, #tpu.memory_space<vmem>>, vector<32x32xf32>
    %cst_89 = arith.constant dense<0.000000e+00> : vector<2x32xf32>
    %187 = tpu.matmul %185, %186, %cst_89 {dimension_numbers = #tpu.dot_dimension_numbers<[1], [0], [0], [1], [0, 0, 1, 1], [], []>} : vector<2x32xf32>, vector<32x32xf32>, vector<2x32xf32> -> vector<2x32xf32>
    %c0_90 = arith.constant 0 : index
    %c0_91 = arith.constant 0 : index
    %188 = vector.load %arg27[%c0_90, %c0_91] : memref<1x32xf32, #tpu.memory_space<vmem>>, vector<1x32xf32>
    %189 = vector.broadcast %188 : vector<1x32xf32> to vector<2x32xf32>
    %190 = arith.addf %187, %189 : vector<2x32xf32>
    %c0_92 = arith.constant 0 : index
    %c0_93 = arith.constant 0 : index
    %191 = vector.load %arg11[%c0_92, %c0_93] : memref<2x8xf32, #tpu.memory_space<vmem>>, vector<2x8xf32>
    %c0_94 = arith.constant 0 : index
    %c0_95 = arith.constant 0 : index
    %192 = vector.load %arg28[%c0_94, %c0_95] : memref<1x32xf32, #tpu.memory_space<vmem>>, vector<1x32xf32>
    %c0_96 = arith.constant 0 : index
    %c0_97 = arith.constant 0 : index
    %193 = vector.load %arg29[%c0_96, %c0_97] : memref<1x1xf32, #tpu.memory_space<vmem>>, vector<1x1xf32>
    %c0_98 = arith.constant 0 : index
    %c0_99 = arith.constant 0 : index
    %c0_100 = arith.constant 0 : index
    %194 = vector.load %arg4[%c0_98, %c0_99, %c0_100] : memref<2x8x32xf32, #tpu.memory_space<vmem>>, vector<1x8x32xf32>
    %195 = vector.shape_cast %194 : vector<1x8x32xf32> to vector<8x32xf32>
    %196 = vector.extract_strided_slice %190 {offsets = [0, 0], sizes = [1, 32], strides = [1, 1]} : vector<2x32xf32> to vector<1x32xf32>
    %197 = vector.broadcast %196 : vector<1x32xf32> to vector<8x32xf32>
    %198 = arith.addf %195, %197 : vector<8x32xf32>
    %199 = math.tanh %198 : vector<8x32xf32>
    %cst_101 = arith.constant dense<0.000000e+00> : vector<1x8xf32>
    %200 = tpu.matmul %192, %199, %cst_101 {dimension_numbers = #tpu.dot_dimension_numbers<[1], [1], [0], [0], [0, 0, 1, 0], [], []>} : vector<1x32xf32>, vector<8x32xf32>, vector<1x8xf32> -> vector<1x8xf32>
    %201 = vector.broadcast %193 : vector<1x1xf32> to vector<1x8xf32>
    %202 = arith.addf %200, %201 : vector<1x8xf32>
    %203 = vector.extract_strided_slice %191 {offsets = [0, 0], sizes = [1, 8], strides = [1, 1]} : vector<2x8xf32> to vector<1x8xf32>
    %204 = arith.addf %202, %203 : vector<1x8xf32>
    %cst_102 = arith.constant dense<0xFF800000> : vector<1xf32>
    %205 = vector.multi_reduction <maximumf>, %204, %cst_102 [1] : vector<1x8xf32> to vector<1xf32>
    %206 = vector.shape_cast %205 : vector<1xf32> to vector<1x1xf32>
    %207 = vector.broadcast %206 : vector<1x1xf32> to vector<1x8xf32>
    %208 = arith.subf %204, %207 : vector<1x8xf32>
    %209 = math.exp %208 : vector<1x8xf32>
    %cst_103 = arith.constant dense<0.000000e+00> : vector<1xf32>
    %210 = vector.multi_reduction <add>, %209, %cst_103 [1] : vector<1x8xf32> to vector<1xf32>
    %211 = vector.shape_cast %210 : vector<1xf32> to vector<1x1xf32>
    %212 = vector.broadcast %211 : vector<1x1xf32> to vector<1x8xf32>
    %213 = arith.divf %209, %212 : vector<1x8xf32>
    %c0_104 = arith.constant 0 : index
    %c0_105 = arith.constant 0 : index
    %c0_106 = arith.constant 0 : index
    %214 = vector.load %arg3[%c0_104, %c0_105, %c0_106] : memref<2x8x32xf32, #tpu.memory_space<vmem>>, vector<1x8x32xf32>
    %215 = vector.shape_cast %214 : vector<1x8x32xf32> to vector<8x32xf32>
    %cst_107 = arith.constant dense<0.000000e+00> : vector<1x32xf32>
    %216 = tpu.matmul %213, %215, %cst_107 {dimension_numbers = #tpu.dot_dimension_numbers<[1], [0], [0], [1], [0, 0, 1, 1], [], []>} : vector<1x8xf32>, vector<8x32xf32>, vector<1x32xf32> -> vector<1x32xf32>
    %c1_108 = arith.constant 1 : index
    %c0_109 = arith.constant 0 : index
    %c0_110 = arith.constant 0 : index
    %217 = vector.load %arg4[%c1_108, %c0_109, %c0_110] : memref<2x8x32xf32, #tpu.memory_space<vmem>>, vector<1x8x32xf32>
    %218 = vector.shape_cast %217 : vector<1x8x32xf32> to vector<8x32xf32>
    %219 = vector.extract_strided_slice %190 {offsets = [1, 0], sizes = [1, 32], strides = [1, 1]} : vector<2x32xf32> to vector<1x32xf32>
    %220 = vector.broadcast %219 : vector<1x32xf32> to vector<8x32xf32>
    %221 = arith.addf %218, %220 : vector<8x32xf32>
    %222 = math.tanh %221 : vector<8x32xf32>
    %cst_111 = arith.constant dense<0.000000e+00> : vector<1x8xf32>
    %223 = tpu.matmul %192, %222, %cst_111 {dimension_numbers = #tpu.dot_dimension_numbers<[1], [1], [0], [0], [0, 0, 1, 0], [], []>} : vector<1x32xf32>, vector<8x32xf32>, vector<1x8xf32> -> vector<1x8xf32>
    %224 = vector.broadcast %193 : vector<1x1xf32> to vector<1x8xf32>
    %225 = arith.addf %223, %224 : vector<1x8xf32>
    %226 = vector.extract_strided_slice %191 {offsets = [1, 0], sizes = [1, 8], strides = [1, 1]} : vector<2x8xf32> to vector<1x8xf32>
    %227 = arith.addf %225, %226 : vector<1x8xf32>
    %cst_112 = arith.constant dense<0xFF800000> : vector<1xf32>
    %228 = vector.multi_reduction <maximumf>, %227, %cst_112 [1] : vector<1x8xf32> to vector<1xf32>
    %229 = vector.shape_cast %228 : vector<1xf32> to vector<1x1xf32>
    %230 = vector.broadcast %229 : vector<1x1xf32> to vector<1x8xf32>
    %231 = arith.subf %227, %230 : vector<1x8xf32>
    %232 = math.exp %231 : vector<1x8xf32>
    %cst_113 = arith.constant dense<0.000000e+00> : vector<1xf32>
    %233 = vector.multi_reduction <add>, %232, %cst_113 [1] : vector<1x8xf32> to vector<1xf32>
    %234 = vector.shape_cast %233 : vector<1xf32> to vector<1x1xf32>
    %235 = vector.broadcast %234 : vector<1x1xf32> to vector<1x8xf32>
    %236 = arith.divf %232, %235 : vector<1x8xf32>
    %c1_114 = arith.constant 1 : index
    %c0_115 = arith.constant 0 : index
    %c0_116 = arith.constant 0 : index
    %237 = vector.load %arg3[%c1_114, %c0_115, %c0_116] : memref<2x8x32xf32, #tpu.memory_space<vmem>>, vector<1x8x32xf32>
    %238 = vector.shape_cast %237 : vector<1x8x32xf32> to vector<8x32xf32>
    %cst_117 = arith.constant dense<0.000000e+00> : vector<1x32xf32>
    %239 = tpu.matmul %236, %238, %cst_117 {dimension_numbers = #tpu.dot_dimension_numbers<[1], [0], [0], [1], [0, 0, 1, 1], [], []>} : vector<1x8xf32>, vector<8x32xf32>, vector<1x32xf32> -> vector<1x32xf32>
    %240 = tpu.concatenate %216, %239 in 0 : vector<1x32xf32>, vector<1x32xf32> -> vector<2x32xf32>
    %c0_118 = arith.constant 0 : index
    %c0_119 = arith.constant 0 : index
    %241 = vector.load %arg21[%c0_118, %c0_119] : memref<64x128xf32, #tpu.memory_space<vmem>>, vector<64x128xf32>
    %c0_120 = arith.constant 0 : index
    %c0_121 = arith.constant 0 : index
    %242 = vector.load %arg22[%c0_120, %c0_121] : memref<32x128xf32, #tpu.memory_space<vmem>>, vector<32x128xf32>
    %c0_122 = arith.constant 0 : index
    %c0_123 = arith.constant 0 : index
    %243 = vector.load %arg23[%c0_122, %c0_123] : memref<1x128xf32, #tpu.memory_space<vmem>>, vector<1x128xf32>
    %244 = vector.extract_strided_slice %241 {offsets = [0, 0], sizes = [32, 128], strides = [1, 1]} : vector<64x128xf32> to vector<32x128xf32>
    %cst_124 = arith.constant dense<0.000000e+00> : vector<2x128xf32>
    %245 = tpu.matmul %185, %244, %cst_124 {dimension_numbers = #tpu.dot_dimension_numbers<[1], [0], [0], [1], [0, 0, 1, 1], [], []>} : vector<2x32xf32>, vector<32x128xf32>, vector<2x128xf32> -> vector<2x128xf32>
    %246 = vector.extract_strided_slice %241 {offsets = [32, 0], sizes = [32, 128], strides = [1, 1]} : vector<64x128xf32> to vector<32x128xf32>
    %cst_125 = arith.constant dense<0.000000e+00> : vector<2x128xf32>
    %247 = tpu.matmul %240, %246, %cst_125 {dimension_numbers = #tpu.dot_dimension_numbers<[1], [0], [0], [1], [0, 0, 1, 1], [], []>} : vector<2x32xf32>, vector<32x128xf32>, vector<2x128xf32> -> vector<2x128xf32>
    %248 = arith.addf %245, %247 : vector<2x128xf32>
    %cst_126 = arith.constant dense<0.000000e+00> : vector<2x128xf32>
    %249 = tpu.matmul %124, %242, %cst_126 {dimension_numbers = #tpu.dot_dimension_numbers<[1], [0], [0], [1], [0, 0, 1, 1], [], []>} : vector<2x32xf32>, vector<32x128xf32>, vector<2x128xf32> -> vector<2x128xf32>
    %250 = arith.addf %248, %249 : vector<2x128xf32>
    %251 = vector.broadcast %243 : vector<1x128xf32> to vector<2x128xf32>
    %252 = arith.addf %250, %251 : vector<2x128xf32>
    %253 = vector.extract_strided_slice %252 {offsets = [0, 0], sizes = [2, 32], strides = [1, 1]} : vector<2x128xf32> to vector<2x32xf32>
    %254 = arith.negf %253 : vector<2x32xf32>
    %255 = math.exp %254 : vector<2x32xf32>
    %cst_127 = arith.constant 1.000000e+00 : f32
    %256 = vector.broadcast %cst_127 : f32 to vector<2x32xf32>
    %257 = arith.addf %256, %255 : vector<2x32xf32>
    %258 = arith.divf %256, %257 : vector<2x32xf32>
    %259 = vector.extract_strided_slice %252 {offsets = [0, 32], sizes = [2, 32], strides = [1, 1]} : vector<2x128xf32> to vector<2x32xf32>
    %260 = arith.negf %259 : vector<2x32xf32>
    %261 = math.exp %260 : vector<2x32xf32>
    %cst_128 = arith.constant 1.000000e+00 : f32
    %262 = vector.broadcast %cst_128 : f32 to vector<2x32xf32>
    %263 = arith.addf %262, %261 : vector<2x32xf32>
    %264 = arith.divf %262, %263 : vector<2x32xf32>
    %265 = vector.extract_strided_slice %252 {offsets = [0, 64], sizes = [2, 32], strides = [1, 1]} : vector<2x128xf32> to vector<2x32xf32>
    %266 = math.tanh %265 : vector<2x32xf32>
    %267 = vector.extract_strided_slice %252 {offsets = [0, 96], sizes = [2, 32], strides = [1, 1]} : vector<2x128xf32> to vector<2x32xf32>
    %268 = arith.negf %267 : vector<2x32xf32>
    %269 = math.exp %268 : vector<2x32xf32>
    %cst_129 = arith.constant 1.000000e+00 : f32
    %270 = vector.broadcast %cst_129 : f32 to vector<2x32xf32>
    %271 = arith.addf %270, %269 : vector<2x32xf32>
    %272 = arith.divf %270, %271 : vector<2x32xf32>
    %273 = arith.mulf %264, %127 : vector<2x32xf32>
    %274 = arith.mulf %258, %266 : vector<2x32xf32>
    %275 = arith.addf %273, %274 : vector<2x32xf32>
    %276 = math.tanh %275 : vector<2x32xf32>
    %277 = arith.mulf %272, %276 : vector<2x32xf32>
    %c0_130 = arith.constant 0 : index
    %c0_131 = arith.constant 0 : index
    %278 = vector.load %arg30[%c0_130, %c0_131] : memref<32x32xf32, #tpu.memory_space<vmem>>, vector<32x32xf32>
    %cst_132 = arith.constant dense<0.000000e+00> : vector<2x32xf32>
    %279 = tpu.matmul %185, %278, %cst_132 {dimension_numbers = #tpu.dot_dimension_numbers<[1], [0], [0], [1], [0, 0, 1, 1], [], []>} : vector<2x32xf32>, vector<32x32xf32>, vector<2x32xf32> -> vector<2x32xf32>
    %c0_133 = arith.constant 0 : index
    %c0_134 = arith.constant 0 : index
    %280 = vector.load %arg31[%c0_133, %c0_134] : memref<1x32xf32, #tpu.memory_space<vmem>>, vector<1x32xf32>
    %281 = vector.broadcast %280 : vector<1x32xf32> to vector<2x32xf32>
    %282 = arith.addf %279, %281 : vector<2x32xf32>
    %c0_135 = arith.constant 0 : index
    %c0_136 = arith.constant 0 : index
    %283 = vector.load %arg9[%c0_135, %c0_136] : memref<2x12xf32, #tpu.memory_space<vmem>>, vector<2x12xf32>
    %c0_137 = arith.constant 0 : index
    %c0_138 = arith.constant 0 : index
    %284 = vector.load %arg32[%c0_137, %c0_138] : memref<32x32xf32, #tpu.memory_space<vmem>>, vector<32x32xf32>
    %c0_139 = arith.constant 0 : index
    %c0_140 = arith.constant 0 : index
    %285 = vector.load %arg33[%c0_139, %c0_140] : memref<1x32xf32, #tpu.memory_space<vmem>>, vector<1x32xf32>
    %c0_141 = arith.constant 0 : index
    %c0_142 = arith.constant 0 : index
    %c0_143 = arith.constant 0 : index
    %286 = vector.load %arg5[%c0_141, %c0_142, %c0_143] : memref<2x12x32xf32, #tpu.memory_space<vmem>>, vector<1x12x32xf32>
    %287 = vector.shape_cast %286 : vector<1x12x32xf32> to vector<12x32xf32>
    %c0_144 = arith.constant 0 : index
    %c0_145 = arith.constant 0 : index
    %c0_146 = arith.constant 0 : index
    %288 = vector.load %arg6[%c0_144, %c0_145, %c0_146] : memref<2x12x32xf32, #tpu.memory_space<vmem>>, vector<1x12x32xf32>
    %289 = vector.shape_cast %288 : vector<1x12x32xf32> to vector<12x32xf32>
    %290 = vector.extract_strided_slice %283 {offsets = [0, 0], sizes = [1, 12], strides = [1, 1]} : vector<2x12xf32> to vector<1x12xf32>
    %291 = vector.extract_strided_slice %282 {offsets = [0, 0], sizes = [1, 16], strides = [1, 1]} : vector<2x32xf32> to vector<1x16xf32>
    %292 = vector.extract_strided_slice %287 {offsets = [0, 0], sizes = [12, 16], strides = [1, 1]} : vector<12x32xf32> to vector<12x16xf32>
    %cst_147 = arith.constant dense<0.000000e+00> : vector<1x12xf32>
    %293 = tpu.matmul %291, %292, %cst_147 {dimension_numbers = #tpu.dot_dimension_numbers<[1], [1], [0], [0], [0, 0, 1, 0], [], []>} : vector<1x16xf32>, vector<12x16xf32>, vector<1x12xf32> -> vector<1x12xf32>
    %cst_148 = arith.constant 2.500000e-01 : f32
    %294 = vector.broadcast %cst_148 : f32 to vector<1x12xf32>
    %295 = arith.mulf %293, %294 : vector<1x12xf32>
    %296 = arith.addf %295, %290 : vector<1x12xf32>
    %cst_149 = arith.constant dense<0xFF800000> : vector<1xf32>
    %297 = vector.multi_reduction <maximumf>, %296, %cst_149 [1] : vector<1x12xf32> to vector<1xf32>
    %298 = vector.shape_cast %297 : vector<1xf32> to vector<1x1xf32>
    %299 = vector.broadcast %298 : vector<1x1xf32> to vector<1x12xf32>
    %300 = arith.subf %296, %299 : vector<1x12xf32>
    %301 = math.exp %300 : vector<1x12xf32>
    %cst_150 = arith.constant dense<0.000000e+00> : vector<1xf32>
    %302 = vector.multi_reduction <add>, %301, %cst_150 [1] : vector<1x12xf32> to vector<1xf32>
    %303 = vector.shape_cast %302 : vector<1xf32> to vector<1x1xf32>
    %304 = vector.broadcast %303 : vector<1x1xf32> to vector<1x12xf32>
    %305 = arith.divf %301, %304 : vector<1x12xf32>
    %306 = vector.extract_strided_slice %289 {offsets = [0, 0], sizes = [12, 16], strides = [1, 1]} : vector<12x32xf32> to vector<12x16xf32>
    %cst_151 = arith.constant dense<0.000000e+00> : vector<1x16xf32>
    %307 = tpu.matmul %305, %306, %cst_151 {dimension_numbers = #tpu.dot_dimension_numbers<[1], [0], [0], [1], [0, 0, 1, 1], [], []>} : vector<1x12xf32>, vector<12x16xf32>, vector<1x16xf32> -> vector<1x16xf32>
    %308 = vector.extract_strided_slice %284 {offsets = [0, 0], sizes = [16, 32], strides = [1, 1]} : vector<32x32xf32> to vector<16x32xf32>
    %cst_152 = arith.constant dense<0.000000e+00> : vector<1x32xf32>
    %309 = tpu.matmul %307, %308, %cst_152 {dimension_numbers = #tpu.dot_dimension_numbers<[1], [0], [0], [1], [0, 0, 1, 1], [], []>} : vector<1x16xf32>, vector<16x32xf32>, vector<1x32xf32> -> vector<1x32xf32>
    %310 = vector.extract_strided_slice %282 {offsets = [0, 16], sizes = [1, 16], strides = [1, 1]} : vector<2x32xf32> to vector<1x16xf32>
    %311 = vector.extract_strided_slice %287 {offsets = [0, 16], sizes = [12, 16], strides = [1, 1]} : vector<12x32xf32> to vector<12x16xf32>
    %cst_153 = arith.constant dense<0.000000e+00> : vector<1x12xf32>
    %312 = tpu.matmul %310, %311, %cst_153 {dimension_numbers = #tpu.dot_dimension_numbers<[1], [1], [0], [0], [0, 0, 1, 0], [], []>} : vector<1x16xf32>, vector<12x16xf32>, vector<1x12xf32> -> vector<1x12xf32>
    %cst_154 = arith.constant 2.500000e-01 : f32
    %313 = vector.broadcast %cst_154 : f32 to vector<1x12xf32>
    %314 = arith.mulf %312, %313 : vector<1x12xf32>
    %315 = arith.addf %314, %290 : vector<1x12xf32>
    %cst_155 = arith.constant dense<0xFF800000> : vector<1xf32>
    %316 = vector.multi_reduction <maximumf>, %315, %cst_155 [1] : vector<1x12xf32> to vector<1xf32>
    %317 = vector.shape_cast %316 : vector<1xf32> to vector<1x1xf32>
    %318 = vector.broadcast %317 : vector<1x1xf32> to vector<1x12xf32>
    %319 = arith.subf %315, %318 : vector<1x12xf32>
    %320 = math.exp %319 : vector<1x12xf32>
    %cst_156 = arith.constant dense<0.000000e+00> : vector<1xf32>
    %321 = vector.multi_reduction <add>, %320, %cst_156 [1] : vector<1x12xf32> to vector<1xf32>
    %322 = vector.shape_cast %321 : vector<1xf32> to vector<1x1xf32>
    %323 = vector.broadcast %322 : vector<1x1xf32> to vector<1x12xf32>
    %324 = arith.divf %320, %323 : vector<1x12xf32>
    %325 = vector.extract_strided_slice %289 {offsets = [0, 16], sizes = [12, 16], strides = [1, 1]} : vector<12x32xf32> to vector<12x16xf32>
    %cst_157 = arith.constant dense<0.000000e+00> : vector<1x16xf32>
    %326 = tpu.matmul %324, %325, %cst_157 {dimension_numbers = #tpu.dot_dimension_numbers<[1], [0], [0], [1], [0, 0, 1, 1], [], []>} : vector<1x12xf32>, vector<12x16xf32>, vector<1x16xf32> -> vector<1x16xf32>
    %327 = vector.extract_strided_slice %284 {offsets = [16, 0], sizes = [16, 32], strides = [1, 1]} : vector<32x32xf32> to vector<16x32xf32>
    %cst_158 = arith.constant dense<0.000000e+00> : vector<1x32xf32>
    %328 = tpu.matmul %326, %327, %cst_158 {dimension_numbers = #tpu.dot_dimension_numbers<[1], [0], [0], [1], [0, 0, 1, 1], [], []>} : vector<1x16xf32>, vector<16x32xf32>, vector<1x32xf32> -> vector<1x32xf32>
    %329 = arith.addf %309, %328 : vector<1x32xf32>
    %c1_159 = arith.constant 1 : index
    %c0_160 = arith.constant 0 : index
    %c0_161 = arith.constant 0 : index
    %330 = vector.load %arg5[%c1_159, %c0_160, %c0_161] : memref<2x12x32xf32, #tpu.memory_space<vmem>>, vector<1x12x32xf32>
    %331 = vector.shape_cast %330 : vector<1x12x32xf32> to vector<12x32xf32>
    %c1_162 = arith.constant 1 : index
    %c0_163 = arith.constant 0 : index
    %c0_164 = arith.constant 0 : index
    %332 = vector.load %arg6[%c1_162, %c0_163, %c0_164] : memref<2x12x32xf32, #tpu.memory_space<vmem>>, vector<1x12x32xf32>
    %333 = vector.shape_cast %332 : vector<1x12x32xf32> to vector<12x32xf32>
    %334 = vector.extract_strided_slice %283 {offsets = [1, 0], sizes = [1, 12], strides = [1, 1]} : vector<2x12xf32> to vector<1x12xf32>
    %335 = vector.extract_strided_slice %282 {offsets = [1, 0], sizes = [1, 16], strides = [1, 1]} : vector<2x32xf32> to vector<1x16xf32>
    %336 = vector.extract_strided_slice %331 {offsets = [0, 0], sizes = [12, 16], strides = [1, 1]} : vector<12x32xf32> to vector<12x16xf32>
    %cst_165 = arith.constant dense<0.000000e+00> : vector<1x12xf32>
    %337 = tpu.matmul %335, %336, %cst_165 {dimension_numbers = #tpu.dot_dimension_numbers<[1], [1], [0], [0], [0, 0, 1, 0], [], []>} : vector<1x16xf32>, vector<12x16xf32>, vector<1x12xf32> -> vector<1x12xf32>
    %cst_166 = arith.constant 2.500000e-01 : f32
    %338 = vector.broadcast %cst_166 : f32 to vector<1x12xf32>
    %339 = arith.mulf %337, %338 : vector<1x12xf32>
    %340 = arith.addf %339, %334 : vector<1x12xf32>
    %cst_167 = arith.constant dense<0xFF800000> : vector<1xf32>
    %341 = vector.multi_reduction <maximumf>, %340, %cst_167 [1] : vector<1x12xf32> to vector<1xf32>
    %342 = vector.shape_cast %341 : vector<1xf32> to vector<1x1xf32>
    %343 = vector.broadcast %342 : vector<1x1xf32> to vector<1x12xf32>
    %344 = arith.subf %340, %343 : vector<1x12xf32>
    %345 = math.exp %344 : vector<1x12xf32>
    %cst_168 = arith.constant dense<0.000000e+00> : vector<1xf32>
    %346 = vector.multi_reduction <add>, %345, %cst_168 [1] : vector<1x12xf32> to vector<1xf32>
    %347 = vector.shape_cast %346 : vector<1xf32> to vector<1x1xf32>
    %348 = vector.broadcast %347 : vector<1x1xf32> to vector<1x12xf32>
    %349 = arith.divf %345, %348 : vector<1x12xf32>
    %350 = vector.extract_strided_slice %333 {offsets = [0, 0], sizes = [12, 16], strides = [1, 1]} : vector<12x32xf32> to vector<12x16xf32>
    %cst_169 = arith.constant dense<0.000000e+00> : vector<1x16xf32>
    %351 = tpu.matmul %349, %350, %cst_169 {dimension_numbers = #tpu.dot_dimension_numbers<[1], [0], [0], [1], [0, 0, 1, 1], [], []>} : vector<1x12xf32>, vector<12x16xf32>, vector<1x16xf32> -> vector<1x16xf32>
    %352 = vector.extract_strided_slice %284 {offsets = [0, 0], sizes = [16, 32], strides = [1, 1]} : vector<32x32xf32> to vector<16x32xf32>
    %cst_170 = arith.constant dense<0.000000e+00> : vector<1x32xf32>
    %353 = tpu.matmul %351, %352, %cst_170 {dimension_numbers = #tpu.dot_dimension_numbers<[1], [0], [0], [1], [0, 0, 1, 1], [], []>} : vector<1x16xf32>, vector<16x32xf32>, vector<1x32xf32> -> vector<1x32xf32>
    %354 = vector.extract_strided_slice %282 {offsets = [1, 16], sizes = [1, 16], strides = [1, 1]} : vector<2x32xf32> to vector<1x16xf32>
    %355 = vector.extract_strided_slice %331 {offsets = [0, 16], sizes = [12, 16], strides = [1, 1]} : vector<12x32xf32> to vector<12x16xf32>
    %cst_171 = arith.constant dense<0.000000e+00> : vector<1x12xf32>
    %356 = tpu.matmul %354, %355, %cst_171 {dimension_numbers = #tpu.dot_dimension_numbers<[1], [1], [0], [0], [0, 0, 1, 0], [], []>} : vector<1x16xf32>, vector<12x16xf32>, vector<1x12xf32> -> vector<1x12xf32>
    %cst_172 = arith.constant 2.500000e-01 : f32
    %357 = vector.broadcast %cst_172 : f32 to vector<1x12xf32>
    %358 = arith.mulf %356, %357 : vector<1x12xf32>
    %359 = arith.addf %358, %334 : vector<1x12xf32>
    %cst_173 = arith.constant dense<0xFF800000> : vector<1xf32>
    %360 = vector.multi_reduction <maximumf>, %359, %cst_173 [1] : vector<1x12xf32> to vector<1xf32>
    %361 = vector.shape_cast %360 : vector<1xf32> to vector<1x1xf32>
    %362 = vector.broadcast %361 : vector<1x1xf32> to vector<1x12xf32>
    %363 = arith.subf %359, %362 : vector<1x12xf32>
    %364 = math.exp %363 : vector<1x12xf32>
    %cst_174 = arith.constant dense<0.000000e+00> : vector<1xf32>
    %365 = vector.multi_reduction <add>, %364, %cst_174 [1] : vector<1x12xf32> to vector<1xf32>
    %366 = vector.shape_cast %365 : vector<1xf32> to vector<1x1xf32>
    %367 = vector.broadcast %366 : vector<1x1xf32> to vector<1x12xf32>
    %368 = arith.divf %364, %367 : vector<1x12xf32>
    %369 = vector.extract_strided_slice %333 {offsets = [0, 16], sizes = [12, 16], strides = [1, 1]} : vector<12x32xf32> to vector<12x16xf32>
    %cst_175 = arith.constant dense<0.000000e+00> : vector<1x16xf32>
    %370 = tpu.matmul %368, %369, %cst_175 {dimension_numbers = #tpu.dot_dimension_numbers<[1], [0], [0], [1], [0, 0, 1, 1], [], []>} : vector<1x12xf32>, vector<12x16xf32>, vector<1x16xf32> -> vector<1x16xf32>
    %371 = vector.extract_strided_slice %284 {offsets = [16, 0], sizes = [16, 32], strides = [1, 1]} : vector<32x32xf32> to vector<16x32xf32>
    %cst_176 = arith.constant dense<0.000000e+00> : vector<1x32xf32>
    %372 = tpu.matmul %370, %371, %cst_176 {dimension_numbers = #tpu.dot_dimension_numbers<[1], [0], [0], [1], [0, 0, 1, 1], [], []>} : vector<1x16xf32>, vector<16x32xf32>, vector<1x32xf32> -> vector<1x32xf32>
    %373 = arith.addf %353, %372 : vector<1x32xf32>
    %374 = tpu.concatenate %329, %373 in 0 : vector<1x32xf32>, vector<1x32xf32> -> vector<2x32xf32>
    %375 = vector.broadcast %285 : vector<1x32xf32> to vector<2x32xf32>
    %376 = arith.addf %374, %375 : vector<2x32xf32>
    %377 = arith.addf %376, %185 : vector<2x32xf32>
    %c0_177 = arith.constant 0 : index
    %c0_178 = arith.constant 0 : index
    %378 = vector.load %arg34[%c0_177, %c0_178] : memref<64x32xf32, #tpu.memory_space<vmem>>, vector<32x32xf32>
    %cst_179 = arith.constant dense<0.000000e+00> : vector<2x32xf32>
    %379 = tpu.matmul %377, %378, %cst_179 {dimension_numbers = #tpu.dot_dimension_numbers<[1], [0], [0], [1], [0, 0, 1, 1], [], []>} : vector<2x32xf32>, vector<32x32xf32>, vector<2x32xf32> -> vector<2x32xf32>
    %c32 = arith.constant 32 : index
    %c0_180 = arith.constant 0 : index
    %380 = vector.load %arg34[%c32, %c0_180] : memref<64x32xf32, #tpu.memory_space<vmem>>, vector<32x32xf32>
    %cst_181 = arith.constant dense<0.000000e+00> : vector<2x32xf32>
    %381 = tpu.matmul %240, %380, %cst_181 {dimension_numbers = #tpu.dot_dimension_numbers<[1], [0], [0], [1], [0, 0, 1, 1], [], []>} : vector<2x32xf32>, vector<32x32xf32>, vector<2x32xf32> -> vector<2x32xf32>
    %382 = arith.addf %379, %381 : vector<2x32xf32>
    %c0_182 = arith.constant 0 : index
    %c0_183 = arith.constant 0 : index
    %383 = vector.load %arg35[%c0_182, %c0_183] : memref<1x32xf32, #tpu.memory_space<vmem>>, vector<1x32xf32>
    %384 = vector.broadcast %383 : vector<1x32xf32> to vector<2x32xf32>
    %385 = arith.addf %382, %384 : vector<2x32xf32>
    %cst_184 = arith.constant 0.000000e+00 : f32
    %386 = vector.broadcast %cst_184 : f32 to vector<2x32xf32>
    %387 = arith.maximumf %385, %386 : vector<2x32xf32>
    %c0_185 = arith.constant 0 : index
    %c0_186 = arith.constant 0 : index
    %388 = vector.load %arg36[%c0_185, %c0_186] : memref<64x32xf32, #tpu.memory_space<vmem>>, vector<32x32xf32>
    %cst_187 = arith.constant dense<0.000000e+00> : vector<2x32xf32>
    %389 = tpu.matmul %377, %388, %cst_187 {dimension_numbers = #tpu.dot_dimension_numbers<[1], [0], [0], [1], [0, 0, 1, 1], [], []>} : vector<2x32xf32>, vector<32x32xf32>, vector<2x32xf32> -> vector<2x32xf32>
    %c32_188 = arith.constant 32 : index
    %c0_189 = arith.constant 0 : index
    %390 = vector.load %arg36[%c32_188, %c0_189] : memref<64x32xf32, #tpu.memory_space<vmem>>, vector<32x32xf32>
    %cst_190 = arith.constant dense<0.000000e+00> : vector<2x32xf32>
    %391 = tpu.matmul %240, %390, %cst_190 {dimension_numbers = #tpu.dot_dimension_numbers<[1], [0], [0], [1], [0, 0, 1, 1], [], []>} : vector<2x32xf32>, vector<32x32xf32>, vector<2x32xf32> -> vector<2x32xf32>
    %392 = arith.addf %389, %391 : vector<2x32xf32>
    %c0_191 = arith.constant 0 : index
    %c0_192 = arith.constant 0 : index
    %393 = vector.load %arg37[%c0_191, %c0_192] : memref<1x32xf32, #tpu.memory_space<vmem>>, vector<1x32xf32>
    %394 = vector.broadcast %393 : vector<1x32xf32> to vector<2x32xf32>
    %395 = arith.addf %392, %394 : vector<2x32xf32>
    %cst_193 = arith.constant 0.000000e+00 : f32
    %396 = vector.broadcast %cst_193 : f32 to vector<2x32xf32>
    %397 = arith.maximumf %395, %396 : vector<2x32xf32>
    %c0_194 = arith.constant 0 : index
    %c0_195 = arith.constant 0 : index
    %398 = vector.load %arg38[%c0_194, %c0_195] : memref<32x32xf32, #tpu.memory_space<vmem>>, vector<32x32xf32>
    %cst_196 = arith.constant dense<0.000000e+00> : vector<2x32xf32>
    %399 = tpu.matmul %190, %398, %cst_196 {dimension_numbers = #tpu.dot_dimension_numbers<[1], [0], [0], [1], [0, 0, 1, 1], [], []>} : vector<2x32xf32>, vector<32x32xf32>, vector<2x32xf32> -> vector<2x32xf32>
    %c0_197 = arith.constant 0 : index
    %c0_198 = arith.constant 0 : index
    %400 = vector.load %arg39[%c0_197, %c0_198] : memref<1x32xf32, #tpu.memory_space<vmem>>, vector<1x32xf32>
    %401 = vector.broadcast %400 : vector<1x32xf32> to vector<2x32xf32>
    %402 = arith.addf %399, %401 : vector<2x32xf32>
    %cst_199 = arith.constant 0.000000e+00 : f32
    %403 = vector.broadcast %cst_199 : f32 to vector<2x32xf32>
    %404 = arith.maximumf %402, %403 : vector<2x32xf32>
    %c0_200 = arith.constant 0 : index
    %c0_201 = arith.constant 0 : index
    %405 = vector.load %arg40[%c0_200, %c0_201] : memref<32x32xf32, #tpu.memory_space<vmem>>, vector<32x32xf32>
    %cst_202 = arith.constant dense<0.000000e+00> : vector<2x32xf32>
    %406 = tpu.matmul %190, %405, %cst_202 {dimension_numbers = #tpu.dot_dimension_numbers<[1], [0], [0], [1], [0, 0, 1, 1], [], []>} : vector<2x32xf32>, vector<32x32xf32>, vector<2x32xf32> -> vector<2x32xf32>
    %c0_203 = arith.constant 0 : index
    %c0_204 = arith.constant 0 : index
    %407 = vector.load %arg41[%c0_203, %c0_204] : memref<1x32xf32, #tpu.memory_space<vmem>>, vector<1x32xf32>
    %408 = vector.broadcast %407 : vector<1x32xf32> to vector<2x32xf32>
    %409 = arith.addf %406, %408 : vector<2x32xf32>
    %cst_205 = arith.constant 0.000000e+00 : f32
    %410 = vector.broadcast %cst_205 : f32 to vector<2x32xf32>
    %411 = arith.maximumf %409, %410 : vector<2x32xf32>
    %412 = arith.addf %397, %411 : vector<2x32xf32>
    %413 = arith.negf %412 : vector<2x32xf32>
    %414 = math.exp %413 : vector<2x32xf32>
    %cst_206 = arith.constant 1.000000e+00 : f32
    %415 = vector.broadcast %cst_206 : f32 to vector<2x32xf32>
    %416 = arith.addf %415, %414 : vector<2x32xf32>
    %417 = arith.divf %415, %416 : vector<2x32xf32>
    %418 = arith.addf %387, %404 : vector<2x32xf32>
    %419 = arith.mulf %417, %418 : vector<2x32xf32>
    %c0_207 = arith.constant 0 : index
    %c0_208 = arith.constant 0 : index
    %420 = vector.load %arg44[%c0_207, %c0_208] : memref<2x32xf32, #tpu.memory_space<vmem>>, vector<2x32xf32>
    tpu.vector_store %arg44[%c0_207, %c0_208], %169 {strides = array<i32>} : memref<2x32xf32, #tpu.memory_space<vmem>>, vector<2x32xf32>,
    %c0_209 = arith.constant 0 : index
    %c0_210 = arith.constant 0 : index
    %421 = vector.load %arg45[%c0_209, %c0_210] : memref<2x32xf32, #tpu.memory_space<vmem>>, vector<2x32xf32>
    tpu.vector_store %arg45[%c0_209, %c0_210], %277 {strides = array<i32>} : memref<2x32xf32, #tpu.memory_space<vmem>>, vector<2x32xf32>,
    %c0_211 = arith.constant 0 : index
    %c0_212 = arith.constant 0 : index
    %422 = vector.load %arg46[%c0_211, %c0_212] : memref<2x32xf32, #tpu.memory_space<vmem>>, vector<2x32xf32>
    tpu.vector_store %arg46[%c0_211, %c0_212], %419 {strides = array<i32>} : memref<2x32xf32, #tpu.memory_space<vmem>>, vector<2x32xf32>,
    %c0_213 = arith.constant 0 : index
    %c0_214 = arith.constant 0 : index
    %423 = vector.load %arg47[%c0_213, %c0_214] : memref<2x32xf32, #tpu.memory_space<vmem>>, vector<2x32xf32>
    tpu.vector_store %arg47[%c0_213, %c0_214], %167 {strides = array<i32>} : memref<2x32xf32, #tpu.memory_space<vmem>>, vector<2x32xf32>,
    %c0_215 = arith.constant 0 : index
    %c0_216 = arith.constant 0 : index
    %424 = vector.load %arg48[%c0_215, %c0_216] : memref<2x32xf32, #tpu.memory_space<vmem>>, vector<2x32xf32>
    tpu.vector_store %arg48[%c0_215, %c0_216], %275 {strides = array<i32>} : memref<2x32xf32, #tpu.memory_space<vmem>>, vector<2x32xf32>,
    %c0_217 = arith.constant 0 : index
    %c0_218 = arith.constant 0 : index
    %c0_219 = arith.constant 0 : index
    %425 = vector.load %arg42[%c0_217, %c0_218, %c0_219] : memref<1x2x32xf32, #tpu.memory_space<vmem>>, vector<1x2x32xf32>
    %426 = vector.shape_cast %425 : vector<1x2x32xf32> to vector<2x32xf32>
    %427 = vector.shape_cast %277 : vector<2x32xf32> to vector<1x2x32xf32>
    tpu.vector_store %arg42[%c0_217, %c0_218, %c0_219], %427 {strides = array<i32>} : memref<1x2x32xf32, #tpu.memory_space<vmem>>, vector<1x2x32xf32>,
    %c0_220 = arith.constant 0 : index
    %c0_221 = arith.constant 0 : index
    %c0_222 = arith.constant 0 : index
    %428 = vector.load %arg43[%c0_220, %c0_221, %c0_222] : memref<1x2x32xf32, #tpu.memory_space<vmem>>, vector<1x2x32xf32>
    %429 = vector.shape_cast %428 : vector<1x2x32xf32> to vector<2x32xf32>
    %430 = vector.shape_cast %419 : vector<2x32xf32> to vector<1x2x32xf32>
    tpu.vector_store %arg43[%c0_220, %c0_221, %c0_222], %430 {strides = array<i32>} : memref<1x2x32xf32, #tpu.memory_space<vmem>>, vector<1x2x32xf32>,
    return
  }
  func.func @transform_0(%arg0: i32) -> (i32, i32, i32) {
    %c0_i32 = arith.constant 0 : i32
    %c0_i32_0 = arith.constant 0 : i32
    %c0_i32_1 = arith.constant 0 : i32
    return %arg0, %c0_i32, %c0_i32_0 : i32, i32, i32
  }
  func.func @transform_1(%arg0: i32) -> (i32, i32) {
    %c0_i32 = arith.constant 0 : i32
    %c0_i32_0 = arith.constant 0 : i32
    %c0_i32_1 = arith.constant 0 : i32
    return %c0_i32, %c0_i32_0 : i32, i32
  }
  func.func @transform_2(%arg0: i32) -> (i32, i32, i32) {
    %c0_i32 = arith.constant 0 : i32
    %c0_i32_0 = arith.constant 0 : i32
    %c0_i32_1 = arith.constant 0 : i32
    %c0_i32_2 = arith.constant 0 : i32
    return %c0_i32, %c0_i32_0, %c0_i32_1 : i32, i32, i32
  }
  func.func @transform_3(%arg0: i32) -> (i32, i32, i32) {
    %c0_i32 = arith.constant 0 : i32
    %c0_i32_0 = arith.constant 0 : i32
    %c0_i32_1 = arith.constant 0 : i32
    %c0_i32_2 = arith.constant 0 : i32
    return %c0_i32, %c0_i32_0, %c0_i32_1 : i32, i32, i32
  }
  func.func @transform_4(%arg0: i32) -> (i32, i32, i32) {
    %c0_i32 = arith.constant 0 : i32
    %c0_i32_0 = arith.constant 0 : i32
    %c0_i32_1 = arith.constant 0 : i32
    %c0_i32_2 = arith.constant 0 : i32
    return %c0_i32, %c0_i32_0, %c0_i32_1 : i32, i32, i32
  }
  func.func @transform_5(%arg0: i32) -> (i32, i32, i32) {
    %c0_i32 = arith.constant 0 : i32
    %c0_i32_0 = arith.constant 0 : i32
    %c0_i32_1 = arith.constant 0 : i32
    %c0_i32_2 = arith.constant 0 : i32
    return %c0_i32, %c0_i32_0, %c0_i32_1 : i32, i32, i32
  }
  func.func @transform_6(%arg0: i32) -> (i32, i32, i32) {
    %c0_i32 = arith.constant 0 : i32
    %c0_i32_0 = arith.constant 0 : i32
    %c0_i32_1 = arith.constant 0 : i32
    %c0_i32_2 = arith.constant 0 : i32
    return %c0_i32, %c0_i32_0, %c0_i32_1 : i32, i32, i32
  }
  func.func @transform_7(%arg0: i32) -> (i32, i32, i32) {
    %c0_i32 = arith.constant 0 : i32
    %c0_i32_0 = arith.constant 0 : i32
    %c0_i32_1 = arith.constant 0 : i32
    %c0_i32_2 = arith.constant 0 : i32
    return %c0_i32, %c0_i32_0, %c0_i32_1 : i32, i32, i32
  }
  func.func @transform_8(%arg0: i32) -> (i32, i32) {
    %c0_i32 = arith.constant 0 : i32
    %c0_i32_0 = arith.constant 0 : i32
    %c0_i32_1 = arith.constant 0 : i32
    return %c0_i32, %c0_i32_0 : i32, i32
  }
  func.func @transform_9(%arg0: i32) -> (i32, i32) {
    %c0_i32 = arith.constant 0 : i32
    %c0_i32_0 = arith.constant 0 : i32
    %c0_i32_1 = arith.constant 0 : i32
    return %c0_i32, %c0_i32_0 : i32, i32
  }
  func.func @transform_10(%arg0: i32) -> (i32, i32) {
    %c0_i32 = arith.constant 0 : i32
    %c0_i32_0 = arith.constant 0 : i32
    %c0_i32_1 = arith.constant 0 : i32
    return %c0_i32, %c0_i32_0 : i32, i32
  }
  func.func @transform_11(%arg0: i32) -> (i32, i32) {
    %c0_i32 = arith.constant 0 : i32
    %c0_i32_0 = arith.constant 0 : i32
    %c0_i32_1 = arith.constant 0 : i32
    return %c0_i32, %c0_i32_0 : i32, i32
  }
  func.func @transform_12(%arg0: i32) -> (i32, i32) {
    %c0_i32 = arith.constant 0 : i32
    %c0_i32_0 = arith.constant 0 : i32
    %c0_i32_1 = arith.constant 0 : i32
    return %c0_i32, %c0_i32_0 : i32, i32
  }
  func.func @transform_13(%arg0: i32) -> (i32, i32) {
    %c0_i32 = arith.constant 0 : i32
    %c0_i32_0 = arith.constant 0 : i32
    %c0_i32_1 = arith.constant 0 : i32
    return %c0_i32, %c0_i32_0 : i32, i32
  }
  func.func @transform_14(%arg0: i32) -> (i32, i32) {
    %c0_i32 = arith.constant 0 : i32
    %c0_i32_0 = arith.constant 0 : i32
    %c0_i32_1 = arith.constant 0 : i32
    return %c0_i32, %c0_i32_0 : i32, i32
  }
  func.func @transform_15(%arg0: i32) -> (i32, i32) {
    %c0_i32 = arith.constant 0 : i32
    %c0_i32_0 = arith.constant 0 : i32
    %c0_i32_1 = arith.constant 0 : i32
    return %c0_i32, %c0_i32_0 : i32, i32
  }
  func.func @transform_16(%arg0: i32) -> (i32, i32) {
    %c0_i32 = arith.constant 0 : i32
    %c0_i32_0 = arith.constant 0 : i32
    %c0_i32_1 = arith.constant 0 : i32
    return %c0_i32, %c0_i32_0 : i32, i32
  }
  func.func @transform_17(%arg0: i32) -> (i32, i32) {
    %c0_i32 = arith.constant 0 : i32
    %c0_i32_0 = arith.constant 0 : i32
    %c0_i32_1 = arith.constant 0 : i32
    return %c0_i32, %c0_i32_0 : i32, i32
  }
  func.func @transform_18(%arg0: i32) -> (i32, i32) {
    %c0_i32 = arith.constant 0 : i32
    %c0_i32_0 = arith.constant 0 : i32
    %c0_i32_1 = arith.constant 0 : i32
    return %c0_i32, %c0_i32_0 : i32, i32
  }
  func.func @transform_19(%arg0: i32) -> (i32, i32) {
    %c0_i32 = arith.constant 0 : i32
    %c0_i32_0 = arith.constant 0 : i32
    %c0_i32_1 = arith.constant 0 : i32
    return %c0_i32, %c0_i32_0 : i32, i32
  }
  func.func @transform_20(%arg0: i32) -> (i32, i32) {
    %c0_i32 = arith.constant 0 : i32
    %c0_i32_0 = arith.constant 0 : i32
    %c0_i32_1 = arith.constant 0 : i32
    return %c0_i32, %c0_i32_0 : i32, i32
  }
  func.func @transform_21(%arg0: i32) -> (i32, i32) {
    %c0_i32 = arith.constant 0 : i32
    %c0_i32_0 = arith.constant 0 : i32
    %c0_i32_1 = arith.constant 0 : i32
    return %c0_i32, %c0_i32_0 : i32, i32
  }
  func.func @transform_22(%arg0: i32) -> (i32, i32) {
    %c0_i32 = arith.constant 0 : i32
    %c0_i32_0 = arith.constant 0 : i32
    %c0_i32_1 = arith.constant 0 : i32
    return %c0_i32, %c0_i32_0 : i32, i32
  }
  func.func @transform_23(%arg0: i32) -> (i32, i32) {
    %c0_i32 = arith.constant 0 : i32
    %c0_i32_0 = arith.constant 0 : i32
    %c0_i32_1 = arith.constant 0 : i32
    return %c0_i32, %c0_i32_0 : i32, i32
  }
  func.func @transform_24(%arg0: i32) -> (i32, i32) {
    %c0_i32 = arith.constant 0 : i32
    %c0_i32_0 = arith.constant 0 : i32
    %c0_i32_1 = arith.constant 0 : i32
    return %c0_i32, %c0_i32_0 : i32, i32
  }
  func.func @transform_25(%arg0: i32) -> (i32, i32) {
    %c0_i32 = arith.constant 0 : i32
    %c0_i32_0 = arith.constant 0 : i32
    %c0_i32_1 = arith.constant 0 : i32
    return %c0_i32, %c0_i32_0 : i32, i32
  }
  func.func @transform_26(%arg0: i32) -> (i32, i32) {
    %c0_i32 = arith.constant 0 : i32
    %c0_i32_0 = arith.constant 0 : i32
    %c0_i32_1 = arith.constant 0 : i32
    return %c0_i32, %c0_i32_0 : i32, i32
  }
  func.func @transform_27(%arg0: i32) -> (i32, i32) {
    %c0_i32 = arith.constant 0 : i32
    %c0_i32_0 = arith.constant 0 : i32
    %c0_i32_1 = arith.constant 0 : i32
    return %c0_i32, %c0_i32_0 : i32, i32
  }
  func.func @transform_28(%arg0: i32) -> (i32, i32) {
    %c0_i32 = arith.constant 0 : i32
    %c0_i32_0 = arith.constant 0 : i32
    %c0_i32_1 = arith.constant 0 : i32
    return %c0_i32, %c0_i32_0 : i32, i32
  }
  func.func @transform_29(%arg0: i32) -> (i32, i32) {
    %c0_i32 = arith.constant 0 : i32
    %c0_i32_0 = arith.constant 0 : i32
    %c0_i32_1 = arith.constant 0 : i32
    return %c0_i32, %c0_i32_0 : i32, i32
  }
  func.func @transform_30(%arg0: i32) -> (i32, i32) {
    %c0_i32 = arith.constant 0 : i32
    %c0_i32_0 = arith.constant 0 : i32
    %c0_i32_1 = arith.constant 0 : i32
    return %c0_i32, %c0_i32_0 : i32, i32
  }
  func.func @transform_31(%arg0: i32) -> (i32, i32) {
    %c0_i32 = arith.constant 0 : i32
    %c0_i32_0 = arith.constant 0 : i32
    %c0_i32_1 = arith.constant 0 : i32
    return %c0_i32, %c0_i32_0 : i32, i32
  }
  func.func @transform_32(%arg0: i32) -> (i32, i32) {
    %c0_i32 = arith.constant 0 : i32
    %c0_i32_0 = arith.constant 0 : i32
    %c0_i32_1 = arith.constant 0 : i32
    return %c0_i32, %c0_i32_0 : i32, i32
  }
  func.func @transform_33(%arg0: i32) -> (i32, i32) {
    %c0_i32 = arith.constant 0 : i32
    %c0_i32_0 = arith.constant 0 : i32
    %c0_i32_1 = arith.constant 0 : i32
    return %c0_i32, %c0_i32_0 : i32, i32
  }
  func.func @transform_34(%arg0: i32) -> (i32, i32) {
    %c0_i32 = arith.constant 0 : i32
    %c0_i32_0 = arith.constant 0 : i32
    %c0_i32_1 = arith.constant 0 : i32
    return %c0_i32, %c0_i32_0 : i32, i32
  }
  func.func @transform_35(%arg0: i32) -> (i32, i32) {
    %c0_i32 = arith.constant 0 : i32
    %c0_i32_0 = arith.constant 0 : i32
    %c0_i32_1 = arith.constant 0 : i32
    return %c0_i32, %c0_i32_0 : i32, i32
  }
  func.func @transform_36(%arg0: i32) -> (i32, i32) {
    %c0_i32 = arith.constant 0 : i32
    %c0_i32_0 = arith.constant 0 : i32
    %c0_i32_1 = arith.constant 0 : i32
    return %c0_i32, %c0_i32_0 : i32, i32
  }
  func.func @transform_37(%arg0: i32) -> (i32, i32) {
    %c0_i32 = arith.constant 0 : i32
    %c0_i32_0 = arith.constant 0 : i32
    %c0_i32_1 = arith.constant 0 : i32
    return %c0_i32, %c0_i32_0 : i32, i32
  }
  func.func @transform_38(%arg0: i32) -> (i32, i32) {
    %c0_i32 = arith.constant 0 : i32
    %c0_i32_0 = arith.constant 0 : i32
    %c0_i32_1 = arith.constant 0 : i32
    return %c0_i32, %c0_i32_0 : i32, i32
  }
  func.func @transform_39(%arg0: i32) -> (i32, i32) {
    %c0_i32 = arith.constant 0 : i32
    %c0_i32_0 = arith.constant 0 : i32
    %c0_i32_1 = arith.constant 0 : i32
    return %c0_i32, %c0_i32_0 : i32, i32
  }
  func.func @transform_40(%arg0: i32) -> (i32, i32) {
    %c0_i32 = arith.constant 0 : i32
    %c0_i32_0 = arith.constant 0 : i32
    %c0_i32_1 = arith.constant 0 : i32
    return %c0_i32, %c0_i32_0 : i32, i32
  }
  func.func @transform_41(%arg0: i32) -> (i32, i32, i32) {
    %c0_i32 = arith.constant 0 : i32
    %c0_i32_0 = arith.constant 0 : i32
    %c0_i32_1 = arith.constant 0 : i32
    return %arg0, %c0_i32, %c0_i32_0 : i32, i32, i32
  }
  func.func @transform_42(%arg0: i32) -> (i32, i32, i32) {
    %c0_i32 = arith.constant 0 : i32
    %c0_i32_0 = arith.constant 0 : i32
    %c0_i32_1 = arith.constant 0 : i32
    return %arg0, %c0_i32, %c0_i32_0 : i32, i32, i32
  }
}

</mosaic_0001>

<bundles_post_ra>
// kernel: parallel_decoder_forward.5
= control target key start
LH: loop header
LB: loop body
LE: loop exit
PB: predicated region body
PF: predicated region fallthrough
CT: control target
= control target key end

     0   :  { %vm23_vm0 = vcmask 523264   ;;  %vm56_vm1 = vcmask 517120   ;;  %s182_s1 = inlined_call_operand.vmem [shape: f32[64,64], index: 1, kind: input, shape index: {}]   ;;  %s183_s0 = inlined_call_operand.vmem [shape: f32[10,64], index: 0, kind: input, shape index: {}]   ;;  %s184_s2 = inlined_call_operand.vmem [shape: f32[10,64], index: 2, kind: output, shape index: {0}]   ;;  %s185_s3 = inlined_call_operand.vmem [shape: f32[10,64], index: 3, kind: output, shape index: {1}]  }
   0x1   :  { %v22_v0 = vld [vmem:[%s182_s1 + $0x38] sm:$0xff]  ;;  %v21_v1 = vld [vmem:[%s182_s1 + $0x30] sm:$0xff]  ;;  %v20_v2 = vld [vmem:[%s182_s1 + $0x28] sm:$0xff] }
   0x2   :  { %38 = vmatpush.msra.mxu0 %v22_v0  ;;  %94 = vmatpush.msra.mxu1 %v22_v0  ;;  %v19_v3 = vld [vmem:[%s182_s1 + $0x20] sm:$0xff]  ;;  %v18_v4 = vld [vmem:[%s182_s1 + $0x18] sm:$0xff]  ;;  %v17_v5 = vld [vmem:[%s182_s1 + $0x10] sm:$0xff] }
   0x3   :  { %v16_v6 = vld [vmem:[%s182_s1 + $0x8] sm:$0xff]  ;;  %v15_v7 = vld [vmem:[%s182_s1] sm:$0xff] }
   0x4   :  { %39 = vmatpush.msra.mxu0 %v21_v1  ;;  %95 = vmatpush.msra.mxu1 %v21_v1  ;;  %v13_v8 = vld [vmem:[%s183_s0] sm:$0xff]  ;;  %v14_v9 = vld [vmem:[%s183_s0 + $0x8] sm:$0x3] }
   0x6   :  { %40 = vmatpush.msra.mxu0 %v20_v2  ;;  %96 = vmatpush.msra.mxu1 %v20_v2 }
   0x8   :  { %41 = vmatpush.msra.mxu0 %v19_v3  ;;  %97 = vmatpush.msra.mxu1 %v19_v3 }
   0xa   :  { %42 = vmatpush.msra.mxu0 %v18_v4  ;;  %98 = vmatpush.msra.mxu1 %v18_v4 }
   0xc   :  { %43 = vmatpush.msra.mxu0 %v17_v5  ;;  %99 = vmatpush.msra.mxu1 %v17_v5 }
   0xe   :  { %44 = vmatpush.msra.mxu0 %v16_v6  ;;  %100 = vmatpush.msra.mxu1 %v16_v6 }
  0x10   :  { %45 = vmatpush.msra.mxu0 %v15_v7  ;;  %101 = vmatpush.msra.mxu1 %v15_v7 }
  0x11   :  { %92 = vmatmul.msk.f32.vlgmr.msra.gmra.mxu0 %vm23_vm0, %v13_v8  ;;  %93 = vmatmul.msk.f32.vlgmr.msra.gmra.mxu1 %vm23_vm0, %v14_v9 }
  0x8e   :  { %v47_v10 = vpop.f32.mrf.mxu0  ;;  %v50_v11 = vpop.f32.mrf.mxu1 }
  0x8f   :  { %v53_v12 = vmax.f32 %v47_v10, 0.0  ;;  %v54_v13 = vmax.f32 %v50_v11, 0.0 }
  0x91   :  { %55 = vst.msk [vmem:[%s184_s2] sm:$0xff] %vm23_vm0, %v53_v12  ;;  %v58_v14 = vsel %vm23_vm0, %v53_v12, -inf  ;;  %v61_v15 = vsel %vm56_vm1, %v54_v13, -inf }
  0x92   :  { %59 = vmax.xlane.f32.xlu0 %v58_v14  ;;  %57 = vst.msk [vmem:[%s184_s2 + $0x8] sm:$0x3] %vm56_vm1, %v54_v13 }
  0x9a   :  { %62 = vmax.xlane.f32.xlu0 %v61_v15 }
 0x105   :  { %v60_v16 = vpop.xlane.xlu0 %59 }
 0x106   :  { %v64_v17 = vsub.f32 %v53_v12, %v60_v16 }
 0x108   :  { %v66_v18 = vmul.f32 1.442695, %v64_v17 }
 0x10a   :  { %102 = vpow2.f32 %v66_v18 }
 0x10d   :  { %v63_v19 = vpop.xlane.xlu0 %62 }
 0x10e   :  { %v65_v20 = vsub.f32 %v54_v13, %v63_v19 }
 0x110   :  { %v103_v21 = vpop.eup %102  ;;  %v68_v22 = vmul.f32 1.442695, %v65_v20 }
 0x111   :  { %v70_v23 = vsel %vm23_vm0, %v103_v21, 0.0 }
 0x112   :  { %104 = vpow2.f32 %v68_v22  ;;  %71 = vadd.xlane.f32.xlu1 %v70_v23 }
 0x118   :  { %v105_v24 = vpop.eup %104 }
 0x119   :  { %v73_v25 = vsel %vm56_vm1, %v105_v24, 0.0 }
 0x11a   :  { %74 = vadd.xlane.f32.xlu1 %v73_v25 }
 0x185   :  { %v72_v26 = vpop.xlane.xlu1 %71 }
 0x186   :  { %106 = vlog2.f32 %v72_v26 }
 0x18c   :  { %v107_v27 = vpop.eup %106 }
 0x18d   :  { %v77_v28 = vmul.f32 0.6931472, %v107_v27  ;;  %v75_v29 = vpop.xlane.xlu1 %74 }
 0x18e   :  { %108 = vlog2.f32 %v75_v29 }
 0x18f   :  { %v80_v30 = vsub.f32 %v64_v17, %v77_v28 }
 0x191   :  { %82 = vst.msk [vmem:[%s185_s3] sm:$0xff] %vm23_vm0, %v80_v30 }
 0x194   :  { %v109_v31 = vpop.eup %108 }
 0x195   :  { %v79_v32 = vmul.f32 0.6931472, %v109_v31 }
 0x197   :  { %v81_v33 = vsub.f32 %v65_v20, %v79_v32 }
 0x199   :  { %83 = vst.msk [vmem:[%s185_s3 + $0x8] sm:$0x3] %vm56_vm1, %v81_v33 }

// kernel: parallel_decoder_forward.3
= control target key start
LH: loop header
LB: loop body
LE: loop exit
PB: predicated region body
PF: predicated region fallthrough
CT: control target
= control target key end

     0   :  { %s735_s0 = inlined_call_operand.vmem [shape: f32[2,32], index: 0, kind: input, shape index: {}]   ;;  %s736_s1 = inlined_call_operand.vmem [shape: f32[16,32], index: 1, kind: input, shape index: {}]   ;;  %s737_s2 = inlined_call_operand.vmem [shape: f32[16,32], index: 2, kind: input, shape index: {}]   ;;  %s738_s3 = inlined_call_operand.vmem [shape: f32[32,32], index: 3, kind: input, shape index: {}]   ;;  %s739_s4 = inlined_call_operand.vmem [shape: f32[1,32], index: 4, kind: input, shape index: {}]   ;;  %s740_s5 = inlined_call_operand.vmem [shape: f32[32,32], index: 5, kind: input, shape index: {}]   ;;  %s741_s6 = inlined_call_operand.vmem [shape: f32[1,32], index: 6, kind: input, shape index: {}]   ;;  %s742_s7 = inlined_call_operand.vmem [shape: f32[32,32], index: 7, kind: input, shape index: {}]   ;;  %s743_s8 = inlined_call_operand.vmem [shape: f32[1,32], index: 8, kind: input, shape index: {}]   ;;  %s744_s9 = inlined_call_operand.vmem [shape: f32[32,32], index: 9, kind: input, shape index: {}]   ;;  %s745_s10 = inlined_call_operand.vmem [shape: f32[1,32], index: 10, kind: input, shape index: {}]   ;;  %s746_s11 = inlined_call_operand.vmem [shape: f32[32,32], index: 11, kind: input, shape index: {}]   ;;  %s747_s12 = inlined_call_operand.vmem [shape: f32[1,32], index: 12, kind: input, shape index: {}]   ;;  %s748_s13 = inlined_call_operand.hbm [shape: f32[32,32], index: 13, kind: input, shape index: {}]   ;;  %s749_s14 = inlined_call_operand.vmem [shape: f32[1,32], index: 14, kind: input, shape index: {}]   ;;  %s750_s15 = inlined_call_operand.hbm [shape: f32[32,32], index: 15, kind: input, shape index: {}]   ;;  %s751_s16 = inlined_call_operand.vmem [shape: f32[1,32], index: 16, kind: input, shape index: {}]   ;;  %s752_s17 = inlined_call_operand.vmem [shape: f32[2,32], index: 17, kind: output, shape index: {0}]   ;;  %s753_s18 = inlined_call_operand.vmem [shape: f32[2,32], index: 18, kind: output, shape index: {1}]   ;;  %s754_s19 = inlined_call_operand.vmem [shape: f32[16,32], index: 19, kind: output, shape index: {2}]   ;;  %s755_s20 = inlined_call_operand.vmem [shape: f32[16,32], index: 20, kind: output, shape index: {3}]   ;;  %s756_s21 = inlined_call_operand.vmem [shape: f32[16,32], index: 21, kind: output, shape index: {4}]   ;;  %s757_s22 = inlined_call_operand.vmem [shape: f32[16,32], index: 22, kind: output, shape index: {5}]   ;;  %s758_s23 = inlined_call_operand.vmem [shape: f32[16,32], index: 23, kind: output, shape index: {6}]  }
   0x1   :  { %764 = sst [smem:[#allocation8_spill]] %s735_s0 }
   0x2   :  { %765 = sst [smem:[#allocation9_spill]] %s736_s1 }
   0x3   :  { %766 = sst [smem:[#allocation10_spill]] %s737_s2 }
   0x4   :  { %767 = sst [smem:[#allocation11_spill]] %s738_s3 }
   0x5   :  { %768 = sst [smem:[#allocation12_spill]] %s739_s4 }
   0x6   :  { %769 = sst [smem:[#allocation13_spill]] %s740_s5 }
   0x7   :  { %770 = sst [smem:[#allocation14_spill]] %s741_s6 }
   0x8   :  { %771 = sst [smem:[#allocation15_spill]] %s742_s7 }
   0x9   :  { %29 = vsyncpa [#allocation3], 0  ;;  %s61_s24 = sshll.u32 %s748_s13, 4  ;;  %s62_s24 = int_to_ptr.hbm [resolvable:$true] %s61_s24 }
   0xa   :  { %30 = vsyncpa [#allocation5], 0  ;;  %s451_s25 = smov [#allocation2]   ;;  %s76_s2 = sshll.u32 %s750_s15, 4  ;;  %s77_s2 = int_to_ptr.hbm [resolvable:$true] %s76_s2 }
   0xb   :  { %s63_s5 = sshll.u32 %s451_s25, 4  ;;  %s452_s6 = smov 128   ;;  %s64_s5 = int_to_ptr.vmem [resolvable:$true] %s63_s5 }
   0xc   :  { %s453_s27 = smov 8   ;;  %s454_s7 = smov [#allocation4]  }
   0xd   :  { %69 = dma.hbm_to_vmem [thread:$0]  %s62_s24, 512, %s64_s5, [#allocation3], %s452_s6, %s452_s6, %s453_s27  }
   0xe   :  { %s78_s28 = sshll.u32 %s454_s7, 4  ;;  %s79_s28 = int_to_ptr.vmem [resolvable:$true] %s78_s28 }
   0xf   :  { %84 = dma.hbm_to_vmem [thread:$0]  %s77_s2, 512, %s79_s28, [#allocation5], %s452_s6, %s452_s6, %s453_s27  }
  0x10   :  { %447 = dma.done.wait [#allocation3], 512  }
  0x11   :  { %448 = vsyncadd [#allocation3], 4294966784 }
  0x12   :  { %449 = dma.done.wait [#allocation5], 512  }
  0x13   :  { %450 = vsyncadd [#allocation5], 4294966784  ;;  %s772_s3 = sld [smem:[#allocation15_spill]]  ;;  %vm104_vm0 = vcmask 261120   ;;  %v205_v12 = vld [vmem:[%s744_s9 + $0x18] sm:$0xff]  ;;  %v204_v16 = vld [vmem:[%s744_s9 + $0x10] sm:$0xff] }
  0x14   :  { %s773_s24 = sld [smem:[#allocation11_spill]]  ;;  %v312_v13 = vld [vmem:[#allocation4 + $0x18] sm:$0xff]  ;;  %v311_v17 = vld [vmem:[#allocation4 + $0x10] sm:$0xff]  ;;  %v203_v18 = vld [vmem:[%s744_s9 + $0x8] sm:$0xff]  ;;  %vm129_vm1 = vcmask 254976  }
  0x15   :  { %s774_s1 = sld [smem:[#allocation13_spill]]  ;;  %v310_v19 = vld [vmem:[#allocation4 + $0x8] sm:$0xff]  ;;  %v202_v21 = vld [vmem:[%s744_s9] sm:$0xff]  ;;  %v238_v22 = vld [vmem:[%s746_s11 + $0x18] sm:$0xff] }
  0x16   :  { %s775_s25 = sld [smem:[#allocation9_spill]]  ;;  %v273_v23 = vld [vmem:[#allocation2 + $0x18] sm:$0xff]  ;;  %v309_v24 = vld [vmem:[#allocation4] sm:$0xff]  ;;  %v237_v25 = vld [vmem:[%s746_s11 + $0x10] sm:$0xff] }
  0x17   :  { %s776_s5 = sld [smem:[#allocation8_spill]]  ;;  %v272_v26 = vld [vmem:[#allocation2 + $0x10] sm:$0xff]  ;;  %v236_v28 = vld [vmem:[%s746_s11 + $0x8] sm:$0xff]  ;;  %v235_v30 = vld [vmem:[%s746_s11] sm:$0xff] }
  0x18   :  { %s777_s28 = sld [smem:[#allocation10_spill]]  ;;  %v271_v29 = vld [vmem:[#allocation2 + $0x8] sm:$0xff]  ;;  %v270_v31 = vld [vmem:[#allocation2] sm:$0xff] }
  0x19   :  { %v166_v0 = vld [vmem:[%s772_s3 + $0x18] sm:$0xff]  ;;  %v165_v1 = vld [vmem:[%s772_s3 + $0x10] sm:$0xff]  ;;  %v164_v4 = vld [vmem:[%s772_s3 + $0x8] sm:$0xff]  ;;  %s779_s26 = sld [smem:[#allocation14_spill]] }
  0x1a   :  { %189 = vmatpush.msra.mxu2 %v166_v0  ;;  %384 = vmatpush.msra.mxu3 %v166_v0  ;;  %v99_v2 = vld [vmem:[%s773_s24 + $0x18] sm:$0xff]  ;;  %v98_v5 = vld [vmem:[%s773_s24 + $0x10] sm:$0xff]  ;;  %v163_v7 = vld [vmem:[%s772_s3] sm:$0xff] }
  0x1b   :  { %v134_v3 = vld [vmem:[%s774_s1 + $0x18] sm:$0xff]  ;;  %120 = vmatpush.msra.mxu0 %v99_v2  ;;  %v133_v6 = vld [vmem:[%s774_s1 + $0x10] sm:$0xff]  ;;  %v97_v8 = vld [vmem:[%s773_s24 + $0x8] sm:$0xff] }
  0x1c   :  { %151 = vmatpush.msra.mxu1 %v134_v3  ;;  %190 = vmatpush.msra.mxu2 %v165_v1  ;;  %v161_v9 = vld [vmem:[%s775_s25] sm:$0xff]  ;;  %v162_v10 = vld [vmem:[%s775_s25 + $0x8] sm:$0xff]  ;;  %s778_s25 = sld [smem:[#allocation12_spill]] }
  0x1d   :  { %385 = vmatpush.msra.mxu3 %v165_v1  ;;  %121 = vmatpush.msra.mxu0 %v98_v5  ;;  %v132_v11 = vld [vmem:[%s774_s1 + $0x8] sm:$0xff]  ;;  %v96_v14 = vld [vmem:[%s773_s24] sm:$0xff] }
  0x1e   :  { %152 = vmatpush.msra.mxu1 %v133_v6  ;;  %191 = vmatpush.msra.mxu2 %v164_v4  ;;  %v131_v15 = vld [vmem:[%s774_s1] sm:$0xff]  ;;  %v269_v32 = vld [vmem:[%s777_s28 + $0x8] sm:$0xff] }
  0x1f   :  { %386 = vmatpush.msra.mxu3 %v164_v4  ;;  %122 = vmatpush.msra.mxu0 %v97_v8  ;;  %v95_v20 = vld [vmem:[%s776_s5] sm:$0x3] }
  0x20   :  { %153 = vmatpush.msra.mxu1 %v132_v11  ;;  %192 = vmatpush.msra.mxu2 %v163_v7  ;;  %v268_v27 = vld [vmem:[%s777_s28] sm:$0xff] }
  0x21   :  { %387 = vmatpush.msra.mxu3 %v163_v7  ;;  %374 = vmatmul.msk.f32.vlgmr.msra.gmra.mxu2 %vm104_vm0, %v161_v9  ;;  %v393_v34 = vld [vmem:[%s779_s26] ss:$0 sm:$0xff] }
  0x22   :  { %375 = vmatmul.msk.f32.vlgmr.msra.gmra.mxu3 %vm104_vm0, %v162_v10  ;;  %329 = vmatpush.msrb.mxu2 %v312_v13  ;;  %v392_v33 = vld [vmem:[%s778_s25] ss:$0 sm:$0xff] }
  0x23   :  { %222 = vmatpush.msrb.mxu3 %v205_v12  ;;  %123 = vmatpush.msra.mxu0 %v96_v14  ;;  %v394_v35 = vld [vmem:[%s743_s8] ss:$0 sm:$0xff] }
  0x24   :  { %154 = vmatpush.msra.mxu1 %v131_v15  ;;  %330 = vmatpush.msrb.mxu2 %v311_v17  ;;  %v396_v46 = vld [vmem:[%s747_s12] ss:$0 sm:$0xff] }
  0x25   :  { %223 = vmatpush.msrb.mxu3 %v204_v16  ;;  %372 = vmatmul.msk.f32.vlgmr.msra.gmra.mxu0 %vm104_vm0, %v95_v20  ;;  %v395_v47 = vld [vmem:[%s745_s10] ss:$0 sm:$0xff] }
  0x26   :  { %373 = vmatmul.msk.f32.vlgmr.msra.gmra.mxu1 %vm104_vm0, %v95_v20  ;;  %331 = vmatpush.msrb.mxu2 %v310_v19  ;;  %v397_v48 = vld [vmem:[%s749_s14] ss:$0 sm:$0xff] }
  0x27   :  { %224 = vmatpush.msrb.mxu3 %v203_v18  ;;  %255 = vmatpush.msrb.mxu0 %v238_v22  ;;  %v398_v49 = vld [vmem:[%s751_s16] ss:$0 sm:$0xff] }
  0x28   :  { %296 = vmatpush.msrb.mxu1 %v273_v23  ;;  %332 = vmatpush.msrb.mxu2 %v309_v24 }
  0x29   :  { %225 = vmatpush.msrb.mxu3 %v202_v21  ;;  %256 = vmatpush.msrb.mxu0 %v237_v25 }
  0x2a   :  { %376 = vmatmul.msk.f32.vlgmr.msrb.gmra.mxu3 %vm104_vm0, %v161_v9  ;;  %297 = vmatpush.msrb.mxu1 %v272_v26 }
  0x2b   :  { %382 = vmatmul.msk.f32.vlgmr.msrb.gmra.mxu2 %vm104_vm0, %v268_v27  ;;  %257 = vmatpush.msrb.mxu0 %v236_v28 }
  0x2c   :  { %298 = vmatpush.msrb.mxu1 %v271_v29 }
  0x2d   :  { %258 = vmatpush.msrb.mxu0 %v235_v30 }
  0x2e   :  { %299 = vmatpush.msrb.mxu1 %v270_v31  ;;  %378 = vmatmul.msk.f32.vlgmr.msrb.gmra.mxu0 %vm104_vm0, %v161_v9 }
  0x2f   :  { %380 = vmatmul.msk.f32.vlgmr.msrb.gmra.mxu1 %vm104_vm0, %v268_v27 }
  0x32   :  { %377 = vmatmul.msk.f32.gmra.mxu3 %vm104_vm0, %v162_v10 }
  0x33   :  { %383 = vmatmul.msk.f32.gmra.mxu2 %vm104_vm0, %v269_v32 }
  0x36   :  { %379 = vmatmul.msk.f32.gmra.mxu0 %vm104_vm0, %v162_v10 }
  0x37   :  { %381 = vmatmul.msk.f32.gmra.mxu1 %vm104_vm0, %v269_v32 }
  0xa2   :  { %v125_v36 = vpop.f32.mrf.mxu0 }
  0xa3   :  { %v156_v37 = vpop.f32.mrf.mxu1  ;;  %v126_v38 = vadd.f32 %v392_v33, %v125_v36 }
  0xa4   :  { %v157_v39 = vadd.f32 %v393_v34, %v156_v37  ;;  %v194_v40 = vpop.f32.mrf.mxu2 }
  0xa5   :  { %v197_v41 = vpop.f32.mrf.mxu3  ;;  %v128_v42 = vmax.f32 %v126_v38, 0.0  ;;  %v195_v44 = vadd.f32 %v394_v35, %v194_v40 }
  0xa6   :  { %v159_v43 = vmax.f32 %v157_v39, 0.0  ;;  %v198_v45 = vadd.f32 %v394_v35, %v197_v41 }
  0xa7   :  { %130 = vst.msk [vmem:[%s752_s17] sm:$0x3] %vm129_vm1, %v128_v42 }
  0xa8   :  { %160 = vst.msk [vmem:[%s753_s18] sm:$0x3] %vm129_vm1, %v159_v43 }
  0xa9   :  { %200 = vst.msk [vmem:[%s754_s19] sm:$0xff] %vm104_vm0, %v195_v44 }
  0xaa   :  { %201 = vst.msk [vmem:[%s754_s19 + $0x8] sm:$0xff] %vm104_vm0, %v198_v45 }
  0xab   :  { %v260_v50 = vpop.f32.mrf.mxu0 }
  0xac   :  { %v261_v52 = vadd.f32 %v396_v46, %v260_v50  ;;  %v301_v53 = vpop.f32.mrf.mxu1 }
  0xad   :  { %v227_v51 = vpop.f32.mrf.mxu3  ;;  %v302_v55 = vadd.f32 %v397_v48, %v301_v53 }
  0xae   :  { %v228_v54 = vadd.f32 %v395_v47, %v227_v51  ;;  %v334_v56 = vpop.f32.mrf.mxu2  ;;  %266 = vst.msk [vmem:[%s756_s21] sm:$0xff] %vm104_vm0, %v261_v52 }
  0xaf   :  { %v335_v57 = vadd.f32 %v398_v49, %v334_v56  ;;  %307 = vst.msk [vmem:[%s757_s22] sm:$0xff] %vm104_vm0, %v302_v55 }
  0xb0   :  { %233 = vst.msk [vmem:[%s755_s20] sm:$0xff] %vm104_vm0, %v228_v54 }
  0xb1   :  { %340 = vst.msk [vmem:[%s758_s23] sm:$0xff] %vm104_vm0, %v335_v57 }
  0xb3   :  { %v263_v58 = vpop.f32.mrf.mxu0 }
  0xb4   :  { %v264_v60 = vadd.f32 %v396_v46, %v263_v58  ;;  %v304_v61 = vpop.f32.mrf.mxu1 }
  0xb5   :  { %v230_v59 = vpop.f32.mrf.mxu3  ;;  %v305_v63 = vadd.f32 %v397_v48, %v304_v61 }
  0xb6   :  { %v231_v62 = vadd.f32 %v395_v47, %v230_v59  ;;  %v337_v0 = vpop.f32.mrf.mxu2  ;;  %267 = vst.msk [vmem:[%s756_s21 + $0x8] sm:$0xff] %vm104_vm0, %v264_v60 }
  0xb7   :  { %v338_v1 = vadd.f32 %v398_v49, %v337_v0  ;;  %308 = vst.msk [vmem:[%s757_s22 + $0x8] sm:$0xff] %vm104_vm0, %v305_v63 }
  0xb8   :  { %234 = vst.msk [vmem:[%s755_s20 + $0x8] sm:$0xff] %vm104_vm0, %v231_v62 }
  0xb9   :  { %341 = vst.msk [vmem:[%s758_s23 + $0x8] sm:$0xff] %vm104_vm0, %v338_v1 }
  0xba   :  { %370 = vsyncpa [#allocation3], 1 }
  0xbb   :  { %371 = vsyncpa [#allocation5], 1 }

// kernel: parallel_decoder_forward.4
= control target key start
LH: loop header
LB: loop body
LE: loop exit
PB: predicated region body
PF: predicated region fallthrough
CT: control target
= control target key end

     0   :  { %s3612_s6 = smov 1   ;;  %s3613_s10 = smov 2   ;;  %s4284_s0 = inlined_call_operand.smem [shape: u32[43], index: -1, kind: input, shape index: {}] }
   0x1   :  { %s3673_s5 = sld [smem:[%s4284_s0]]   ;;  %s3614_s14 = smov 3  }
   0x2   :  { %s3678_s9 = sld [smem:[%s4284_s0 + %s3612_s6]]   ;;  %s3615_s18 = smov 4  }
   0x3   :  { %s3683_s13 = sld [smem:[%s4284_s0 + %s3613_s10]]   ;;  %s3616_s22 = smov 5  }
   0x4   :  { %s3688_s17 = sld [smem:[%s4284_s0 + %s3614_s14]]   ;;  %s3617_s26 = smov 6  }
   0x5   :  { %s3693_s21 = sld [smem:[%s4284_s0 + %s3615_s18]]   ;;  %s3618_s30 = smov 7  }
   0x6   :  { %s3698_s25 = sld [smem:[%s4284_s0 + %s3616_s22]]   ;;  %s3619_s4 = smov 8  }
   0x7   :  { %s3703_s29 = sld [smem:[%s4284_s0 + %s3617_s26]]   ;;  %s3620_s10 = smov 9  }
   0x8   :  { %s3708_s3 = sld [smem:[%s4284_s0 + %s3618_s30]]   ;;  %s3621_s15 = smov 10  }
   0x9   :  { %4310 = sst [smem:[#allocation14_spill]] %s3683_s13  ;;  %s3622_s20 = smov 11  }
   0xa   :  { %4311 = sst [smem:[#allocation15_spill]] %s3688_s17  ;;  %s3623_s26 = smov 12  }
   0xb   :  { %4312 = sst [smem:[#allocation16_spill]] %s3693_s21  ;;  %s3624_s1 = smov 13  }
   0xc   :  { %4313 = sst [smem:[#allocation17_spill]] %s3698_s25  ;;  %s3625_s7 = smov 14  }
   0xd   :  { %s3713_s8 = sld [smem:[%s4284_s0 + %s3619_s4]]   ;;  %s3627_s22 = smov 16  }
   0xe   :  { %4314 = sst [smem:[#allocation18_spill]] %s3708_s3  ;;  %s3628_s28 = smov 17  }
   0xf   :  { %s3718_s14 = sld [smem:[%s4284_s0 + %s3620_s10]]   ;;  %s3641_s10 = smov 30  }
  0x10   :  { %s3723_s19 = sld [smem:[%s4284_s0 + %s3621_s15]]   ;;  %s3626_s15 = smov 15  }
  0x11   :  { %s3728_s24 = sld [smem:[%s4284_s0 + %s3622_s20]]   ;;  %s3642_s16 = smov 31  }
  0x12   :  { %s3733_s30 = sld [smem:[%s4284_s0 + %s3623_s26]]   ;;  %s3643_s23 = smov 32  }
  0x13   :  { %4315 = sst [smem:[#allocation19_spill]] %s3713_s8 }
  0x14   :  { %s3738_s6 = sld [smem:[%s4284_s0 + %s3624_s1]]   ;;  %s3640_s1 = smov 29  }
  0x15   :  { %s3743_s12 = sld [smem:[%s4284_s0 + %s3625_s7]]   ;;  %s3629_s7 = smov 18  }
  0x16   :  { %4316 = sst [smem:[#allocation20_spill]] %s3723_s19 }
  0x17   :  { %s3748_s20 = sld [smem:[%s4284_s0 + %s3626_s15]]   ;;  %s3630_s15 = smov 19  }
  0x18   :  { %s3753_s27 = sld [smem:[%s4284_s0 + %s3627_s22]]   ;;  %s3631_s22 = smov 20  }
  0x19   :  { %s3758_s4 = sld [smem:[%s4284_s0 + %s3628_s28]]   ;;  %s3632_s28 = smov 21  }
  0x1a   :  { %s3763_s25 = sld [smem:[%s4284_s0 + %s3629_s7]]   ;;  %s3633_s7 = smov 22  }
  0x1b   :  { %s3768_s8 = sld [smem:[%s4284_s0 + %s3630_s15]]   ;;  %s3634_s15 = smov 23  }
  0x1c   :  { %s3773_s21 = sld [smem:[%s4284_s0 + %s3631_s22]]   ;;  %s3635_s22 = smov 24  }
  0x1d   :  { %s3778_s13 = sld [smem:[%s4284_s0 + %s3632_s28]]   ;;  %s3636_s28 = smov 25  }
  0x1e   :  { %s3783_s19 = sld [smem:[%s4284_s0 + %s3633_s7]]   ;;  %s3637_s7 = smov 26  }
  0x1f   :  { %4317 = sst [smem:[#allocation21_spill]] %s3758_s4 }
  0x20   :  { %s3788_s17 = sld [smem:[%s4284_s0 + %s3634_s15]]   ;;  %s3638_s15 = smov 27  }
  0x21   :  { %4318 = sst [smem:[#allocation22_spill]] %s3768_s8 }
  0x22   :  { %4319 = sst [smem:[#allocation23_spill]] %s3773_s21 }
  0x23   :  { %4320 = sst [smem:[#allocation24_spill]] %s3778_s13 }
  0x24   :  { %4321 = sst [smem:[#allocation25_spill]] %s3783_s19 }
  0x25   :  { %s3793_s21 = sld [smem:[%s4284_s0 + %s3635_s22]]   ;;  %s3639_s22 = smov 28  }
  0x26   :  { %4322 = sst [smem:[#allocation26_spill]] %s3788_s17 }
  0x27   :  { %s3798_s13 = sld [smem:[%s4284_s0 + %s3636_s28]]   ;;  %s3648_s28 = smov 37  }
  0x28   :  { %s3803_s19 = sld [smem:[%s4284_s0 + %s3637_s7]]  }
  0x29   :  { %s3808_s17 = sld [smem:[%s4284_s0 + %s3638_s15]]  }
  0x2a   :  { %s3831_s8 = sld [smem:[%s4284_s0 + %s3643_s23]]   ;;  %s3647_s23 = smov 36  }
  0x2b   :  { %4323 = sst [smem:[#allocation27_spill]] %s3793_s21 }
  0x2c   :  { %s3255_s21 = sld [smem:[%s4284_s0 + %s3639_s22]]  }
  0x2d   :  { %4324 = sst [smem:[#allocation28_spill]] %s3798_s13 }
  0x2e   :  { %4325 = sst [smem:[#allocation29_spill]] %s3803_s19 }
  0x2f   :  { %4326 = sst [smem:[#allocation30_spill]] %s3808_s17 }
  0x30   :  { %s3816_s13 = sld [smem:[%s4284_s0 + %s3640_s1]]   ;;  %s3644_s1 = smov 33  }
  0x31   :  { %s3821_s19 = sld [smem:[%s4284_s0 + %s3641_s10]]   ;;  %s3645_s10 = smov 34  }
  0x32   :  { %s3826_s17 = sld [smem:[%s4284_s0 + %s3642_s16]]   ;;  %v91_v0 = vstv %s3255_s21  ;;  %s3646_s16 = smov 35  }
  0x33   :  { %4330 = sst [smem:[#allocation34_spill]] %s3831_s8  ;;  %92 = vst [vmem:[#allocation7] sm:$0x1] %v91_v0  ;;  %s3649_s21 = smov 38  }
  0x34   :  { %s3846_s22 = sld [smem:[%s4284_s0 + %s3646_s16]]   ;;  %s3650_s16 = smov 39  }
  0x35   :  { %s3861_s15 = sld [smem:[%s4284_s0 + %s3649_s21]]   ;;  %s3651_s8 = smov 40  }
  0x36   :  { %4327 = sst [smem:[#allocation31_spill]] %s3816_s13  ;;  %s3653_s21 = smov 42  }
  0x37   :  { %4328 = sst [smem:[#allocation32_spill]] %s3821_s19 }
  0x38   :  { %4329 = sst [smem:[#allocation33_spill]] %s3826_s17 }
  0x39   :  { %s3836_s13 = sld [smem:[%s4284_s0 + %s3644_s1]]  }
  0x3a   :  { %s3841_s19 = sld [smem:[%s4284_s0 + %s3645_s10]]  }
  0x3b   :  { %4333 = sst [smem:[#allocation37_spill]] %s3846_s22 }
  0x3c   :  { %s3851_s1 = sld [smem:[%s4284_s0 + %s3647_s23]]  }
  0x3d   :  { %s3856_s10 = sld [smem:[%s4284_s0 + %s3648_s28]]  }
  0x3e   :  { %4335 = sst [smem:[#allocation39_spill]] %s3861_s15 }
  0x3f   :  { %4331 = sst [smem:[#allocation35_spill]] %s3836_s13  ;;  %s3652_s13 = smov 41  }
  0x40   :  { %4332 = sst [smem:[#allocation36_spill]] %s3841_s19 }
  0x41   :  { %s3866_s22 = sld [smem:[%s4284_s0 + %s3650_s16]]  }
  0x42   :  { %4334 = sst [smem:[#allocation38_spill]] %s3851_s1 }
  0x43   :  { %s3871_s1 = sld [smem:[%s4284_s0 + %s3651_s8]]  }
  0x44   :  { %s3876_s17 = sld [smem:[%s4284_s0 + %s3652_s13]]  }
  0x45   :  { %s3881_s15 = sld [smem:[%s4284_s0 + %s3653_s21]]  }
  0x46   :  { %93 = vsyncpa [#allocation9], 0 }
  0x47   :  { %94 = vsyncpa [#allocation11], 0  ;;  %s3883_s19 = smov 0  }
  0x48 LB: > { %s4336_s4 = sld [smem:[#allocation21_spill]]  ;;  %s1142_s16 = sshll.u32 %s3856_s10, 4  ;;  %s3610_s19 = sphi %s3883_s19, %s100_s19   ;;  %s1143_s16 = int_to_ptr.hbm [resolvable:$true] %s1142_s16 }
  0x49   : > { %s4337_s3 = sld [smem:[#allocation18_spill]]  ;;  %s3890_s18 = sadd.s32 4294967295, %s3610_s19  }
  0x4a   : > { %4338 = sst [smem:[#allocation40_spill]] %s3610_s19  ;;  %p3272_p0 = scmp.ge.s32.totalorder %s3610_s19, 1 }
  0x4b   : > { %p1023_p1 = scmp.lt.s32.totalorder %s3610_s19, 5  ;;  %p3273_p2 = scmp.ne.s32.totalorder %s3890_s18, 0 }
  0x4c   : > { %p3385_p3 = scmp.eq.s32.totalorder %s3890_s18, 0  ;;  %s3654_s8 = smov [#allocation8]  }
  0x4d   : > { %p3896_p4 = pnand %p3272_p0, %p1023_p1  ;;  %s3900_s23 = sshll.u32 %s3654_s8, 4  ;;  %s1145_s23 = int_to_ptr.vmem [resolvable:$true] %s3900_s23 }
  0x4e   : > { %s1159_s26 = sshll.u32 %s3866_s22, 4  ;;  %s3655_s28 = smov [#allocation10]   ;;  %s3912_s26 = int_to_ptr.hbm [resolvable:$true] %s1159_s26 }
  0x4f   : > { %p3378_p5 = pneg %p3896_p4  ;;  %s3914_s2 = sshll.u32 %s3655_s28, 4 }
  0x50   : > { %4341 = sst [smem:[#allocation41_spill]] %s3914_s2  ;;  %s3536_s21 = sshra.s32 %s1143_s16, 4  ;;  %s3537_s21 = int_to_ptr.hbm [resolvable:$true] %s3536_s21 }
  0x51   : > { %p3908_p6 = pnand %p3385_p3, %p3378_p5  ;;  %s3538_s7 = scalar_lea.hbm %s3537_s21, 32 }
  0x52   : > { %p3539_p7 = scmp.ne.s32.totalorder %s3537_s21, %s3538_s7  ;;  %s3543_s11 = scalar_lea.hbm %s3856_s10, 32 }
  0x53   : > { %p3540_p8 = pneg %p3908_p6  ;;  %p3544_p11 = scmp.lt.s32.totalorder %s3537_s21, %s3856_s10 }
  0x54   : > { %p3545_p12 = scmp.lt.s32.totalorder %s3543_s11, %s3538_s7 }
  0x55   : > { %p3541_p9 = pnand %p3540_p8, %p3539_p7 }
  0x56   : > { %p3546_p13 = por %p3545_p12, %p3544_p11 }
  0x57   : > { %p3542_p10 = pneg %p3541_p9 }
  0x59   : > { %p3547_p0 = pnand %p3546_p13, %p3542_p10 }
  0x5b   : > { %3550 = shalt.err (!%p3547_p0)
}
  0x5c   : > { %s3656_s8 = smov 128   ;;  %s3657_s28 = smov 8  }
  0x5d   : > { %3381 = dma.hbm_to_vmem [thread:$0]  (!%p3908_p6), %s1143_s16, 512, %s1145_s23, [#allocation9], %s3656_s8, %s3656_s8, %s3657_s28  }
  0x5e   : > { %s3566_s2 = sshra.s32 %s3912_s26, 4  ;;  %s3573_s21 = scalar_lea.hbm %s3866_s22, 32  ;;  %s3567_s2 = int_to_ptr.hbm [resolvable:$true] %s3566_s2 }
  0x5f   : > { %s3568_s19 = scalar_lea.hbm %s3567_s2, 32  ;;  %p3574_p9 = scmp.lt.s32.totalorder %s3567_s2, %s3866_s22 }
  0x60   : > { %p3569_p1 = scmp.ne.s32.totalorder %s3567_s2, %s3568_s19  ;;  %p3575_p10 = scmp.lt.s32.totalorder %s3573_s21, %s3568_s19 }
  0x62   : > { %p3571_p5 = pnand %p3569_p1, %p3540_p8  ;;  %p3576_p11 = por %p3575_p10, %p3574_p9 }
  0x64   : > { %p3572_p7 = pneg %p3571_p5 }
  0x66   : > { %p3577_p12 = pnand %p3576_p11, %p3572_p7 }
  0x68   : > { %3580 = shalt.err (!%p3577_p12)
}
  0x69   : > { %s4342_s7 = sld [smem:[#allocation41_spill]] }
  0x6c   : > { %1187 = sbr.rel (%p3896_p4) target bundleno = 5216 (0x1460), region = 184 }
  0x6f   : > { %s4343_s11 = int_to_ptr.vmem [resolvable:$true] %s4342_s7 }
  0x70   : > { %3384 = dma.hbm_to_vmem [thread:$0]  (!%p3908_p6), %s3912_s26, 512, %s4343_s11, [#allocation11], %s3656_s8, %s3656_s8, %s3657_s28  }
  0x71   : > { %3601 = dma.done.wait (%p3385_p3), [#allocation9], 512  }
  0x72   : > { %3603 = vsyncadd (%p3385_p3), [#allocation9], 4294966784 }
  0x73   : > { %3605 = dma.done.wait (%p3385_p3), [#allocation11], 512  }
  0x74   : > { %3607 = vsyncadd (%p3385_p3), [#allocation11], 4294966784  ;;  %p1297_p6 = scmp.lt.s32.totalorder %s3890_s18, 3 }
  0x75   : > { %1312 = sbr.rel (%p3273_p2) target bundleno = 128 (0x80), region = 196 }
  0x76   : > { %s1298_s19 = scalar_select %p1297_p6, %s3890_s18, 3 }
  0x78   : > { %s3949_s16 = sshll.u32 %s1298_s19, 1 }
  0x79   : > { %s1300_s0 = scalar_lea.vmem %s3673_s5, %s3949_s16 }
  0x7a   : > { %v1313_v1 = vld [vmem:[%s3728_s24] sm:$0x3]  ;;  %vm1315_vm0 = vcmask 254976  }
  0x7b   : > { %1316 = vst.msk [vmem:[#allocation2] sm:$0x3] %vm1315_vm0, %v1313_v1  ;;  %v1314_v2 = vld [vmem:[%s3733_s30] sm:$0x3] }
  0x7c   : > { %1317 = vst.msk [vmem:[#allocation3] sm:$0x3] %vm1315_vm0, %v1313_v1 }
  0x7d   : > { %1318 = vst.msk [vmem:[#allocation4] sm:$0x3] %vm1315_vm0, %v1313_v1 }
  0x7e   : > { %1319 = vst.msk [vmem:[#allocation5] sm:$0x3] %vm1315_vm0, %v1314_v2 }
  0x7f   : > { %1320 = vst.msk [vmem:[#allocation6] sm:$0x3] %vm1315_vm0, %v1314_v2 }
  0x80 PF: > { %v1325_v3 = vld [vmem:[%s3738_s6 + $0x18] sm:$0xff]  ;;  %v1324_v4 = vld [vmem:[%s3738_s6 + $0x10] sm:$0xff]  ;;  %vm1364_vm1 = vcmask 130048   ;;  %v1323_v5 = vld [vmem:[%s3738_s6 + $0x8] sm:$0xff]  ;;  %vm1330_vm2 = vcmask 261120   ;;  %s4305_s18 = smov 112  }
  0x81   : > { %1346 = vmatpush.msra.mxu0 %v1325_v3  ;;  %v1361_v6 = vld [vmem:[%s3703_s29 + $0x8] sm:$0xf]  ;;  %v1322_v7 = vld [vmem:[%s3738_s6] sm:$0xff]  ;;  %v3297_v15 = vld [vmem:[%s3703_s29 + $0x18] sm:$0xf]  ;;  %vm1396_vm3 = vcmask 90112  }
  0x82   : > { %1453 = vrot.lane.b32.xlu0 %v1361_v6, %s4305_s18  ;;  %3284 = vmatpush.xpose.msk.msra.mxu1 %vm1364_vm1, %v1361_v6  ;;  %v1360_v8 = vld [vmem:[%s3703_s29] sm:$0xff]  ;;  %v3296_v16 = vld [vmem:[%s3703_s29 + $0x10] sm:$0xff]  ;;  %v1363_v33 = vld [vmem:[%s4337_s3 + $0x8] sm:$0xf]  ;;  %vm1425_vm4 = vcmask 1043456   ;;  %vm1421_vm9 = vcmask 97280  }
  0x83   : > { %1347 = vmatpush.msra.mxu0 %v1324_v4  ;;  %v3969_v9 = vld [vmem:[%s1300_s0] sm:$0x3]  ;;  %3287 = vmatpush.msk.msra.mxu2 %vm1425_vm4, %v1363_v33  ;;  %v1356_v59 = vld [vmem:[%s3748_s20 + $0x8] sm:$0xff]  ;;  %s4300_s13 = smov 32   ;;  %s4344_s2 = sld [smem:[#allocation22_spill]] }
  0x84   : > { %v3451_v12 = vld [vmem:[%s3743_s12] ss:$0 sm:$0xff]  ;;  %s4302_s8 = smov 64   ;;  %s4345_s28 = sld [smem:[#allocation26_spill]] }
  0x85   : > { %1348 = vmatpush.msra.mxu0 %v1323_v5  ;;  %v3987_v20 = vld [vmem:[%s3718_s14] sm:$0x3]  ;;  %s4346_s21 = sld [smem:[#allocation27_spill]] }
  0x86   : > { %3285 = vmatpush.xpose.msk.msra.mxu1 %vm1364_vm1, %v1360_v8  ;;  %v1362_v34 = vld [vmem:[%s4337_s3] sm:$0xff]  ;;  %v1621_v43 = vrot.slane %v3987_v20, 1  ;;  %s4347_s7 = sld [smem:[#allocation28_spill]] }
  0x87   : > { %1349 = vmatpush.msra.mxu0 %v1322_v7  ;;  %1444 = vmatpush.msra.mxu2 %v1362_v34  ;;  %v1355_v60 = vld [vmem:[%s3748_s20] sm:$0xff]  ;;  %s4348_s11 = sld [smem:[#allocation29_spill]] }
  0x88   : > { %3283 = vmatmul.msk.f32.vlgmr.msra.gmra.mxu0 %vm1330_vm2, %v3969_v9  ;;  %s4349_s19 = sld [smem:[#allocation15_spill]] }
  0x89   : > { %s4352_s26 = sld [smem:[#allocation30_spill]] }
  0x8a   : > { %1451 = vrot.lane.b32.xlu0 %v1360_v8, %s4305_s18  ;;  %1578 = vmatpush.msrb.mxu1 %v1356_v59  ;;  %s4353_s23 = sld [smem:[#allocation20_spill]] }
  0x8c   : > { %1579 = vmatpush.msrb.mxu1 %v1355_v60 }
  0x8e   : > { %s4350_s0 = smov %s4349_s19 }
  0xf4   : > { %v1454_v10 = vpop.permute.xlu0 %1453 }
  0xf5   : > { %3289 = vmatpush.xpose.msk.msra.mxu3 %vm1364_vm1, %v1454_v10 }
  0xfc   : > { %v1452_v11 = vpop.permute.xlu0 %1451 }
  0xfd   : > { %3290 = vmatpush.xpose.msk.msra.mxu3 %vm1364_vm1, %v1452_v11 }
 0x101   : > { %3300 = vmatpush.xpose.msk.msrb.mxu3 %vm1364_vm1, %v3297_v15 }
 0x105   : > { %v1351_v13 = vpop.f32.mrf.mxu0  ;;  %3301 = vmatpush.xpose.msk.msrb.mxu3 %vm1364_vm1, %v3296_v16 }
 0x106   : > { %v1352_v14 = vadd.f32 %v3451_v12, %v1351_v13 }
 0x108   : > { %1449 = vrot.lane.b32.xlu1 %v1352_v14, %s4305_s18  ;;  %3286 = vmatmul.msk.f32.vlgmr.msra.gmra.mxu1 %vm1364_vm1, %v1352_v14  ;;  %v1590_v18 = vrot.slane %v1352_v14, 1 }
 0x17a   : > { %v1450_v17 = vpop.permute.xlu1 %1449 }
 0x17b   : > { %3291 = vmatmul.msk.f32.vlgmr.msra.gmra.mxu3 %vm1364_vm1, %v1450_v17  ;;  %v1357_v17 = vld [vmem:[%s3748_s20 + $0x10] sm:$0xff] }
 0x183   : > { %3302 = vmatmul.msk.f32.vlgmr.msrb.gmra.mxu3 %vm1364_vm1, %v1590_v18 }
 0x185   : > { %v1391_v19 = vpop.f32.mrf.mxu1 }
 0x186   : > { %v1394_v21 = vmul.f32 0.25, %v1391_v19  ;;  %v3299_v19 = vld [vmem:[%s4337_s3 + $0x18] sm:$0xf] }
 0x188   : > { %v1395_v22 = vadd.f32 %v1394_v21, %v3987_v20  ;;  %v3298_v21 = vld [vmem:[%s4337_s3 + $0x10] sm:$0xff]  ;;  %s4367_s3 = smov 64  }
 0x18a   : > { %v1397_v23 = vsel %vm1396_vm3, %v1395_v22, -inf }
 0x18b   : > { %1398 = vmax.xlane.f32.xlu1 %v1397_v23 }
 0x1a4   : > { %1676 = vrot.lane.b32.xlu1 %v3296_v16, %s4305_s18  ;;  %v1358_v16 = vld [vmem:[%s3748_s20 + $0x18] sm:$0xff] }
 0x1a5   : > { %1555 = vmatpush.msrb.mxu0 %v1358_v16  ;;  %1780 = vmatpush.msra.mxu3 %v1358_v16 }
 0x1a7   : > { %1556 = vmatpush.msrb.mxu0 %v1357_v17  ;;  %1781 = vmatpush.msra.mxu3 %v1357_v17 }
 0x1ac   : > { %1735 = vrot.lane.b32.xlu1 %v3299_v19, %s4305_s18 }
 0x1fe   : > { %v1478_v24 = vpop.f32.mrf.mxu3  ;;  %v1399_v25 = vpop.xlane.xlu1 %1398 }
 0x1ff   : > { %v1481_v26 = vmul.f32 0.25, %v1478_v24  ;;  %v1400_v27 = vsub.f32 %v1395_v22, %v1399_v25 }
 0x201   : > { %v1401_v28 = vmul.f32 1.442695, %v1400_v27  ;;  %v1482_v29 = vadd.f32 %v1481_v26, %v3987_v20 }
 0x203   : > { %3462 = vpow2.f32 %v1401_v28  ;;  %v1483_v30 = vsel %vm1396_vm3, %v1482_v29, -inf }
 0x204   : > { %1484 = vmax.xlane.f32.xlu2 %v1483_v30 }
 0x206   : > { %v1616_v39 = vpop.f32.mrf.mxu3 }
 0x207   : > { %v1619_v41 = vmul.f32 0.25, %v1616_v39 }
 0x209   : > { %v3463_v31 = vpop.eup %3462  ;;  %v1623_v47 = vadd.f32 %v1621_v43, %v1619_v41 }
 0x20a   : > { %v1403_v32 = vsel %vm1396_vm3, %v3463_v31, 0.0 }
 0x20b   : > { %v1624_v51 = vsel %vm1396_vm3, %v1623_v47, -inf }
 0x20c   : > { %1404 = vadd.xlane.f32.xlu2 %v1403_v32 }
 0x216   : > { %v1677_v22 = vpop.permute.xlu1 %1676 }
 0x224   : > { %1510 = vrot.lane.b32.xlu2 %v1363_v33, %s4305_s18 }
 0x22c   : > { %1508 = vrot.lane.b32.xlu2 %v1362_v34, %s4305_s18 }
 0x234   : > { %1678 = vrot.lane.b32.xlu2 %v3297_v15, %s4305_s18 }
 0x23c   : > { %1674 = vrot.lane.b32.xlu2 %v1590_v18, %s4305_s18 }
 0x277   : > { %v1485_v35 = vpop.xlane.xlu2 %1484 }
 0x278   : > { %v1486_v36 = vsub.f32 %v1482_v29, %v1485_v35 }
 0x27a   : > { %v1487_v37 = vmul.f32 1.442695, %v1486_v36 }
 0x27c   : > { %3464 = vpow2.f32 %v1487_v37 }
 0x27f   : > { %v1405_v38 = vpop.xlane.xlu2 %1404 }
 0x280   : > { %3466 = vrcp.f32 %v1405_v38  ;;  %v1417_v49 = vand.u32 2147483648, %v1405_v38  ;;  %v1415_v52 = vand.u32 2147483647, %v1405_v38  ;;  %vm1411_vm6 = vweird.f32 %v1405_v38 }
 0x282   : > { %v3465_v40 = vpop.eup %3464  ;;  %v1418_v54 = vor.u32 1.1754944e-38, %v1417_v49  ;;  %vm1416_vm8 = vcmp.eq.f32.partialorder %v1415_v52, 8.507059e+37  ;;  %v1736_v49 = vpop.permute.xlu1 %1735 }
 0x283   : > { %v1489_v42 = vsel %vm1396_vm3, %v3465_v40, 0.0  ;;  %3308 = vmatpush.msk.msra.mxu1 %vm1425_vm4, %v1736_v49  ;;  %v1852_v49 = vld [vmem:[#allocation5] sm:$0x3] }
 0x284   : > { %1490 = vadd.xlane.f32.xlu0 %v1489_v42 }
 0x286   : > { %v3467_v44 = vpop.eup %3466 }
 0x287   : > { %v1407_v45 = vmul.f32 %v3467_v44, %v1405_v38  ;;  %v1511_v46 = vpop.permute.xlu2 %1510  ;;  %vm1412_vm5 = vweird.f32 %v3467_v44 }
 0x288   : > { %3292 = vmatpush.msk.msrb.mxu2 %vm1425_vm4, %v1511_v46  ;;  %vm1413_vm7 = vmor %vm1411_vm6, %vm1412_vm5 }
 0x289   : > { %v1408_v48 = vsub.f32 1.0, %v1407_v45 }
 0x28b   : > { %v1409_v50 = vmul.f32 %v3467_v44, %v1408_v48 }
 0x28c   : > { %1625 = vmax.xlane.f32.xlu0 %v1624_v51 }
 0x28d   : > { %v1410_v53 = vadd.f32 %v3467_v44, %v1409_v50 }
 0x28f   : > { %v1509_v55 = vpop.permute.xlu2 %1508  ;;  %v1414_v56 = vsel %vm1413_vm7, %v3467_v44, %v1410_v53 }
 0x290   : > { %v1419_v57 = vsel %vm1416_vm8, %v1418_v54, %v1414_v56  ;;  %1533 = vmatpush.msrb.mxu2 %v1509_v55 }
 0x291   : > { %v1420_v58 = vmul.f32 %v3463_v31, %v1419_v57 }
 0x293   : > { %3288 = vmatmul.msk.f32.vlgmr.msra.gmra.mxu2 %vm1421_vm9, %v1420_v58 }
 0x294   : > { %3303 = vmatpush.msk.msra.mxu2 %vm1425_vm4, %v3299_v19 }
 0x296   : > { %1669 = vmatpush.msra.mxu2 %v3298_v21 }
 0x297   : > { %v1679_v18 = vpop.permute.xlu2 %1678 }
 0x298   : > { %3305 = vmatpush.xpose.msk.msra.mxu0 %vm1364_vm1, %v1679_v18 }
 0x29c   : > { %3306 = vmatpush.xpose.msk.msra.mxu0 %vm1364_vm1, %v1677_v22  ;;  %v3660_v22 = vmov 3.0  }
 0x29f   : > { %v1675_v36 = vpop.permute.xlu2 %1674 }
 0x2f7   : > { %v1491_v61 = vpop.xlane.xlu0 %1490 }
 0x2f8   : > { %3468 = vrcp.f32 %v1491_v61  ;;  %v1503_v3 = vand.u32 2147483648, %v1491_v61  ;;  %v1501_v6 = vand.u32 2147483647, %v1491_v61  ;;  %vm1497_vm11 = vweird.f32 %v1491_v61 }
 0x2fa   : > { %v1504_v8 = vor.u32 1.1754944e-38, %v1503_v3  ;;  %vm1502_vm13 = vcmp.eq.f32.partialorder %v1501_v6, 8.507059e+37 }
 0x2fe   : > { %v3469_v62 = vpop.eup %3468 }
 0x2ff   : > { %v1493_v63 = vmul.f32 %v3469_v62, %v1491_v61  ;;  %v1626_v0 = vpop.xlane.xlu0 %1625  ;;  %vm1498_vm10 = vweird.f32 %v3469_v62 }
 0x300   : > { %v1627_v1 = vsub.f32 %v1623_v47, %v1626_v0  ;;  %vm1499_vm12 = vmor %vm1497_vm11, %vm1498_vm10  ;;  %vm1812_vm11 = vcmask 1040384  }
 0x301   : > { %v1494_v2 = vsub.f32 1.0, %v1493_v63 }
 0x302   : > { %v1628_v4 = vmul.f32 1.442695, %v1627_v1 }
 0x303   : > { %v1495_v5 = vmul.f32 %v3469_v62, %v1494_v2  ;;  %v3452_v2 = vld [vmem:[%s3753_s27] ss:$0 sm:$0xff] }
 0x304   : > { %3470 = vpow2.f32 %v1628_v4 }
 0x305   : > { %v1496_v7 = vadd.f32 %v3469_v62, %v1495_v5 }
 0x307   : > { %v1500_v10 = vsel %vm1499_vm12, %v3469_v62, %v1496_v7  ;;  %vm1819_vm12 = vcmask 254976  }
 0x308   : > { %v1505_v11 = vsel %vm1502_vm13, %v1504_v8, %v1500_v10  ;;  %v3659_v10 = vmov 32.0  }
 0x309   : > { %v1506_v12 = vmul.f32 %v3465_v40, %v1505_v11 }
 0x30a   : > { %v3471_v13 = vpop.eup %3470 }
 0x30b   : > { %3293 = vmatmul.msk.f32.vlgmr.msrb.gmra.mxu2 %vm1421_vm9, %v1506_v12  ;;  %v1630_v14 = vsel %vm1396_vm3, %v3471_v13, 0.0 }
 0x30c   : > { %1631 = vadd.xlane.f32.xlu0 %v1630_v14  ;;  %1803 = vmatpush.msrb.mxu2 %v1356_v59 }
 0x30e   : > { %1804 = vmatpush.msrb.mxu2 %v1355_v60 }
 0x316   : > { %v1446_v15 = vpop.f32.mrf.mxu2 }
 0x317   : > { %3295 = vmatmul.msk.f32.vlgmr.msrb.gmra.mxu1 %vm1364_vm1, %v1446_v15 }
 0x37f   : > { %v1632_v23 = vpop.xlane.xlu0 %1631 }
 0x380   : > { %3472 = vrcp.f32 %v1632_v23  ;;  %v1644_v27 = vand.u32 2147483648, %v1632_v23  ;;  %v1642_v29 = vand.u32 2147483647, %v1632_v23  ;;  %vm1638_vm15 = vweird.f32 %v1632_v23 }
 0x382   : > { %v1645_v31 = vor.u32 1.1754944e-38, %v1644_v27  ;;  %vm1643_vm5 = vcmp.eq.f32.partialorder %v1642_v29, 8.507059e+37  ;;  %v1868_v29 = vld [vmem:[%s4336_s4 + $0x18] sm:$0xff] }
 0x386   : > { %v3473_v24 = vpop.eup %3472 }
 0x387   : > { %v1634_v25 = vmul.f32 %v3473_v24, %v1632_v23  ;;  %vm1639_vm14 = vweird.f32 %v3473_v24 }
 0x388   : > { %vm1640_vm0 = vmor %vm1638_vm15, %vm1639_vm14 }
 0x389   : > { %v1635_v26 = vsub.f32 1.0, %v1634_v25 }
 0x38b   : > { %v1636_v28 = vmul.f32 %v3473_v24, %v1635_v26  ;;  %v1875_v26 = vld [vmem:[%s3763_s25 + $0x10] sm:$0xff] }
 0x38d   : > { %v1637_v30 = vadd.f32 %v3473_v24, %v1636_v28  ;;  %v1872_v28 = vld [vmem:[%s4336_s4 + $0x38] sm:$0xff] }
 0x38e   : > { %v1535_v32 = vpop.f32.mrf.mxu2 }
 0x38f   : > { %v1641_v33 = vsel %vm1640_vm0, %v3473_v24, %v1637_v30  ;;  %3294 = vmatmul.msk.f32.vlgmr.msrb.gmra.mxu0 %vm1364_vm1, %v1535_v32  ;;  %v1876_v24 = vld [vmem:[%s3763_s25 + $0x18] sm:$0xff]  ;;  %v1874_v30 = vld [vmem:[%s3763_s25 + $0x8] sm:$0xff]  ;;  %v1854_v32 = vld [vmem:[%s3678_s9] sm:$0x3] }
 0x390   : > { %v1646_v34 = vsel %vm1643_vm5, %v1645_v31, %v1641_v33  ;;  %1939 = vmatpush.msrb.mxu3 %v1876_v24  ;;  %1893 = vmatpush.msrb.mxu0 %v1872_v28  ;;  %v4048_v31 = vld [vmem:[#allocation3] sm:$0x3]  ;;  %v1996_v24 = vld [vmem:[%s4345_s28 + $0x18] sm:$0xff] }
 0x391   : > { %v1647_v35 = vmul.f32 %v3471_v13, %v1646_v34  ;;  %v1871_v34 = vld [vmem:[%s4336_s4 + $0x30] sm:$0xff] }
 0x392   : > { %1940 = vmatpush.msrb.mxu3 %v1875_v26  ;;  %1894 = vmatpush.msrb.mxu0 %v1871_v34  ;;  %v1994_v26 = vld [vmem:[%s4345_s28 + $0x8] sm:$0xff]  ;;  %v2059_v34 = vld [vmem:[%s4346_s21 + $0x60] sm:$0xf] }
 0x393   : > { %3304 = vmatmul.msk.f32.vlgmr.msra.gmra.mxu2 %vm1421_vm9, %v1647_v35  ;;  %v1867_v35 = vld [vmem:[%s4336_s4 + $0x10] sm:$0xff] }
 0x394   : > { %v1581_v61 = vpop.f32.mrf.mxu1  ;;  %1941 = vmatpush.msrb.mxu3 %v1874_v30  ;;  %2014 = vmatpush.msra.mxu2 %v1996_v24 }
 0x397   : > { %3307 = vmatmul.msk.f32.vlgmr.msra.gmra.mxu0 %vm1364_vm1, %v1675_v36  ;;  %v1873_v36 = vld [vmem:[%s3763_s25] sm:$0xff] }
 0x398   : > { %1942 = vmatpush.msrb.mxu3 %v1873_v36  ;;  %v2057_v36 = vld [vmem:[%s4346_s21 + $0x50] sm:$0xff] }
 0x40c   : > { %v1558_v37 = vpop.f32.mrf.mxu0 }
 0x40d   : > { %v1582_v3 = vadd.f32 %v1581_v61, %v1558_v37  ;;  %v1855_v37 = vadd.f32 %v1854_v32, %v4048_v31 }
 0x414   : > { %v1703_v38 = vpop.f32.mrf.mxu0 }
 0x415   : > { %v1706_v39 = vmul.f32 0.25, %v1703_v38  ;;  %v1849_v38 = vld [vmem:[#allocation2] sm:$0x3] }
 0x416   : > { %v1671_v40 = vpop.f32.mrf.mxu2 }
 0x417   : > { %3311 = vmatmul.msk.f32.vlgmr.msrb.gmra.mxu2 %vm1364_vm1, %v1671_v40  ;;  %v1707_v41 = vadd.f32 %v1706_v39, %v1621_v43  ;;  %v1851_v39 = vld [vmem:[#allocation4] sm:$0x3] }
 0x419   : > { %v1708_v42 = vsel %vm1396_vm3, %v1707_v41, -inf }
 0x41a   : > { %1709 = vmax.xlane.f32.xlu2 %v1708_v42  ;;  %v1866_v42 = vld [vmem:[%s4336_s4 + $0x8] sm:$0xff] }
 0x48d   : > { %v1710_v44 = vpop.xlane.xlu2 %1709 }
 0x48e   : > { %v1711_v45 = vsub.f32 %v1707_v41, %v1710_v44  ;;  %v1870_v41 = vld [vmem:[%s4336_s4 + $0x28] sm:$0xff]  ;;  %v1856_v44 = vadd.f32 %v1855_v37, %v1851_v39 }
 0x48f   : > { %1895 = vmatpush.msrb.mxu0 %v1870_v41 }
 0x490   : > { %v1712_v46 = vmul.f32 1.442695, %v1711_v45 }
 0x492   : > { %3474 = vpow2.f32 %v1712_v46  ;;  %v1869_v46 = vld [vmem:[%s4336_s4 + $0x20] sm:$0xff] }
 0x493   : > { %1896 = vmatpush.msrb.mxu0 %v1869_v46  ;;  %v2053_v46 = vld [vmem:[%s4346_s21 + $0x30] sm:$0xff] }
 0x495   : > { %3317 = vmatpush.msk.msra.mxu0 %vm1425_vm4, %v2059_v34 }
 0x498   : > { %v3475_v47 = vpop.eup %3474 }
 0x499   : > { %v1714_v48 = vsel %vm1396_vm3, %v3475_v47, 0.0 }
 0x49a   : > { %1715 = vadd.xlane.f32.xlu0 %v1714_v48  ;;  %v1806_v63 = vpop.f32.mrf.mxu2 }
 0x4ae   : > { %1733 = vrot.lane.b32.xlu0 %v3298_v21, %s4305_s18 }
 0x50d   : > { %v1716_v50 = vpop.xlane.xlu0 %1715 }
 0x50e   : > { %3476 = vrcp.f32 %v1716_v50  ;;  %v1728_v52 = vand.u32 2147483648, %v1716_v50  ;;  %v1726_v54 = vand.u32 2147483647, %v1716_v50  ;;  %vm1722_vm7 = vweird.f32 %v1716_v50 }
 0x50f   : > { %3478 = vrcp.f32 %v3659_v10 }
 0x510   : > { %v1729_v56 = vor.u32 1.1754944e-38, %v1728_v52  ;;  %vm1727_vm10 = vcmp.eq.f32.partialorder %v1726_v54, 8.507059e+37  ;;  %3480 = vrcp.f32 %v3660_v22 }
 0x514   : > { %v3477_v20 = vpop.eup %3476 }
 0x515   : > { %v1718_v43 = vmul.f32 %v3477_v20, %v1716_v50  ;;  %vm1723_vm6 = vweird.f32 %v3477_v20  ;;  %v3479_v11 = vpop.eup %3478 }
 0x516   : > { %vm1724_vm8 = vmor %vm1722_vm7, %vm1723_vm6  ;;  %v1824_v12 = vmul.f32 32.0, %v3479_v11  ;;  %vm1828_vm13 = vweird.f32 %v3479_v11  ;;  %v3481_v23 = vpop.eup %3480 }
 0x517   : > { %v1719_v51 = vsub.f32 1.0, %v1718_v43  ;;  %v1858_v25 = vmul.f32 3.0, %v3481_v23  ;;  %vm1862_vm14 = vweird.f32 %v3481_v23 }
 0x518   : > { %v1825_v13 = vsub.f32 1.0, %v1824_v12 }
 0x519   : > { %v1720_v53 = vmul.f32 %v3477_v20, %v1719_v51  ;;  %v1859_v27 = vsub.f32 1.0, %v1858_v25  ;;  %v1995_v25 = vld [vmem:[%s4345_s28 + $0x10] sm:$0xff] }
 0x51a   : > { %v1826_v14 = vmul.f32 %v3479_v11, %v1825_v13  ;;  %2015 = vmatpush.msra.mxu2 %v1995_v25 }
 0x51b   : > { %v1721_v55 = vadd.f32 %v3477_v20, %v1720_v53  ;;  %v1860_v33 = vmul.f32 %v3481_v23, %v1859_v27  ;;  %v1993_v27 = vld [vmem:[%s4345_s28] sm:$0xff] }
 0x51c   : > { %v1827_v15 = vadd.f32 %v3479_v11, %v1826_v14  ;;  %2016 = vmatpush.msra.mxu2 %v1994_v26 }
 0x51d   : > { %v1725_v57 = vsel %vm1724_vm8, %v3477_v20, %v1721_v55  ;;  %v1861_v40 = vadd.f32 %v3481_v23, %v1860_v33 }
 0x51e   : > { %v1730_v58 = vsel %vm1727_vm10, %v1729_v56, %v1725_v57  ;;  %v1829_v16 = vsel %vm1828_vm13, %v3479_v11, %v1827_v15  ;;  %2017 = vmatpush.msra.mxu2 %v1993_v27  ;;  %vm2022_vm13 = vcmask 812032   ;;  %v2121_v27 = vld [vmem:[%s4353_s23] sm:$0x3]  ;;  %s4355_s23 = sld [smem:[#allocation24_spill]] }
 0x51f   : > { %v1731_v59 = vmul.f32 %v3475_v47, %v1730_v58  ;;  %v1863_v45 = vsel %vm1862_vm14, %v3481_v23, %v1861_v40  ;;  %v1865_v47 = vld [vmem:[%s4336_s4] sm:$0xff]  ;;  %s4368_s4 = smov 32  }
 0x520   : > { %v1734_v60 = vpop.permute.xlu0 %1733  ;;  %v1864_v48 = vmul.f32 %v1863_v45, %v1856_v44  ;;  %v2055_v44 = vld [vmem:[%s4346_s21 + $0x40] sm:$0xff]  ;;  %v2054_v45 = vld [vmem:[%s4346_s21 + $0x38] sm:$0xff] }
 0x521   : > { %1758 = vmatpush.msra.mxu1 %v1734_v60 }
 0x522   : > { %3309 = vmatmul.msk.f32.vlgmr.msra.gmra.mxu1 %vm1421_vm9, %v1731_v59 }
 0x523   : > { %1916 = vmatpush.msrb.mxu1 %v1868_v29 }
 0x525   : > { %1917 = vmatpush.msrb.mxu1 %v1867_v35  ;;  %v2058_v35 = vld [vmem:[%s4346_s21 + $0x58] sm:$0xff] }
 0x526   : > { %2071 = vmatpush.msra.mxu0 %v2058_v35 }
 0x527   : > { %1918 = vmatpush.msrb.mxu1 %v1866_v42  ;;  %v2056_v42 = vld [vmem:[%s4346_s21 + $0x48] sm:$0xff] }
 0x528   : > { %2072 = vmatpush.msra.mxu0 %v2057_v36 }
 0x529   : > { %1919 = vmatpush.msrb.mxu1 %v1865_v47  ;;  %v2052_v47 = vld [vmem:[%s4346_s21 + $0x28] sm:$0xff] }
 0x52a   : > { %3313 = vmatmul.msk.f32.vlgmr.msrb.gmra.mxu1 %vm1330_vm2, %v1864_v48  ;;  %2073 = vmatpush.msra.mxu0 %v2056_v42  ;;  %v2051_v48 = vld [vmem:[%s4346_s21 + $0x20] sm:$0xff] }
 0x52c   : > { %2074 = vmatpush.msra.mxu0 %v2055_v44 }
 0x52e   : > { %2075 = vmatpush.msra.mxu0 %v2054_v45 }
 0x530   : > { %2076 = vmatpush.msra.mxu0 %v2053_v46 }
 0x532   : > { %2077 = vmatpush.msra.mxu0 %v2052_v47 }
 0x534   : > { %2078 = vmatpush.msra.mxu0 %v2051_v48 }
 0x59f   : > { %v1760_v62 = vpop.f32.mrf.mxu1 }
 0x5a0   : > { %3310 = vmatmul.msk.f32.vlgmr.msra.gmra.mxu3 %vm1364_vm1, %v1760_v62 }
 0x5a7   : > { %v1921_v59 = vpop.f32.mrf.mxu1 }
 0x5a8   : > { %3314 = vmatmul.msk.f32.vlgmr.msrb.gmra.mxu3 %vm1330_vm2, %v1849_v38 }
 0x623   : > { %v1783_v0 = vpop.f32.mrf.mxu3 }
 0x624   : > { %v1807_v1 = vadd.f32 %v1806_v63, %v1783_v0  ;;  %v3453_v63 = vld [vmem:[%s4344_s2] ss:$0 sm:$0xff]  ;;  %s4351_s2 = sld [smem:[#allocation23_spill]] }
 0x626   : > { %v1810_v4 = vrot.slane %v1807_v1, 7 }
 0x628   : > { %v1813_v5 = vsel %vm1812_vm11, %v1582_v3, %v1810_v4 }
 0x629   : > { %v1817_v6 = vadd.f32 %v3452_v2, %v1813_v5 }
 0x62a   : > { %v2297_v24 = vld [vmem:[%s4351_s2 + $0x8] sm:$0xff]  ;;  %v2296_v25 = vld [vmem:[%s4351_s2] sm:$0xff] }
 0x62b   : > { %v1818_v7 = vadd.f32 %v1817_v6, %v3969_v9  ;;  %v1944_v61 = vpop.f32.mrf.mxu3 }
 0x62d   : > { %v1820_v8 = vsel %vm1819_vm12, %v1818_v7, 0.0 }
 0x62e   : > { %1821 = vadd.xlane.f32.xlu1 %v1820_v8 }
 0x647   : > { %1973 = vrot.lane.b32.xlu1 %v1852_v49, %s4300_s13  ;;  %v2050_v49 = vld [vmem:[%s4346_s21 + $0x18] sm:$0xff] }
 0x648   : > { %2079 = vmatpush.msra.mxu0 %v2050_v49 }
 0x6a1   : > { %v1822_v17 = vpop.xlane.xlu1 %1821 }
 0x6a2   : > { %v1830_v18 = vmul.f32 %v1829_v16, %v1822_v17 }
 0x6a4   : > { %v4038_v9 = vsub.f32 %v1818_v7, %v1830_v18 }
 0x6a6   : > { %v1832_v19 = vmul.f32 %v4038_v9, %v4038_v9 }
 0x6a8   : > { %v1833_v21 = vsel %vm1819_vm12, %v1832_v19, 0.0 }
 0x6a9   : > { %1834 = vadd.xlane.f32.xlu0 %v1833_v21 }
 0x71c   : > { %v1835_v50 = vpop.xlane.xlu0 %1834 }
 0x71d   : > { %v1836_v20 = vmul.f32 %v1835_v50, %v1829_v16  ;;  %v2049_v50 = vld [vmem:[%s4346_s21 + $0x10] sm:$0xff] }
 0x71e   : > { %2080 = vmatpush.msra.mxu0 %v2049_v50 }
 0x71f   : > { %v1837_v43 = vadd.f32 1e-05, %v1836_v20  ;;  %v2048_v20 = vld [vmem:[%s4346_s21 + $0x8] sm:$0xff] }
 0x720   : > { %2081 = vmatpush.msra.mxu0 %v2048_v20 }
 0x721   : > { %3482 = vrsqrt.f32 %v1837_v43  ;;  %vm1844_vm0 = vweird.f32 %v1837_v43 }
 0x727   : > { %v3483_v51 = vpop.eup %3482 }
 0x728   : > { %v1839_v52 = vmul.f32 %v3483_v51, %v1837_v43  ;;  %vm1845_vm15 = vweird.f32 %v3483_v51  ;;  %v2047_v43 = vld [vmem:[%s4346_s21] sm:$0xff] }
 0x729   : > { %vm1846_vm5 = vmor %vm1844_vm0, %vm1845_vm15  ;;  %2082 = vmatpush.msra.mxu0 %v2047_v43 }
 0x72a   : > { %v1840_v53 = vmul.f32 %v3483_v51, %v1839_v52 }
 0x72c   : > { %v1841_v54 = vmul.f32 0.5, %v1840_v53 }
 0x72e   : > { %v1842_v55 = vsub.f32 1.5, %v1841_v54 }
 0x730   : > { %v1843_v56 = vmul.f32 %v3483_v51, %v1842_v55 }
 0x732   : > { %v1847_v57 = vsel %vm1846_vm5, %v3483_v51, %v1843_v56  ;;  %v2093_v51 = vld [vmem:[%s4347_s7 + $0x18] sm:$0xff] }
 0x733   : > { %v1848_v58 = vmul.f32 %v1847_v57, %v4038_v9  ;;  %v1974_v9 = vpop.permute.xlu1 %1973  ;;  %2113 = vmatpush.msra.mxu1 %v2093_v51 }
 0x735   : > { %3312 = vmatmul.msk.f32.vlgmr.msrb.gmra.mxu0 %vm1330_vm2, %v1848_v58 }
 0x7b2   : > { %v1898_v60 = vpop.f32.mrf.mxu0 }
 0x7b3   : > { %v1922_v62 = vadd.f32 %v1921_v59, %v1898_v60 }
 0x7b5   : > { %v1947_v0 = vadd.f32 %v1944_v61, %v1922_v62 }
 0x7b7   : > { %v1951_v1 = vadd.f32 %v3453_v63, %v1947_v0  ;;  %v2092_v0 = vld [vmem:[%s4347_s7 + $0x10] sm:$0xff] }
 0x7b8   : > { %2114 = vmatpush.msra.mxu1 %v2092_v0 }
 0x7b9   : > { %3484 = vtanh.f32 %v1951_v1  ;;  %v3315_v3 = vmul.f32 -1.442695, %v1951_v1  ;;  %v2091_v1 = vld [vmem:[%s4347_s7 + $0x8] sm:$0xff] }
 0x7ba   : > { %2115 = vmatpush.msra.mxu1 %v2091_v1 }
 0x7bb   : > { %3486 = vpow2.f32 %v3315_v3 }
 0x7bf   : > { %v3485_v2 = vpop.eup %3484 }
 0x7c0   : > { %1978 = vrot.lane.b32.xlu2 %v3485_v2, %s4302_s8  ;;  %v2090_v2 = vld [vmem:[%s4347_s7] sm:$0xff] }
 0x7c1   : > { %v3487_v4 = vpop.eup %3486  ;;  %2116 = vmatpush.msra.mxu1 %v2090_v2 }
 0x7c2   : > { %v1955_v5 = vadd.f32 1.0, %v3487_v4 }
 0x7c4   : > { %3488 = vrcp.f32 %v1955_v5  ;;  %v1967_v12 = vand.u32 2147483648, %v1955_v5  ;;  %vm1961_vm7 = vweird.f32 %v1955_v5  ;;  %v1965_v13 = vand.u32 2147483647, %v1955_v5 }
 0x7c6   : > { %v1968_v15 = vor.u32 1.1754944e-38, %v1967_v12  ;;  %vm1966_vm10 = vcmp.eq.f32.partialorder %v1965_v13, 8.507059e+37  ;;  %v2124_v12 = vld [vmem:[%s4349_s19] sm:$0xff]  ;;  %v3323_v13 = vld [vmem:[%s4350_s0 + $0x8] sm:$0xff]  ;;  %s4357_s19 = sld [smem:[#allocation16_spill]] }
 0x7c7   : > { %s4361_s0 = sld [smem:[#allocation17_spill]] }
 0x7ca   : > { %v3489_v6 = vpop.eup %3488 }
 0x7cb   : > { %v1957_v7 = vmul.f32 %v3489_v6, %v1955_v5  ;;  %vm1962_vm6 = vweird.f32 %v3489_v6 }
 0x7cc   : > { %vm1963_vm8 = vmor %vm1961_vm7, %vm1962_vm6  ;;  %vm2060_vm6 = vcmask 818176   ;;  %vm2161_vm7 = vcmask 57344  }
 0x7cd   : > { %v1958_v8 = vsub.f32 1.0, %v1957_v7  ;;  %v2123_v7 = vld [vmem:[#allocation7] sm:$0x1] }
 0x7cf   : > { %v1959_v10 = vmul.f32 %v3489_v6, %v1958_v8  ;;  %v3454_v8 = vld [vmem:[%s4348_s11] ss:$0 sm:$0xff]  ;;  %s4356_s11 = sld [smem:[#allocation31_spill]] }
 0x7d1   : > { %v1960_v11 = vadd.f32 %v3489_v6, %v1959_v10 }
 0x7d3   : > { %v1964_v14 = vsel %vm1963_vm8, %v3489_v6, %v1960_v11  ;;  %v3663_v6 = vmov 0  }
 0x7d4   : > { %v1969_v16 = vsel %vm1966_vm10, %v1968_v15, %v1964_v14  ;;  %3450 = vset.pattern.permute.xlu0 %v3663_v6 }
 0x7d5   : > { %v1976_v19 = vmul.f32 %v1974_v9, %v1969_v16  ;;  %v2299_v9 = vld [vmem:[%s4351_s2 + $0x18] sm:$0xff] }
 0x81a   : > { %v1979_v17 = vpop.permute.xlu2 %1978 }
 0x81b   : > { %v1981_v18 = vmul.f32 %v1979_v17, %v1969_v16 }
 0x81d   : > { %1983 = vrot.lane.b32.xlu2 %v1981_v18, %s4300_s13 }
 0x877   : > { %v1984_v21 = vpop.permute.xlu2 %1983 }
 0x878   : > { %v4067_v22 = vadd.f32 %v1984_v21, %v1976_v19  ;;  %v2122_v21 = vld [vmem:[%s4352_s26] sm:$0x1]  ;;  %s4354_s26 = sld [smem:[#allocation14_spill]] }
 0x87a   : > { %3490 = vtanh.f32 %v4067_v22 }
 0x87e   : > { %v3326_v50 = vld [vmem:[%s4354_s26 + $0x8] sm:$0xff]  ;;  %v2186_v20 = vld [vmem:[%s4354_s26] sm:$0xff] }
 0x87f   : > { %2206 = vmatpush.msrb.mxu2 %v2186_v20 }
 0x880   : > { %v3491_v23 = vpop.eup %3490 }
 0x881   : > { %1989 = vrot.lane.b32.xlu2 %v3491_v23, %s4302_s8  ;;  %v2298_v23 = vld [vmem:[%s4351_s2 + $0x10] sm:$0xff]  ;;  %s4359_s8 = sld [smem:[#allocation32_spill]] }
 0x8db   : > { %v1990_v28 = vpop.permute.xlu2 %1989 }
 0x8dc   : > { %v1992_v29 = vmul.f32 %v1990_v28, %v1969_v16 }
 0x8de   : > { %1998 = vrot.lane.b32.xlu0 %v1992_v29, %s4300_s13  ;;  %v2240_v29 = vrot.slane %v2121_v27, 1  ;;  %s4358_s13 = smov %s4357_s19 }
 0x8e6   : > { %2130 = vperm.xlu0 %3450, %v2123_v7  }
 0x950   : > { %v4076_v30 = vpop.permute.xlu0 %1998 }
 0x951   : > { %3103 = vst.msk [vmem:[#allocation2] sm:$0x3] %vm1819_vm12, %v4076_v30  ;;  %3316 = vmatmul.msk.f32.vlgmr.msra.gmra.mxu2 %vm1330_vm2, %v4076_v30 }
 0x958   : > { %v2131_v26 = vpop.permute.xlu0 %2130 }
 0x959   : > { %v2133_v28 = vperm.slane %v2131_v26, 0 }
 0x9d4   : > { %v2019_v32 = vpop.f32.mrf.mxu2 }
 0x9d5   : > { %v2023_v33 = vsel %vm2022_vm13, %v2019_v32, -inf }
 0x9d6   : > { %2024 = vmax.xlane.f32.xlu2 %v2023_v33 }
 0xa49   : > { %v2025_v37 = vpop.xlane.xlu2 %2024 }
 0xa4a   : > { %v2026_v38 = vsub.f32 %v2019_v32, %v2025_v37 }
 0xa4c   : > { %v2027_v39 = vmul.f32 1.442695, %v2026_v38 }
 0xa4e   : > { %3492 = vpow2.f32 %v2027_v39 }
 0xa54   : > { %v3493_v40 = vpop.eup %3492 }
 0xa55   : > { %v2029_v41 = vsel %vm2022_vm13, %v3493_v40, 0.0 }
 0xa56   : > { %2030 = vadd.xlane.f32.xlu1 %v2029_v41 }
 0xac9   : > { %v2031_v52 = vpop.xlane.xlu1 %2030 }
 0xaca   : > { %3494 = vrcp.f32 %v2031_v52  ;;  %v2043_v56 = vand.u32 2147483648, %v2031_v52  ;;  %v2041_v58 = vand.u32 2147483647, %v2031_v52  ;;  %vm2037_vm15 = vweird.f32 %v2031_v52 }
 0xacc   : > { %v2044_v60 = vor.u32 1.1754944e-38, %v2043_v56  ;;  %vm2042_vm5 = vcmp.eq.f32.partialorder %v2041_v58, 8.507059e+37 }
 0xad0   : > { %v3495_v53 = vpop.eup %3494 }
 0xad1   : > { %v2033_v54 = vmul.f32 %v3495_v53, %v2031_v52  ;;  %vm2038_vm14 = vweird.f32 %v3495_v53 }
 0xad2   : > { %vm2039_vm0 = vmor %vm2037_vm15, %vm2038_vm14  ;;  %vm2187_vm15 = vcmask 64512  }
 0xad3   : > { %v2034_v55 = vsub.f32 1.0, %v2033_v54 }
 0xad5   : > { %v2035_v57 = vmul.f32 %v3495_v53, %v2034_v55 }
 0xad7   : > { %v2036_v59 = vadd.f32 %v3495_v53, %v2035_v57 }
 0xad9   : > { %v2040_v61 = vsel %vm2039_vm0, %v3495_v53, %v2036_v59 }
 0xada   : > { %v2045_v62 = vsel %vm2042_vm5, %v2044_v60, %v2040_v61 }
 0xadb   : > { %v2046_v63 = vmul.f32 %v3493_v40, %v2045_v62 }
 0xadd   : > { %3318 = vmatmul.msk.f32.vlgmr.msra.gmra.mxu0 %vm2060_vm6, %v2046_v63 }
 0xb5a   : > { %v2084_v3 = vpop.f32.mrf.mxu0 }
 0xb5b   : > { %v2087_v4 = vmax.f32 %v2084_v3, 0.0 }
 0xb5d   : > { %v4101_v5 = vadd.f32 %v2087_v4, %v4076_v30 }
 0xb5f   : > { %3319 = vmatmul.msk.f32.vlgmr.msra.gmra.mxu1 %vm1330_vm2, %v4101_v5 }
 0xbdc   : > { %v2118_v10 = vpop.f32.mrf.mxu1 }
 0xbdd   : > { %v4106_v11 = vadd.f32 %v3454_v8, %v2118_v10 }
 0xbdf   : > { %v2125_v14 = vperm.slane %v4106_v11, 0  ;;  %v2213_v15 = vperm.slane %v4106_v11, 1 }
 0xbe1   : > { %v2126_v16 = vadd.f32 %v2125_v14, %v2124_v12  ;;  %v2214_v17 = vadd.f32 %v3323_v13, %v2213_v15  ;;  %v2303_v13 = vld [vmem:[%s4351_s2 + $0x38] sm:$0xff]  ;;  %v2302_v14 = vld [vmem:[%s4351_s2 + $0x30] sm:$0xff] }
 0xbe2   : > { %2324 = vmatpush.msra.mxu2 %v2303_v13  ;;  %v2307_v15 = vld [vmem:[%s4355_s23 + $0x18] sm:$0xff] }
 0xbe3   : > { %3496 = vtanh.f32 %v2126_v16  ;;  %v2301_v16 = vld [vmem:[%s4351_s2 + $0x28] sm:$0xff] }
 0xbe4   : > { %3498 = vtanh.f32 %v2214_v17  ;;  %v2306_v17 = vld [vmem:[%s4355_s23 + $0x10] sm:$0xff]  ;;  %2325 = vmatpush.msra.mxu2 %v2302_v14 }
 0xbe6   : > { %2326 = vmatpush.msra.mxu2 %v2301_v16 }
 0xbe9   : > { %v3497_v18 = vpop.eup %3496 }
 0xbea   : > { %v3499_v19 = vpop.eup %3498  ;;  %3320 = vmatpush.xpose.msk.msra.mxu3 %vm1330_vm2, %v3497_v18  ;;  %v2300_v18 = vld [vmem:[%s4351_s2 + $0x20] sm:$0xff]  ;;  %s4366_s2 = smov 112  }
 0xbeb   : > { %3324 = vmatpush.xpose.msk.msrb.mxu1 %vm1330_vm2, %v3499_v19  ;;  %2327 = vmatpush.msra.mxu2 %v2300_v18  ;;  %v2304_v19 = vld [vmem:[%s4355_s23] sm:$0xff] }
 0xbed   : > { %3321 = vmatmul.msk.f32.vlgmr.msra.gmra.mxu3 %vm1330_vm2, %v2122_v21 }
 0xbee   : > { %3325 = vmatmul.msk.f32.vlgmr.msrb.gmra.mxu1 %vm1330_vm2, %v2122_v21  ;;  %2287 = vmatpush.msrb.mxu3 %v3326_v50  ;;  %v2424_v21 = vld [vmem:[%s4356_s11 + $0x18] sm:$0xff] }
 0xbef   : > { %2344 = vmatpush.msra.mxu1 %v2299_v9  ;;  %v2305_v9 = vld [vmem:[%s4355_s23 + $0x8] sm:$0xff] }
 0xbf0   : > { %2367 = vmatpush.msra.mxu3 %v2307_v15 }
 0xbf1   : > { %2345 = vmatpush.msra.mxu1 %v2298_v23  ;;  %v2423_v23 = vld [vmem:[%s4356_s11 + $0x10] sm:$0xff] }
 0xbf2   : > { %2368 = vmatpush.msra.mxu3 %v2306_v17 }
 0xbf3   : > { %2346 = vmatpush.msra.mxu1 %v2297_v24  ;;  %v2422_v24 = vld [vmem:[%s4356_s11 + $0x8] sm:$0xff] }
 0xbf4   : > { %2369 = vmatpush.msra.mxu3 %v2305_v9 }
 0xbf5   : > { %2347 = vmatpush.msra.mxu1 %v2296_v25  ;;  %v2421_v25 = vld [vmem:[%s4356_s11] sm:$0xff] }
 0xbf6   : > { %3329 = vmatmul.msk.f32.vlgmr.msra.gmra.mxu1 %vm1330_vm2, %v4101_v5  ;;  %2370 = vmatpush.msra.mxu3 %v2304_v19 }
 0xc6b   : > { %v2236_v30 = vpop.f32.mrf.mxu1 }
 0xc6c   : > { %v2237_v32 = vadd.f32 %v2236_v30, %v2133_v28  ;;  %v2456_v30 = vld [vmem:[%s4357_s19 + $0x8] sm:$0xf]  ;;  %s4360_s19 = sld [smem:[#allocation19_spill]] }
 0xc6d   : > { %3333 = vmatpush.xpose.msk.msrb.mxu1 %vm1364_vm1, %v2456_v30 }
 0xc6e   : > { %v2242_v33 = vadd.f32 %v2240_v29, %v2237_v32 }
 0xc70   : > { %v2157_v34 = vpop.f32.mrf.mxu3  ;;  %v2243_v35 = vsel %vm2161_vm7, %v2242_v33, -inf }
 0xc71   : > { %v2158_v36 = vadd.f32 %v2157_v34, %v2133_v28  ;;  %2244 = vmax.xlane.f32.xlu0 %v2243_v35 }
 0xc73   : > { %v2160_v37 = vadd.f32 %v2158_v36, %v2121_v27  ;;  %v4181_v20 = vpop.f32.mrf.mxu1 }
 0xc75   : > { %v2162_v38 = vsel %vm2161_vm7, %v2160_v37, -inf }
 0xc76   : > { %2163 = vmax.xlane.f32.xlu2 %v2162_v38  ;;  %v3346_v38 = vld [vmem:[%s4358_s13 + $0x18] sm:$0xf] }
 0xce4   : > { %v2245_v39 = vpop.xlane.xlu0 %2244 }
 0xce5   : > { %v2246_v40 = vsub.f32 %v2242_v33, %v2245_v39  ;;  %v3456_v33 = vld [vmem:[%s4359_s8] ss:$0 sm:$0xff]  ;;  %v3345_v39 = vld [vmem:[%s4358_s13 + $0x10] sm:$0xff]  ;;  %s4362_s8 = sld [smem:[#allocation33_spill]] }
 0xce7   : > { %v2247_v41 = vmul.f32 1.442695, %v2246_v40 }
 0xce9   : > { %3500 = vpow2.f32 %v2247_v41  ;;  %v2164_v42 = vpop.xlane.xlu2 %2163 }
 0xcea   : > { %v2165_v44 = vsub.f32 %v2160_v37, %v2164_v42 }
 0xcec   : > { %v2166_v45 = vmul.f32 1.442695, %v2165_v44 }
 0xcee   : > { %3502 = vpow2.f32 %v2166_v45  ;;  %v4171_v45 = vld [vmem:[%s4360_s19] sm:$0x3]  ;;  %s4363_s19 = sld [smem:[#allocation35_spill]] }
 0xcef   : > { %v3501_v46 = vpop.eup %3500 }
 0xcf0   : > { %v2249_v47 = vsel %vm2161_vm7, %v3501_v46, 0.0 }
 0xcf1   : > { %2250 = vadd.xlane.f32.xlu1 %v2249_v47 }
 0xcf4   : > { %v3503_v48 = vpop.eup %3502 }
 0xcf5   : > { %v2168_v49 = vsel %vm2161_vm7, %v3503_v48, 0.0 }
 0xcf6   : > { %2169 = vadd.xlane.f32.xlu2 %v2168_v49  ;;  %v2457_v49 = vld [vmem:[%s4361_s0] sm:$0xff] }
 0xd0a   : > { %2544 = vrot.lane.b32.xlu1 %v2456_v30, %s4305_s18 }
 0xd64   : > { %v2251_v43 = vpop.xlane.xlu1 %2250 }
 0xd65   : > { %3504 = vrcp.f32 %v2251_v43  ;;  %v2263_v55 = vand.u32 2147483648, %v2251_v43  ;;  %v2261_v58 = vand.u32 2147483647, %v2251_v43  ;;  %vm2257_vm10 = vweird.f32 %v2251_v43 }
 0xd67   : > { %v2264_v61 = vor.u32 1.1754944e-38, %v2263_v55  ;;  %vm2262_vm14 = vcmp.eq.f32.partialorder %v2261_v58, 8.507059e+37 }
 0xd69   : > { %v2170_v51 = vpop.xlane.xlu2 %2169 }
 0xd6a   : > { %3506 = vrcp.f32 %v2170_v51  ;;  %v2182_v0 = vand.u32 2147483648, %v2170_v51  ;;  %v2180_v3 = vand.u32 2147483647, %v2170_v51  ;;  %vm2176_vm5 = vweird.f32 %v2170_v51 }
 0xd6b   : > { %v3505_v52 = vpop.eup %3504 }
 0xd6c   : > { %v2253_v53 = vmul.f32 %v3505_v52, %v2251_v43  ;;  %vm2258_vm8 = vweird.f32 %v3505_v52  ;;  %v2183_v7 = vor.u32 1.1754944e-38, %v2182_v0  ;;  %vm2181_vm7 = vcmp.eq.f32.partialorder %v2180_v3, 8.507059e+37 }
 0xd6d   : > { %vm2259_vm13 = vmor %vm2257_vm10, %vm2258_vm8 }
 0xd6e   : > { %v2254_v54 = vsub.f32 1.0, %v2253_v53 }
 0xd70   : > { %v3507_v56 = vpop.eup %3506  ;;  %v2255_v57 = vmul.f32 %v3505_v52, %v2254_v54 }
 0xd71   : > { %v2172_v59 = vmul.f32 %v3507_v56, %v2170_v51  ;;  %vm2177_vm0 = vweird.f32 %v3507_v56 }
 0xd72   : > { %v2256_v60 = vadd.f32 %v3505_v52, %v2255_v57  ;;  %vm2178_vm6 = vmor %vm2176_vm5, %vm2177_vm0 }
 0xd73   : > { %v2173_v62 = vsub.f32 1.0, %v2172_v59 }
 0xd74   : > { %v2260_v63 = vsel %vm2259_vm13, %v3505_v52, %v2256_v60  ;;  %v2712_v60 = vrot.slane %v4171_v45, 1 }
 0xd75   : > { %v2265_v1 = vsel %vm2262_vm14, %v2264_v61, %v2260_v63  ;;  %v2174_v2 = vmul.f32 %v3507_v56, %v2173_v62 }
 0xd76   : > { %v2266_v4 = vmul.f32 %v3501_v46, %v2265_v1 }
 0xd77   : > { %v2175_v6 = vadd.f32 %v3507_v56, %v2174_v2 }
 0xd78   : > { %3327 = vmatmul.msk.f32.vlgmr.msrb.gmra.mxu3 %vm2187_vm15, %v2266_v4 }
 0xd79   : > { %v2179_v8 = vsel %vm2178_vm6, %v3507_v56, %v2175_v6 }
 0xd7a   : > { %v2184_v10 = vsel %vm2181_vm7, %v2183_v7, %v2179_v8 }
 0xd7b   : > { %v2185_v12 = vmul.f32 %v3503_v48, %v2184_v10  ;;  %v2458_v48 = vld [vmem:[%s4361_s0 + $0x8] sm:$0xf] }
 0xd7c   : > { %v2545_v36 = vpop.permute.xlu1 %2544  ;;  %3336 = vmatpush.msk.msrb.mxu3 %vm1425_vm4, %v2458_v48 }
 0xd7d   : > { %3322 = vmatmul.msk.f32.vlgmr.msrb.gmra.mxu2 %vm2187_vm15, %v2185_v12  ;;  %3338 = vmatpush.xpose.msk.msrb.mxu0 %vm1364_vm1, %v2545_v36  ;;  %v2916_v36 = vld [vmem:[%s4363_s19 + $0x38] sm:$0xff] }
 0xd7e   : > { %2441 = vmatpush.msrb.mxu2 %v2424_v21  ;;  %2535 = vmatpush.msrb.mxu3 %v2457_v49 }
 0xd80   : > { %3330 = vmatmul.msk.f32.vlgmr.msra.gmra.mxu3 %vm1330_vm2, %v4048_v31  ;;  %2442 = vmatpush.msrb.mxu2 %v2423_v23  ;;  %v2455_v31 = vld [vmem:[%s4358_s13] sm:$0xff]  ;;  %v2453_v23 = vld [vmem:[%s4362_s8 + $0x18] sm:$0xff] }
 0xd81   : > { %3334 = vmatpush.xpose.msk.msrb.mxu1 %vm1364_vm1, %v2455_v31  ;;  %2542 = vrot.lane.b32.xlu2 %v2455_v31, %s4305_s18 }
 0xd82   : > { %2443 = vmatpush.msrb.mxu2 %v2422_v24  ;;  %v2452_v24 = vld [vmem:[%s4362_s8 + $0x10] sm:$0xff] }
 0xd84   : > { %2444 = vmatpush.msrb.mxu2 %v2421_v25 }
 0xd85   : > { %2646 = vmatpush.msra.mxu1 %v2453_v23 }
 0xd87   : > { %2647 = vmatpush.msra.mxu1 %v2452_v24 }
 0xddb   : > { %v2543_v37 = vpop.permute.xlu2 %2542 }
 0xddc   : > { %3339 = vmatpush.xpose.msk.msrb.mxu0 %vm1364_vm1, %v2543_v37 }
 0xde0   : > { %3349 = vmatpush.xpose.msk.msra.mxu0 %vm1364_vm1, %v3346_v38 }
 0xde4   : > { %3350 = vmatpush.xpose.msk.msra.mxu0 %vm1364_vm1, %v3345_v39 }
 0xdfb   : > { %v2289_v26 = vpop.f32.mrf.mxu3 }
 0xdfc   : > { %v2293_v27 = vrot.slane %v2289_v26, 7 }
 0xe00   : > { %v2208_v28 = vpop.f32.mrf.mxu2 }
 0xe01   : > { %v4145_v29 = vsel %vm1812_vm11, %v2208_v28, %v2293_v27 }
 0xe02   : > { %3328 = vmatmul.msk.f32.vlgmr.msra.gmra.mxu2 %vm1330_vm2, %v4145_v29 }
 0xe0a   : > { %3332 = vmatmul.msk.f32.vlgmr.msrb.gmra.mxu2 %vm1330_vm2, %v4101_v5 }
 0xe85   : > { %v4157_v32 = vpop.f32.mrf.mxu2 }
 0xe8d   : > { %v2446_v34 = vpop.f32.mrf.mxu2 }
 0xe8e   : > { %v2447_v35 = vadd.f32 %v3456_v33, %v2446_v34 }
 0xe90   : > { %2540 = vrot.lane.b32.xlu0 %v2447_v35, %s4305_s18  ;;  %3335 = vmatmul.msk.f32.vlgmr.msrb.gmra.mxu1 %vm1364_vm1, %v2447_v35  ;;  %v2681_v41 = vrot.slane %v2447_v35, 1 }
 0xe98   : > { %2601 = vrot.lane.b32.xlu0 %v2458_v48, %s4305_s18 }
 0xea0   : > { %2599 = vrot.lane.b32.xlu0 %v2457_v49, %s4305_s18  ;;  %v3022_v49 = vld [vmem:[#allocation8 + $0x10] sm:$0xff] }
 0xea8   : > { %2769 = vrot.lane.b32.xlu0 %v3346_v38, %s4305_s18 }
 0xeb0   : > { %2767 = vrot.lane.b32.xlu0 %v3345_v39, %s4305_s18 }
 0xf02   : > { %v2541_v40 = vpop.permute.xlu0 %2540 }
 0xf03   : > { %3340 = vmatmul.msk.f32.vlgmr.msrb.gmra.mxu0 %vm1364_vm1, %v2541_v40 }
 0xf04   : > { %2871 = vmatpush.msrb.mxu0 %v2453_v23 }
 0xf06   : > { %2872 = vmatpush.msrb.mxu0 %v2452_v24 }
 0xf0a   : > { %v2602_v63 = vpop.permute.xlu0 %2601 }
 0xf0b   : > { %3351 = vmatmul.msk.f32.vlgmr.msra.gmra.mxu0 %vm1364_vm1, %v2681_v41  ;;  %3341 = vmatpush.msk.msra.mxu2 %vm1425_vm4, %v2602_v63 }
 0xf0d   : > { %v2485_v52 = vpop.f32.mrf.mxu1 }
 0xf0e   : > { %v2488_v54 = vmul.f32 0.25, %v2485_v52  ;;  %v2450_v52 = vld [vmem:[%s4362_s8] sm:$0xff] }
 0xf10   : > { %v2489_v56 = vadd.f32 %v2488_v54, %v4171_v45 }
 0xf12   : > { %v2490_v59 = vsel %vm1396_vm3, %v2489_v56, -inf  ;;  %v2600_v0 = vpop.permute.xlu0 %2599 }
 0xf13   : > { %2624 = vmatpush.msra.mxu2 %v2600_v0 }
 0xf1a   : > { %v2770_v21 = vpop.permute.xlu0 %2769 }
 0xf1b   : > { %3354 = vmatpush.xpose.msk.msrb.mxu1 %vm1364_vm1, %v2770_v21 }
 0xf22   : > { %v2768_v25 = vpop.permute.xlu0 %2767 }
 0xf23   : > { %3355 = vmatpush.xpose.msk.msrb.mxu1 %vm1364_vm1, %v2768_v25 }
 0xf80   : > { %v2569_v42 = vpop.f32.mrf.mxu0 }
 0xf81   : > { %v2572_v44 = vmul.f32 0.25, %v2569_v42 }
 0xf83   : > { %v2573_v46 = vadd.f32 %v2572_v44, %v4171_v45 }
 0xf85   : > { %v2574_v47 = vsel %vm1396_vm3, %v2573_v46, -inf }
 0xf86   : > { %2575 = vmax.xlane.f32.xlu1 %v2574_v47  ;;  %v3023_v47 = vld [vmem:[#allocation8 + $0x18] sm:$0xff] }
 0xf88   : > { %v2707_v57 = vpop.f32.mrf.mxu0 }
 0xf89   : > { %v2710_v58 = vmul.f32 0.25, %v2707_v57 }
 0xf8b   : > { %v4191_v61 = vadd.f32 %v2712_v60, %v2710_v58 }
 0xf8d   : > { %v2715_v62 = vsel %vm1396_vm3, %v4191_v61, -inf }
 0xf9f   : > { %2765 = vrot.lane.b32.xlu1 %v2681_v41, %s4305_s18  ;;  %s4364_s18 = smov %s4363_s19  ;;  %s4365_s19 = sld [smem:[#allocation25_spill]] }
 0xfa0   : > { %v2915_v40 = vld [vmem:[%s4364_s18 + $0x30] sm:$0xff]  ;;  %v2914_v44 = vld [vmem:[%s4364_s18 + $0x28] sm:$0xff] }
 0xff9   : > { %v2576_v50 = vpop.xlane.xlu1 %2575 }
 0xffa   : > { %v2577_v43 = vsub.f32 %v2573_v46, %v2576_v50  ;;  %v2913_v46 = vld [vmem:[%s4364_s18 + $0x20] sm:$0xff]  ;;  %v3021_v50 = vld [vmem:[#allocation8 + $0x8] sm:$0xff] }
 0xffc   : > { %v2578_v51 = vmul.f32 1.442695, %v2577_v43  ;;  %v3020_v43 = vld [vmem:[#allocation8] sm:$0xff] }
 0xffe   : > { %3508 = vpow2.f32 %v2578_v51  ;;  %v2451_v51 = vld [vmem:[%s4362_s8 + $0x8] sm:$0xff] }
 0xfff   : > { %2669 = vmatpush.msra.mxu3 %v2451_v51 }
0x1001   : > { %2670 = vmatpush.msra.mxu3 %v2450_v52 }
0x1004   : > { %v3509_v53 = vpop.eup %3508 }
0x1005   : > { %v2580_v55 = vsel %vm1396_vm3, %v3509_v53, 0.0 }
0x1006   : > { %2581 = vadd.xlane.f32.xlu2 %v2580_v55 }
0x100e   : > { %2491 = vmax.xlane.f32.xlu2 %v2490_v59 }
0x1011   : > { %v2766_v48 = vpop.permute.xlu1 %2765 }
0x1016   : > { %2716 = vmax.xlane.f32.xlu2 %v2715_v62 }
0x1079   : > { %v2582_v1 = vpop.xlane.xlu2 %2581 }
0x107a   : > { %3510 = vrcp.f32 %v2582_v1  ;;  %v2594_v8 = vand.u32 2147483648, %v2582_v1  ;;  %v2592_v13 = vand.u32 2147483647, %v2582_v1  ;;  %vm2588_vm10 = vweird.f32 %v2582_v1 }
0x107c   : > { %v2595_v15 = vor.u32 1.1754944e-38, %v2594_v8  ;;  %vm2593_vm14 = vcmp.eq.f32.partialorder %v2592_v13, 8.507059e+37 }
0x1080   : > { %v3511_v2 = vpop.eup %3510 }
0x1081   : > { %v2584_v3 = vmul.f32 %v3511_v2, %v2582_v1  ;;  %v2492_v4 = vpop.xlane.xlu2 %2491  ;;  %vm2589_vm8 = vweird.f32 %v3511_v2 }
0x1082   : > { %v2493_v6 = vsub.f32 %v2489_v56, %v2492_v4  ;;  %vm2590_vm13 = vmor %vm2588_vm10, %vm2589_vm8  ;;  %v2372_v56 = vpop.f32.mrf.mxu3 }
0x1083   : > { %v2585_v7 = vsub.f32 1.0, %v2584_v3 }
0x1084   : > { %v2494_v10 = vmul.f32 1.442695, %v2493_v6  ;;  %v3455_v6 = vld [vmem:[%s4365_s19] ss:$0 sm:$0xff]  ;;  %s3664_s19 = smov 96  }
0x1085   : > { %v2586_v12 = vmul.f32 %v3511_v2, %v2585_v7 }
0x1086   : > { %3512 = vpow2.f32 %v2494_v10  ;;  %v3347_v10 = vld [vmem:[%s4361_s0 + $0x10] sm:$0xff] }
0x1087   : > { %v2587_v14 = vadd.f32 %v3511_v2, %v2586_v12 }
0x1089   : > { %v2591_v16 = vsel %vm2590_vm13, %v3511_v2, %v2587_v14  ;;  %v2717_v55 = vpop.xlane.xlu2 %2716 }
0x108a   : > { %v2596_v17 = vsel %vm2593_vm14, %v2595_v15, %v2591_v16  ;;  %v2718_v57 = vsub.f32 %v4191_v61, %v2717_v55  ;;  %v2350_v61 = vadd.f32 %v4181_v20, %v4157_v32 }
0x108b   : > { %v2597_v18 = vmul.f32 %v3509_v53, %v2596_v17  ;;  %v3348_v53 = vld [vmem:[%s4361_s0 + $0x18] sm:$0xf] }
0x108c   : > { %v3513_v9 = vpop.eup %3512  ;;  %3352 = vmatpush.msk.msrb.mxu2 %vm1425_vm4, %v3348_v53  ;;  %v2719_v58 = vmul.f32 1.442695, %v2718_v57  ;;  %v2375_v4 = vadd.f32 %v2372_v56, %v2350_v61 }
0x108d   : > { %3342 = vmatmul.msk.f32.vlgmr.msra.gmra.mxu2 %vm1421_vm9, %v2597_v18  ;;  %v2496_v19 = vsel %vm1396_vm3, %v3513_v9, 0.0 }
0x108e   : > { %2497 = vadd.xlane.f32.xlu0 %v2496_v19  ;;  %v2379_v7 = vadd.f32 %v3455_v6, %v2375_v4  ;;  %2760 = vmatpush.msrb.mxu2 %v3347_v10 }
0x1090   : > { %v3331_v8 = vmul.f32 -1.442695, %v2379_v7  ;;  %2894 = vmatpush.msra.mxu2 %v2451_v51 }
0x1092   : > { %2895 = vmatpush.msra.mxu2 %v2450_v52 }
0x10a2   : > { %2824 = vrot.lane.b32.xlu0 %v3347_v10, %s4366_s2 }
0x1101   : > { %v2498_v26 = vpop.xlane.xlu0 %2497 }
0x1102   : > { %3514 = vrcp.f32 %v2498_v26  ;;  %v2510_v31 = vand.u32 2147483648, %v2498_v26  ;;  %v2508_v34 = vand.u32 2147483647, %v2498_v26  ;;  %vm2504_vm0 = vweird.f32 %v2498_v26 }
0x1103   : > { %3516 = vpow2.f32 %v2719_v58 }
0x1104   : > { %v2511_v37 = vor.u32 1.1754944e-38, %v2510_v31  ;;  %vm2509_vm6 = vcmp.eq.f32.partialorder %v2508_v34, 8.507059e+37  ;;  %3518 = vtanh.f32 %v2379_v7 }
0x1105   : > { %3520 = vpow2.f32 %v3331_v8 }
0x1108   : > { %v3515_v27 = vpop.eup %3514 }
0x1109   : > { %v2500_v28 = vmul.f32 %v3515_v27, %v2498_v26  ;;  %vm2505_vm15 = vweird.f32 %v3515_v27  ;;  %v3517_v2 = vpop.eup %3516 }
0x110a   : > { %vm2506_vm5 = vmor %vm2504_vm0, %vm2505_vm15  ;;  %v2721_v3 = vsel %vm1396_vm3, %v3517_v2, 0.0  ;;  %v3519_v45 = vpop.eup %3518 }
0x110b   : > { %v2501_v30 = vsub.f32 1.0, %v2500_v28  ;;  %v3521_v32 = vpop.eup %3520 }
0x110c   : > { %v2383_v13 = vadd.f32 1.0, %v3521_v32 }
0x110d   : > { %v2502_v33 = vmul.f32 %v3515_v27, %v2501_v30 }
0x110f   : > { %v2503_v35 = vadd.f32 %v3515_v27, %v2502_v33 }
0x1110   : > { %v2626_v38 = vpop.f32.mrf.mxu2 }
0x1111   : > { %v2507_v39 = vsel %vm2506_vm5, %v3515_v27, %v2503_v35  ;;  %3343 = vmatmul.msk.f32.vlgmr.msra.gmra.mxu1 %vm1364_vm1, %v2626_v38  ;;  %v2395_v38 = vand.u32 2147483648, %v2383_v13 }
0x1112   : > { %v2512_v41 = vsel %vm2509_vm6, %v2511_v37, %v2507_v39  ;;  %2929 = vmatpush.msra.mxu1 %v2916_v36  ;;  %v2393_v39 = vand.u32 2147483647, %v2383_v13 }
0x1113   : > { %v2513_v42 = vmul.f32 %v3513_v9, %v2512_v41  ;;  %v2396_v41 = vor.u32 1.1754944e-38, %v2395_v38 }
0x1114   : > { %2930 = vmatpush.msra.mxu1 %v2915_v40  ;;  %vm2394_vm15 = vcmp.eq.f32.partialorder %v2393_v39, 8.507059e+37 }
0x1115   : > { %3337 = vmatmul.msk.f32.vlgmr.msrb.gmra.mxu3 %vm1421_vm9, %v2513_v42 }
0x1116   : > { %2931 = vmatpush.msra.mxu1 %v2914_v44 }
0x1118   : > { %2932 = vmatpush.msra.mxu1 %v2913_v46 }
0x1119   : > { %3356 = vmatmul.msk.f32.vlgmr.msrb.gmra.mxu1 %vm1364_vm1, %v2766_v48 }
0x111a   : > { %3043 = vmatpush.msrb.mxu1 %v3023_v47  ;;  %v2825_v47 = vpop.permute.xlu0 %2824 }
0x111c   : > { %3044 = vmatpush.msrb.mxu1 %v3022_v49 }
0x111e   : > { %3045 = vmatpush.msrb.mxu1 %v3021_v50 }
0x1120   : > { %3046 = vmatpush.msrb.mxu1 %v3020_v43 }
0x1121   : > { %3361 = vmatmul.msk.f32.vlgmr.msra.gmra.mxu1 %vm1330_vm2, %v4145_v29 }
0x1129   : > { %3365 = vmatmul.msk.f32.vlgmr.msrb.gmra.mxu1 %vm1330_vm2, %v4106_v11 }
0x118e   : > { %v4217_v54 = vpop.f32.mrf.mxu1 }
0x1196   : > { %v2794_v59 = vpop.f32.mrf.mxu1 }
0x1197   : > { %v2797_v62 = vmul.f32 0.25, %v2794_v59 }
0x1198   : > { %v2537_v63 = vpop.f32.mrf.mxu3 }
0x1199   : > { %3344 = vmatmul.msk.f32.vlgmr.msra.gmra.mxu3 %vm1364_vm1, %v2537_v63  ;;  %v2798_v0 = vadd.f32 %v2797_v62, %v2712_v60  ;;  %v1853_v60 = vld [vmem:[#allocation6] sm:$0x3] }
0x119b   : > { %v2799_v1 = vsel %vm1396_vm3, %v2798_v0, -inf }
0x119c   : > { %2800 = vmax.xlane.f32.xlu2 %v2799_v1 }
0x11a4   : > { %2722 = vadd.xlane.f32.xlu2 %v2721_v3 }
0x11bc   : > { %2826 = vrot.lane.b32.xlu2 %v3348_v53, %s4366_s2  ;;  %s4369_s2 = sld [smem:[#allocation37_spill]] }
0x11c2   : > { %v2973_v61 = vld [vmem:[%s4369_s2 + $0x38] sm:$0xff]  ;;  %v2972_v4 = vld [vmem:[%s4369_s2 + $0x30] sm:$0xff]  ;;  %v2971_v6 = vld [vmem:[%s4369_s2 + $0x28] sm:$0xff] }
0x11c3   : > { %2986 = vmatpush.msra.mxu0 %v2973_v61  ;;  %v2970_v7 = vld [vmem:[%s4369_s2 + $0x20] sm:$0xff] }
0x11c4   : > { %2406 = vrot.lane.b32.xlu2 %v3519_v45, %s4367_s3 }
0x11c5   : > { %2987 = vmatpush.msra.mxu0 %v2972_v4 }
0x11c7   : > { %2988 = vmatpush.msra.mxu0 %v2971_v6 }
0x11c9   : > { %2989 = vmatpush.msra.mxu0 %v2970_v7 }
0x11cc   : > { %2401 = vrot.lane.b32.xlu2 %v1853_v60, %s4368_s4 }
0x120f   : > { %v2801_v20 = vpop.xlane.xlu2 %2800 }
0x1210   : > { %v2802_v12 = vsub.f32 %v2798_v0, %v2801_v20  ;;  %v2912_v20 = vld [vmem:[%s4364_s18 + $0x18] sm:$0xff] }
0x1212   : > { %v2803_v14 = vmul.f32 1.442695, %v2802_v12  ;;  %v2969_v12 = vld [vmem:[%s4369_s2 + $0x18] sm:$0xff] }
0x1214   : > { %3522 = vpow2.f32 %v2803_v14  ;;  %v2911_v14 = vld [vmem:[%s4364_s18 + $0x10] sm:$0xff] }
0x1215   : > { %3524 = vrcp.f32 %v2383_v13 }
0x1217   : > { %v2723_v15 = vpop.xlane.xlu2 %2722 }
0x1218   : > { %3526 = vrcp.f32 %v2723_v15  ;;  %v2735_v25 = vand.u32 2147483648, %v2723_v15  ;;  %v2733_v27 = vand.u32 2147483647, %v2723_v15  ;;  %vm2729_vm8 = vweird.f32 %v2723_v15 }
0x121a   : > { %v3523_v16 = vpop.eup %3522  ;;  %v2736_v31 = vor.u32 1.1754944e-38, %v2735_v25 }
0x121b   : > { %v2805_v17 = vsel %vm1396_vm3, %v3523_v16, 0.0  ;;  %v3525_v18 = vpop.eup %3524  ;;  %vm2734_vm3 = vcmp.eq.f32.partialorder %v2733_v27, 8.507059e+37 }
0x121c   : > { %2806 = vadd.xlane.f32.xlu1 %v2805_v17  ;;  %v2385_v23 = vmul.f32 %v3525_v18, %v2383_v13  ;;  %vm2390_vm13 = vweird.f32 %v3525_v18  ;;  %v2672_v45 = vpop.f32.mrf.mxu3  ;;  %v2909_v17 = vld [vmem:[%s4364_s18] sm:$0xff] }
0x121e   : > { %v3527_v9 = vpop.eup %3526  ;;  %v2386_v28 = vsub.f32 1.0, %v2385_v23  ;;  %v3052_v23 = vld [vmem:[#allocation10] sm:$0xff] }
0x121f   : > { %v2725_v19 = vmul.f32 %v3527_v9, %v2723_v15  ;;  %v2827_v21 = vpop.permute.xlu2 %2826  ;;  %vm2730_vm7 = vweird.f32 %v3527_v9  ;;  %v2968_v15 = vld [vmem:[%s4369_s2 + $0x10] sm:$0xff] }
0x1220   : > { %3357 = vmatpush.msk.msrb.mxu3 %vm1425_vm4, %v2827_v21  ;;  %vm2731_vm10 = vmor %vm2729_vm8, %vm2730_vm7  ;;  %v2387_v34 = vmul.f32 %v3525_v18, %v2386_v28  ;;  %vm2389_vm4 = vweird.f32 %v2383_v13  ;;  %v3053_v21 = vld [vmem:[#allocation10 + $0x8] sm:$0xff]  ;;  %v2673_v28 = vadd.f32 %v2672_v45, %v4217_v54  ;;  %v3461_v54 = vld [vmem:[%s3871_s1] ss:$0 sm:$0xff] }
0x1221   : > { %v2726_v24 = vsub.f32 1.0, %v2725_v19  ;;  %vm2391_vm14 = vmor %vm2389_vm4, %vm2390_vm13  ;;  %v3054_v19 = vld [vmem:[#allocation10 + $0x10] sm:$0xff] }
0x1222   : > { %v2388_v37 = vadd.f32 %v3525_v18, %v2387_v34  ;;  %2849 = vmatpush.msrb.mxu3 %v2825_v47 }
0x1223   : > { %v2727_v26 = vmul.f32 %v3527_v9, %v2726_v24 }
0x1224   : > { %v2392_v40 = vsel %vm2391_vm14, %v3525_v18, %v2388_v37  ;;  %2952 = vmatpush.msra.mxu3 %v2912_v20  ;;  %v2966_v18 = vld [vmem:[%s4369_s2] sm:$0xff] }
0x1225   : > { %v2728_v30 = vadd.f32 %v3527_v9, %v2727_v26  ;;  %v2397_v44 = vsel %vm2394_vm15, %v2396_v41, %v2392_v40 }
0x1226   : > { %2953 = vmatpush.msra.mxu3 %v2911_v14 }
0x1227   : > { %v2732_v33 = vsel %vm2731_vm10, %v3527_v9, %v2728_v30  ;;  %v2407_v42 = vpop.permute.xlu2 %2406  ;;  %v3055_v9 = vld [vmem:[#allocation10 + $0x18] sm:$0xff] }
0x1228   : > { %v2737_v35 = vsel %vm2734_vm3, %v2736_v31, %v2732_v33  ;;  %v2409_v46 = vmul.f32 %v2407_v42, %v2397_v44 }
0x1229   : > { %v2738_v36 = vmul.f32 %v3517_v2, %v2737_v35 }
0x122b   : > { %3353 = vmatmul.msk.f32.vlgmr.msrb.gmra.mxu2 %vm1421_vm9, %v2738_v36 }
0x122c   : > { %3006 = vmatpush.msrb.mxu2 %v2969_v12 }
0x122e   : > { %3007 = vmatpush.msrb.mxu2 %v2968_v15 }
0x122f   : > { %v2402_v62 = vpop.permute.xlu2 %2401 }
0x1230   : > { %v2404_v63 = vmul.f32 %v2402_v62, %v2397_v44 }
0x1235   : > { %2411 = vrot.lane.b32.xlu1 %v2409_v46, %s4368_s4 }
0x128f   : > { %v2807_v48 = vpop.xlane.xlu1 %2806 }
0x1290   : > { %3528 = vrcp.f32 %v2807_v48  ;;  %v2819_v51 = vand.u32 2147483648, %v2807_v48  ;;  %v2817_v53 = vand.u32 2147483647, %v2807_v48  ;;  %vm2813_vm5 = vweird.f32 %v2807_v48 }
0x1292   : > { %v2820_v56 = vor.u32 1.1754944e-38, %v2819_v51  ;;  %vm2818_vm7 = vcmp.eq.f32.partialorder %v2817_v53, 8.507059e+37 }
0x1296   : > { %v3529_v49 = vpop.eup %3528 }
0x1297   : > { %v2809_v50 = vmul.f32 %v3529_v49, %v2807_v48  ;;  %vm2814_vm0 = vweird.f32 %v3529_v49  ;;  %v2934_v48 = vpop.f32.mrf.mxu1 }
0x1298   : > { %vm2815_vm6 = vmor %vm2813_vm5, %vm2814_vm0 }
0x1299   : > { %v2810_v43 = vsub.f32 1.0, %v2809_v50 }
0x129b   : > { %v2811_v52 = vmul.f32 %v3529_v49, %v2810_v43 }
0x129d   : > { %v2812_v55 = vadd.f32 %v3529_v49, %v2811_v52 }
0x129f   : > { %v2816_v57 = vsel %vm2815_vm6, %v3529_v49, %v2812_v55  ;;  %v3048_v53 = vpop.f32.mrf.mxu1 }
0x12a0   : > { %v2821_v58 = vsel %vm2818_vm7, %v2820_v56, %v2816_v57 }
0x12a1   : > { %v2822_v59 = vmul.f32 %v3523_v16, %v2821_v58  ;;  %v2967_v16 = vld [vmem:[%s4369_s2 + $0x8] sm:$0xff] }
0x12a2   : > { %3008 = vmatpush.msrb.mxu2 %v2967_v16 }
0x12a3   : > { %3358 = vmatmul.msk.f32.vlgmr.msrb.gmra.mxu3 %vm1421_vm9, %v2822_v59 }
0x12a4   : > { %3009 = vmatpush.msrb.mxu2 %v2966_v18 }
0x12a7   : > { %v2412_v0 = vpop.permute.xlu1 %2411 }
0x12a8   : > { %v2414_v1 = vadd.f32 %v2412_v0, %v2404_v63 }
0x12aa   : > { %3530 = vtanh.f32 %v2414_v1 }
0x12ae   : > { %v2762_v2 = vpop.f32.mrf.mxu2 }
0x12af   : > { %3360 = vmatmul.msk.f32.vlgmr.msra.gmra.mxu2 %vm1364_vm1, %v2762_v2 }
0x12b0   : > { %v3531_v3 = vpop.eup %3530 }
0x12b1   : > { %2417 = vrot.lane.b32.xlu0 %v3531_v3, %s4367_s3  ;;  %s4370_s3 = scalar_lea.vmem %s3876_s17, %s3949_s16 }
0x12b9   : > { %3111 = vrot.lane.b32.xlu0 %v4067_v22, %s3664_s19 }
0x1323   : > { %v2418_v60 = vpop.permute.xlu0 %2417 }
0x1324   : > { %v2420_v8 = vmul.f32 %v2418_v60, %v2397_v44 }
0x1326   : > { %v2851_v10 = vpop.f32.mrf.mxu3  ;;  %3105 = vrot.lane.b32.xlu2 %v2420_v8, %s4368_s4  ;;  %s4371_s4 = sld [smem:[#allocation34_spill]] }
0x1327   : > { %3359 = vmatmul.msk.f32.vlgmr.msrb.gmra.mxu0 %vm1364_vm1, %v2851_v10 }
0x132b   : > { %v3112_v22 = vpop.permute.xlu0 %3111 }
0x132c   : > { %3114 = vst.msk [vmem:[#allocation5] sm:$0x3] %vm1819_vm12, %v3112_v22  ;;  %v3458_v27 = vld [vmem:[%s4371_s4] ss:$0 sm:$0xff]  ;;  %s4374_s4 = sld [smem:[#allocation39_spill]] }
0x132e   : > { %3116 = vrot.lane.b32.xlu2 %v2414_v1, %s3664_s19  ;;  %s4372_s19 = sld [smem:[#allocation38_spill]] }
0x132f   : > { %3363 = vmatmul.msk.f32.vlgmr.msra.gmra.mxu0 %vm1330_vm2, %v4145_v29  ;;  %v2910_v29 = vld [vmem:[%s4364_s18 + $0x8] sm:$0xff] }
0x1330   : > { %2954 = vmatpush.msra.mxu3 %v2910_v29 }
0x1332   : > { %2955 = vmatpush.msra.mxu3 %v2909_v17  ;;  %v2897_v24 = vpop.f32.mrf.mxu2  ;;  %v3457_v51 = vld [vmem:[%s4374_s4] ss:$0 sm:$0xff] }
0x1333   : > { %v3049_v57 = vadd.f32 %v3457_v51, %v3048_v53 }
0x1334   : > { %3072 = vmatpush.msrb.mxu3 %v3055_v9  ;;  %v3460_v39 = vld [vmem:[%s4372_s19] ss:$0 sm:$0xff]  ;;  %s4375_s19 = scalar_lea.vmem %s3881_s15, %s3949_s16 }
0x1335   : > { %v3051_v1 = vmax.f32 %v3049_v57, 0.0 }
0x1336   : > { %3073 = vmatpush.msrb.mxu3 %v3054_v19 }
0x1338   : > { %3074 = vmatpush.msrb.mxu3 %v3053_v21 }
0x133a   : > { %3075 = vmatpush.msrb.mxu3 %v3052_v23 }
0x1380   : > { %v3106_v32 = vpop.permute.xlu2 %3105 }
0x1381   : > { %3108 = vst.msk [vmem:[#allocation3] sm:$0x3] %vm1819_vm12, %v3106_v32 }
0x1382   : > { %3120 = vst.msk [vmem:[%s4370_s3] sm:$0x3] %vm1819_vm12, %v3106_v32  ;;  %s4373_s3 = sld [smem:[#allocation36_spill]] }
0x1388   : > { %v3117_v13 = vpop.permute.xlu2 %3116  ;;  %v3459_v43 = vld [vmem:[%s4373_s3] ss:$0 sm:$0xff] }
0x1389   : > { %3119 = vst.msk [vmem:[#allocation6] sm:$0x3] %vm1819_vm12, %v3117_v13 }
0x13a4   : > { %v2874_v25 = vpop.f32.mrf.mxu0 }
0x13a5   : > { %v2898_v26 = vadd.f32 %v2897_v24, %v2874_v25 }
0x13a7   : > { %v2901_v30 = vrot.slane %v2898_v26, 7 }
0x13a9   : > { %v2903_v31 = vsel %vm1812_vm11, %v2673_v28, %v2901_v30 }
0x13aa   : > { %v2907_v33 = vadd.f32 %v3458_v27, %v2903_v31 }
0x13ac   : > { %v2908_v34 = vadd.f32 %v2907_v33, %v4101_v5  ;;  %v2991_v37 = vpop.f32.mrf.mxu0 }
0x13ae   : > { %3362 = vmatmul.msk.f32.vlgmr.msra.gmra.mxu3 %vm1330_vm2, %v2908_v34  ;;  %3364 = vmatmul.msk.f32.vlgmr.msrb.gmra.mxu2 %vm1330_vm2, %v2908_v34 }
0x13b6   : > { %3366 = vmatmul.msk.f32.vlgmr.msrb.gmra.mxu3 %vm1330_vm2, %v4106_v11 }
0x1431   : > { %v2957_v35 = vpop.f32.mrf.mxu3  ;;  %v3011_v36 = vpop.f32.mrf.mxu2 }
0x1432   : > { %v3012_v38 = vadd.f32 %v3011_v36, %v2991_v37  ;;  %v2958_v11 = vadd.f32 %v2957_v35, %v2934_v48 }
0x1434   : > { %v3018_v40 = vadd.f32 %v3460_v39, %v3012_v38  ;;  %v2964_v55 = vadd.f32 %v3459_v43, %v2958_v11 }
0x1436   : > { %v3019_v44 = vmax.f32 %v3018_v40, 0.0  ;;  %v2965_v62 = vmax.f32 %v2964_v55, 0.0 }
0x1438   : > { %v3101_v61 = vadd.f32 %v3051_v1, %v2965_v62 }
0x1439   : > { %v3077_v41 = vpop.f32.mrf.mxu3 }
0x143a   : > { %v3078_v42 = vadd.f32 %v3461_v54, %v3077_v41 }
0x143c   : > { %v3080_v5 = vmax.f32 %v3078_v42, 0.0 }
0x143e   : > { %v3081_v46 = vadd.f32 %v3080_v5, %v3019_v44 }
0x1440   : > { %v3367_v47 = vmul.f32 -1.442695, %v3081_v46 }
0x1442   : > { %3532 = vpow2.f32 %v3367_v47 }
0x1448   : > { %v3533_v49 = vpop.eup %3532 }
0x1449   : > { %v3085_v50 = vadd.f32 1.0, %v3533_v49 }
0x144b   : > { %3534 = vrcp.f32 %v3085_v50  ;;  %v3097_v59 = vand.u32 2147483648, %v3085_v50  ;;  %v3095_v0 = vand.u32 2147483647, %v3085_v50  ;;  %vm3091_vm2 = vweird.f32 %v3085_v50 }
0x144d   : > { %v3098_v3 = vor.u32 1.1754944e-38, %v3097_v59  ;;  %vm3096_vm11 = vcmp.eq.f32.partialorder %v3095_v0, 8.507059e+37 }
0x1451   : > { %v3535_v52 = vpop.eup %3534 }
0x1452   : > { %v3087_v56 = vmul.f32 %v3535_v52, %v3085_v50  ;;  %vm3092_vm1 = vweird.f32 %v3535_v52 }
0x1453   : > { %vm3093_vm9 = vmor %vm3091_vm2, %vm3092_vm1 }
0x1454   : > { %v3088_v58 = vsub.f32 1.0, %v3087_v56 }
0x1456   : > { %v3089_v63 = vmul.f32 %v3535_v52, %v3088_v58 }
0x1458   : > { %v3090_v2 = vadd.f32 %v3535_v52, %v3089_v63 }
0x145a   : > { %v3094_v4 = vsel %vm3093_vm9, %v3535_v52, %v3090_v2 }
0x145b   : > { %v3099_v6 = vsel %vm3096_vm11, %v3098_v3, %v3094_v4 }
0x145c   : > { %v3102_v7 = vmul.f32 %v3101_v61, %v3099_v6 }
0x145e   : > { %3109 = vst.msk [vmem:[#allocation4] sm:$0x3] %vm1819_vm12, %v3102_v7 }
0x145f   : > { %3121 = vst.msk [vmem:[%s4375_s19] sm:$0x3] %vm1819_vm12, %v3102_v7 }
0x1460 PF: > { %s4376_s3 = sld [smem:[#allocation40_spill]] }
0x1466   : > { %s100_s19 = sadd.s32 1, %s4376_s3  }
0x1467   : > { %p97_p2 = scmp.ge.s32.totalorder %s100_s19, 6  }
0x1469   :  { %99 = sbr.rel (!%p97_p2) target bundleno = 72 (0x48), region = 287 }
0x146e   :  { %3155 = vsyncpa [#allocation9], 1 }
0x146f   :  { %3157 = vsyncpa [#allocation9 + $0x1], 1 }
0x1470   :  { %3158 = vsyncpa [#allocation11], 1 }

</bundles_post_ra>
